<compile_context>
chip_gen: v7x
topology: tpu7x:2x2x1
jax: 0.10.0
libtpu: 0.0.40
codegen_flags: <defaults>
</compile_context>

<pallas_src>
import jax
import jax.numpy as jnp
from jax import lax
from jax.experimental import pallas as pl
from jax.experimental.pallas import tpu as pltpu


def _round_up(x, m):
    return (x + m - 1) // m * m


# --------------------------------------------------------------------------------------
# Kernel bodies
# --------------------------------------------------------------------------------------

def _layer1(x_ref, w1_ref, b1_ref):
    """Linear(1536->1024) + ReLU. bf16 operands on the MXU, f32 accumulation."""
    x = x_ref[...].astype(jnp.bfloat16)
    h1 = jnp.dot(x, w1_ref[...], preferred_element_type=jnp.float32)
    return jnp.maximum(h1 + b1_ref[...], 0.0)


def _layer2_and_head(h1, w2, b2_ref, w3_ref, b3_ref, o_ref):
    """Linear(1024->1024) + ReLU, then the output_dim==1 head as a lane-dense row."""
    h2 = jnp.dot(h1.astype(jnp.bfloat16), w2, preferred_element_type=jnp.float32)
    h2 = jnp.maximum(h2 + b2_ref[...], 0.0)
    # Contract the 1024 axis of the (1, d_h) w3 row against h2 -> (1, bm) on the MXU.
    # Lane-dense result: the writeback is a dense (1, bm) store instead of a (bm, 1)
    # column of masked stores.
    head = lax.dot_general(
        w3_ref[...], h2.astype(jnp.bfloat16),
        dimension_numbers=(((1,), (1,)), ((), ())),
        preferred_element_type=jnp.float32)
    o_ref[...] = (head + b3_ref[...]).astype(o_ref.dtype)


def qnetwork_kernel_resident(x_ref, w1_ref, b1_ref, w2_ref, b2_ref, w3_ref, b3_ref,
                             o_ref):
    """Many-grid-step path: all weights are constant-index-map VMEM blocks (resident)."""
    h1 = _layer1(x_ref, w1_ref, b1_ref)
    _layer2_and_head(h1, w2_ref[...], b2_ref, w3_ref, b3_ref, o_ref)


def qnetwork_kernel_overlap(x_ref, w1_ref, b1_ref, w2_hbm, b2_ref, w3_ref, b3_ref,
                            o_ref, w2_vmem, w2_sem):
    """1-2 grid-step path: with no previous iteration to hide DMAs under, the 2 MiB w2
    fetch is started before the layer-1 matmul and waited on only after it, so most of
    the tail-weight fetch hides behind MXU work.  (b2/w3/b3 total ~6 KB -> left as
    ordinary constant blocks.)"""
    w2_copy = pltpu.make_async_copy(w2_hbm, w2_vmem, w2_sem)
    w2_copy.start()
    h1 = _layer1(x_ref, w1_ref, b1_ref)
    w2_copy.wait()
    _layer2_and_head(h1, w2_vmem[...], b2_ref, w3_ref, b3_ref, o_ref)


# --------------------------------------------------------------------------------------
# Parameters
# --------------------------------------------------------------------------------------

def init_params(key, input_dim=1536, hidden_dim=1024, output_dim=1):
    """PyTorch-style Linear init (U(-1/sqrt(fan_in), +)), stored as [fan_in, fan_out] f32."""
    ks = jax.random.split(key, 6)

    def linear(kw, kb, fan_in, fan_out):
        bound = 1.0 / jnp.sqrt(fan_in)
        w = jax.random.uniform(kw, (fan_in, fan_out), jnp.float32, -bound, bound)
        b = jax.random.uniform(kb, (1, fan_out), jnp.float32, -bound, bound)
        return w, b

    w1, b1 = linear(ks[0], ks[1], input_dim, hidden_dim)
    w2, b2 = linear(ks[2], ks[3], hidden_dim, hidden_dim)
    w3, b3 = linear(ks[4], ks[5], hidden_dim, output_dim)
    return (w1, b1, w2, b2, w3, b3)


def prepare_params(params):
    """One-time conversion to kernel layout: bf16 weights, f32 biases, w3 as a (1, d_h) row."""
    w1, b1, w2, b2, w3, b3 = params
    assert w3.shape[1] == 1, "kernel head is specialized to output_dim == 1"
    return (
        w1.astype(jnp.bfloat16),
        b1.astype(jnp.float32),
        w2.astype(jnp.bfloat16),
        b2.astype(jnp.float32),
        w3.reshape(1, -1).astype(jnp.bfloat16),   # (1, d_h) row for the head contraction
        b3.reshape(1, 1).astype(jnp.float32),
    )


# --------------------------------------------------------------------------------------
# Forward
# --------------------------------------------------------------------------------------

def _pick_block_m(B, block_m):
    if B <= 128:
        return _round_up(B, 8)
    # Keep >= 2 grid steps whenever B > 128 so dimension_semantics=("parallel",) can
    # shard the batch across v7x's two TensorCores; grows toward block_m for large B.
    return min(block_m, _round_up(pl.cdiv(B, 2), 128))


def qnetwork_forward(x, prepared_params, *, block_m=512):
    """x: [B, input_dim] f32.  Returns [B, 1] f32."""
    w1, b1, w2, b2, w3, b3 = prepared_params
    B, d_in = x.shape
    d_h = w1.shape[1]

    bm = _pick_block_m(B, block_m)
    num_blocks = pl.cdiv(B, bm)   # ragged last block handled by Pallas (no jnp.pad copy)

    def const2d(shape):
        # Constant index_map -> the block is not re-streamed across the grid.
        return pl.BlockSpec(shape, lambda i: (0, 0))

    x_spec = pl.BlockSpec((bm, d_in), lambda i: (i, 0))
    out_spec = pl.BlockSpec((1, bm), lambda i: (i, 0))      # lane-dense output row / step
    out_shape = jax.ShapeDtypeStruct((num_blocks, bm), jnp.float32)
    compiler_params = pltpu.CompilerParams(
        dimension_semantics=("parallel",),
        # ~24 MiB actual footprint at bm=512 (bf16 weights + double-buffered x tiles +
        # f32 activations); explicit because v5e's scoped default (16 MiB) is too small,
        # and well under v7x's 64 MiB physical VMEM per TC.
        vmem_limit_bytes=32 * 1024 * 1024,
    )

    if num_blocks <= 2:
        # Small-batch / low-step regime: overlap the w2 fetch with layer-1 compute.
        out = pl.pallas_call(
            qnetwork_kernel_overlap,
            out_shape=out_shape,
            grid=(num_blocks,),
            in_specs=[
                x_spec,                             # x tile (f32)
                const2d((d_in, d_h)),               # w1 (bf16) - needed before layer 1
                const2d((1, d_h)),                  # b1 (f32)
                pl.BlockSpec(memory_space=pl.ANY),  # w2 (bf16) - manual DMA, overlapped
                const2d((1, d_h)),                  # b2 (f32)
                const2d((1, d_h)),                  # w3 row (bf16)
                const2d((1, 1)),                    # b3 (f32)
            ],
            out_specs=out_spec,
            scratch_shapes=[
                pltpu.VMEM((d_h, d_h), jnp.bfloat16),
                pltpu.SemaphoreType.DMA(()),
            ],
            compiler_params=compiler_params,
        )(x, w1, b1, w2, b2, w3, b3)
    else:
        # Many-step regime: keep every weight resident via constant index maps so w2 is
        # never re-streamed (the auto-pipeline hides the x-tile DMAs behind compute).
        out = pl.pallas_call(
            qnetwork_kernel_resident,
            out_shape=out_shape,
            grid=(num_blocks,),
            in_specs=[
                x_spec,
                const2d((d_in, d_h)),               # w1 (bf16)
                const2d((1, d_h)),                  # b1 (f32)
                const2d((d_h, d_h)),                # w2 (bf16)
                const2d((1, d_h)),                  # b2 (f32)
                const2d((1, d_h)),                  # w3 row (bf16)
                const2d((1, 1)),                    # b3 (f32)
            ],
            out_specs=out_spec,
            compiler_params=compiler_params,
        )(x, w1, b1, w2, b2, w3, b3)

    # (num_blocks, bm) lane-dense slab -> (B, 1); drops padded/ragged garbage entries.
    return out.reshape(num_blocks * bm)[:B].reshape(B, 1)


# --------------------------------------------------------------------------------------
# References
# --------------------------------------------------------------------------------------

def qnetwork_ref(x, prepared_params):
    """Numerically-matched reference (bf16 operands, f32 accumulation)."""
    w1, b1, w2, b2, w3, b3 = prepared_params
    h1 = jnp.dot(x.astype(jnp.bfloat16), w1, preferred_element_type=jnp.float32) + b1
    h1 = jnp.maximum(h1, 0.0)
    h2 = jnp.dot(h1.astype(jnp.bfloat16), w2, preferred_element_type=jnp.float32) + b2
    h2 = jnp.maximum(h2, 0.0)
    return jnp.dot(h2.astype(jnp.bfloat16), w3.T, preferred_element_type=jnp.float32) + b3


def qnetwork_ref_f32(x, params):
    """Full-precision reference of the original PyTorch forward."""
    w1, b1, w2, b2, w3, b3 = params
    h1 = jnp.maximum(x @ w1 + b1, 0.0)
    h2 = jnp.maximum(h1 @ w2 + b2, 0.0)
    return h2 @ w3 + b3


# --------------------------------------------------------------------------------------
# Self-test
# --------------------------------------------------------------------------------------

if __name__ == "__main__":
    key = jax.random.PRNGKey(0)
    k_param, k1, k2, k3 = jax.random.split(key, 4)

    input_dim, hidden_dim, output_dim = 1536, 1024, 1
    params = init_params(k_param, input_dim, hidden_dim, output_dim)
    prepared = prepare_params(params)

    def check(name, x):
        out = jax.block_until_ready(qnetwork_forward(x, prepared))
        assert out.shape == (x.shape[0], output_dim), (name, out.shape)
        assert jnp.allclose(out, qnetwork_ref(x, prepared), atol=2e-3, rtol=2e-3), \
            f"{name}: mismatch vs bf16-matched reference"
        err = float(jnp.max(jnp.abs(out - qnetwork_ref_f32(x, params))))
        assert err < 5e-2, f"{name}: bf16 quantization error vs f32 reference too large ({err})"

    # Tiny ragged batch -> single-step overlap path (bm = 8, partial block).
    check("tiny", jax.random.normal(k1, (5, input_dim), jnp.float32))
    # Mid batch -> 2-step 'parallel' overlap path (bm = 256, ragged last block).
    check("mid", jax.random.normal(k2, (400, input_dim), jnp.float32))
    # Large batch -> resident path (bm = 512, grid = 3, ragged last block).
    check("large", jax.random.normal(k3, (1200, input_dim), jnp.float32))

    print("KERNEL_OK")
</pallas_src>

<mosaic_0001>
module attributes {stable_mosaic.version = 11 : i64} {
  func.func @qnetwork_kernel_overlap(%arg0: i32, %arg1: memref<8x1536xf32, #tpu.memory_space<vmem>>, %arg2: memref<1536x1024xbf16, #tpu.memory_space<vmem>>, %arg3: memref<1x1024xf32, #tpu.memory_space<vmem>>, %arg4: memref<1024x1024xbf16, #tpu.memory_space<any>>, %arg5: memref<1x1024xf32, #tpu.memory_space<vmem>>, %arg6: memref<1x1024xbf16, #tpu.memory_space<vmem>>, %arg7: memref<1x1xf32, #tpu.memory_space<vmem>>, %arg8: memref<1x8xf32, #tpu.memory_space<vmem>>, %arg9: memref<1024x1024xbf16, #tpu.memory_space<vmem>>, %arg10: memref<!tpu.dma_semaphore, #tpu.memory_space<semaphore_mem>>) attributes {dimension_semantics = [#tpu.dimension_semantics<parallel>], iteration_bounds = array<i64: 1>, scalar_prefetch = 0 : i64, scratch_operands = 2 : i64, tpu.core_type = #tpu.core_type<tc>, window_params = [{transform_indices = @transform_0, window_bounds = array<i64: 8, 1536>}, {pipeline_mode = #tpu.pipeline_mode<synchronous>, transform_indices = @transform_1, window_bounds = array<i64: 1536, 1024>}, {pipeline_mode = #tpu.pipeline_mode<synchronous>, transform_indices = @transform_2, window_bounds = array<i64: 1, 1024>}, {}, {pipeline_mode = #tpu.pipeline_mode<synchronous>, transform_indices = @transform_4, window_bounds = array<i64: 1, 1024>}, {pipeline_mode = #tpu.pipeline_mode<synchronous>, transform_indices = @transform_5, window_bounds = array<i64: 1, 1024>}, {pipeline_mode = #tpu.pipeline_mode<synchronous>, transform_indices = @transform_6, window_bounds = array<i64: 1, 1>}, {transform_indices = @transform_7, window_bounds = array<i64: 1, 8>}]} {
    tpu.enqueue_dma source(%arg4 : memref<1024x1024xbf16, #tpu.memory_space<any>>) target(%arg9 : memref<1024x1024xbf16, #tpu.memory_space<vmem>>) target_semaphore(%arg10 : memref<!tpu.dma_semaphore, #tpu.memory_space<semaphore_mem>>)
    %c0 = arith.constant 0 : index
    %c0_0 = arith.constant 0 : index
    %0 = vector.load %arg1[%c0, %c0_0] : memref<8x1536xf32, #tpu.memory_space<vmem>>, vector<8x1536xf32>
    %1 = arith.truncf %0 : vector<8x1536xf32> to vector<8x1536xbf16>
    %c0_1 = arith.constant 0 : index
    %c0_2 = arith.constant 0 : index
    %2 = vector.load %arg2[%c0_1, %c0_2] : memref<1536x1024xbf16, #tpu.memory_space<vmem>>, vector<1536x1024xbf16>
    %cst = arith.constant dense<0.000000e+00> : vector<8x1024xf32>
    %3 = tpu.matmul %1, %2, %cst {dimension_numbers = #tpu.dot_dimension_numbers<[1], [0], [0], [1], [0, 0, 1, 1], [], []>} : vector<8x1536xbf16>, vector<1536x1024xbf16>, vector<8x1024xf32> -> vector<8x1024xf32>
    %c0_3 = arith.constant 0 : index
    %c0_4 = arith.constant 0 : index
    %4 = vector.load %arg3[%c0_3, %c0_4] : memref<1x1024xf32, #tpu.memory_space<vmem>>, vector<1x1024xf32>
    %5 = vector.broadcast %4 : vector<1x1024xf32> to vector<8x1024xf32>
    %6 = arith.addf %3, %5 : vector<8x1024xf32>
    %cst_5 = arith.constant 0.000000e+00 : f32
    %7 = vector.broadcast %cst_5 : f32 to vector<8x1024xf32>
    %8 = arith.maximumf %6, %7 : vector<8x1024xf32>
    tpu.wait_dma2 semaphore(%arg10 : memref<!tpu.dma_semaphore, #tpu.memory_space<semaphore_mem>>) src(%arg4 : memref<1024x1024xbf16, #tpu.memory_space<any>>) dst(%arg9 : memref<1024x1024xbf16, #tpu.memory_space<vmem>>)
    %c0_6 = arith.constant 0 : index
    %c0_7 = arith.constant 0 : index
    %9 = vector.load %arg9[%c0_6, %c0_7] : memref<1024x1024xbf16, #tpu.memory_space<vmem>>, vector<1024x1024xbf16>
    %10 = arith.truncf %8 : vector<8x1024xf32> to vector<8x1024xbf16>
    %cst_8 = arith.constant dense<0.000000e+00> : vector<8x1024xf32>
    %11 = tpu.matmul %10, %9, %cst_8 {dimension_numbers = #tpu.dot_dimension_numbers<[1], [0], [0], [1], [0, 0, 1, 1], [], []>} : vector<8x1024xbf16>, vector<1024x1024xbf16>, vector<8x1024xf32> -> vector<8x1024xf32>
    %c0_9 = arith.constant 0 : index
    %c0_10 = arith.constant 0 : index
    %12 = vector.load %arg5[%c0_9, %c0_10] : memref<1x1024xf32, #tpu.memory_space<vmem>>, vector<1x1024xf32>
    %13 = vector.broadcast %12 : vector<1x1024xf32> to vector<8x1024xf32>
    %14 = arith.addf %11, %13 : vector<8x1024xf32>
    %cst_11 = arith.constant 0.000000e+00 : f32
    %15 = vector.broadcast %cst_11 : f32 to vector<8x1024xf32>
    %16 = arith.maximumf %14, %15 : vector<8x1024xf32>
    %c0_12 = arith.constant 0 : index
    %c0_13 = arith.constant 0 : index
    %17 = vector.load %arg6[%c0_12, %c0_13] : memref<1x1024xbf16, #tpu.memory_space<vmem>>, vector<1x1024xbf16>
    %18 = arith.truncf %16 : vector<8x1024xf32> to vector<8x1024xbf16>
    %cst_14 = arith.constant dense<0.000000e+00> : vector<1x8xf32>
    %19 = tpu.matmul %17, %18, %cst_14 {dimension_numbers = #tpu.dot_dimension_numbers<[1], [1], [0], [0], [0, 0, 1, 0], [], []>} : vector<1x1024xbf16>, vector<8x1024xbf16>, vector<1x8xf32> -> vector<1x8xf32>
    %c0_15 = arith.constant 0 : index
    %c0_16 = arith.constant 0 : index
    %20 = vector.load %arg7[%c0_15, %c0_16] : memref<1x1xf32, #tpu.memory_space<vmem>>, vector<1x1xf32>
    %21 = vector.broadcast %20 : vector<1x1xf32> to vector<1x8xf32>
    %22 = arith.addf %19, %21 : vector<1x8xf32>
    %c0_17 = arith.constant 0 : index
    %c0_18 = arith.constant 0 : index
    %23 = vector.load %arg8[%c0_17, %c0_18] : memref<1x8xf32, #tpu.memory_space<vmem>>, vector<1x8xf32>
    tpu.vector_store %arg8[%c0_17, %c0_18], %22 {strides = array<i32>} : memref<1x8xf32, #tpu.memory_space<vmem>>, vector<1x8xf32>,
    return
  }
  func.func @transform_0(%arg0: i32) -> (i32, i32) {
    %c0_i32 = arith.constant 0 : i32
    %c0_i32_0 = arith.constant 0 : i32
    return %arg0, %c0_i32 : i32, i32
  }
  func.func @transform_1(%arg0: i32) -> (i32, i32) {
    %c0_i32 = arith.constant 0 : i32
    %c0_i32_0 = arith.constant 0 : i32
    %c0_i32_1 = arith.constant 0 : i32
    return %c0_i32, %c0_i32_0 : i32, i32
  }
  func.func @transform_2(%arg0: i32) -> (i32, i32) {
    %c0_i32 = arith.constant 0 : i32
    %c0_i32_0 = arith.constant 0 : i32
    %c0_i32_1 = arith.constant 0 : i32
    return %c0_i32, %c0_i32_0 : i32, i32
  }
  func.func @transform_4(%arg0: i32) -> (i32, i32) {
    %c0_i32 = arith.constant 0 : i32
    %c0_i32_0 = arith.constant 0 : i32
    %c0_i32_1 = arith.constant 0 : i32
    return %c0_i32, %c0_i32_0 : i32, i32
  }
  func.func @transform_5(%arg0: i32) -> (i32, i32) {
    %c0_i32 = arith.constant 0 : i32
    %c0_i32_0 = arith.constant 0 : i32
    %c0_i32_1 = arith.constant 0 : i32
    return %c0_i32, %c0_i32_0 : i32, i32
  }
  func.func @transform_6(%arg0: i32) -> (i32, i32) {
    %c0_i32 = arith.constant 0 : i32
    %c0_i32_0 = arith.constant 0 : i32
    %c0_i32_1 = arith.constant 0 : i32
    return %c0_i32, %c0_i32_0 : i32, i32
  }
  func.func @transform_7(%arg0: i32) -> (i32, i32) {
    %c0_i32 = arith.constant 0 : i32
    %c0_i32_0 = arith.constant 0 : i32
    return %arg0, %c0_i32 : i32, i32
  }
}

</mosaic_0001>

<bundles_post_ra>
// kernel: tpu_custom_call.1
= control target key start
LH: loop header
LB: loop body
LE: loop exit
PB: predicated region body
PF: predicated region fallthrough
CT: control target
= control target key end

     0   :  { %s8752_s0 = inlined_call_operand.hbm [shape: f32[5,1536], index: 0, kind: input, shape index: {}]   ;;  %s8753_s1 = inlined_call_operand.hbm [shape: bf16[1536,1024], index: 1, kind: input, shape index: {}]   ;;  %s8754_s2 = inlined_call_operand.hbm [shape: f32[1,1024], index: 2, kind: input, shape index: {}]   ;;  %s8755_s3 = inlined_call_operand.hbm [shape: bf16[1024,1024], index: 3, kind: input, shape index: {}]   ;;  %s8756_s4 = inlined_call_operand.hbm [shape: f32[1,1024], index: 4, kind: input, shape index: {}]   ;;  %s8757_s5 = inlined_call_operand.hbm [shape: bf16[1,1024], index: 5, kind: input, shape index: {}]   ;;  %s8758_s6 = inlined_call_operand.<no memory space> [shape: f32[1,1], index: 6, kind: input, shape index: {}]   ;;  %s8759_s7 = inlined_call_operand.hbm [shape: f32[1,8], index: 7, kind: output, shape index: {}]  }
   0x1   :  { %v12_v0 = vstv %s8758_s6 }
   0x2   :  { %13 = vst [vmem:[#allocation4] sm:$0x1] %v12_v0 }
   0x3   :  { %14 = vsyncpa [#allocation6], 0 }
   0x4   :  { %15 = vsyncpa [#allocation9], 0 }
   0x5   :  { %16 = vsyncpa [#allocation12], 0 }
   0x6   :  { %17 = vsyncpa [#allocation7], 0  ;;  %s8370_s26 = smov [#allocation8]   ;;  %s8228_s30 = scalar_lea.hbm %s8753_s1, 98304 }
   0x7   :  { %s33_s27 = sshll.u32 %s8370_s26, 4  ;;  %p8229_p0 = scmp.ne.s32.totalorder %s8753_s1, %s8228_s30  ;;  %s34_s27 = int_to_ptr.vmem [resolvable:$true] %s33_s27 }
   0x8   :  { %p8232_p1 = scmp.lt.u32.totalorder %s8228_s30, %s8753_s1 }
   0xa   :  { %p8234_p2 = pnand %p8232_p1, %p8229_p0 }
   0xc   :  { %8237 = shalt.err (!%p8234_p2)
}
   0xd   :  { %s8238_s6 = scalar_lea.vmem %s34_s27, 98304  ;;  %p8243_p4 = scmp.lt.s32.totalorder %s34_s27, %s34_s27 }
   0xe   :  { %p8239_p3 = scmp.ne.s32.totalorder %s34_s27, %s8238_s6  ;;  %p8244_p5 = scmp.lt.s32.totalorder %s8238_s6, %s8238_s6 }
  0x10   :  { %p8245_p6 = por %p8244_p5, %p8243_p4 }
  0x12   :  { %p8246_p7 = pnand %p8245_p6, %p8239_p3 }
  0x14   :  { %8249 = shalt.err (!%p8246_p7)
}
  0x15   :  { %s8371_s12 = smov 512   ;;  %s8372_s13 = smov 32  }
  0x16   :  { %39 = dma.hbm_to_vmem [thread:$0]  %s8753_s1, 98304, %s34_s27, [#allocation9], %s8371_s12, %s8371_s12, %s8372_s13  }
  0x17   :  { %s8373_s16 = smov [#allocation11]   ;;  %s8374_s18 = smov [#allocation5]  }
  0x18   :  { %s56_s17 = sshll.u32 %s8373_s16, 4  ;;  %s24_s19 = sshll.u32 %s8374_s18, 4  ;;  %s57_s17 = int_to_ptr.vmem [resolvable:$true] %s56_s17  ;;  %s25_s19 = int_to_ptr.vmem [resolvable:$true] %s24_s19 }
  0x19   :  { %s8250_s22 = scalar_lea.hbm %s8756_s4, 128 }
  0x1a   :  { %p8251_p8 = scmp.ne.s32.totalorder %s8756_s4, %s8250_s22  ;;  %p8254_p9 = scmp.lt.u32.totalorder %s8250_s22, %s8756_s4 }
  0x1c   :  { %p8256_p10 = pnand %p8254_p9, %p8251_p8 }
  0x1e   :  { %8259 = shalt.err (!%p8256_p10)
}
  0x1f   :  { %s8260_s1 = scalar_lea.vmem %s57_s17, 128  ;;  %p8265_p12 = scmp.lt.s32.totalorder %s57_s17, %s57_s17 }
  0x20   :  { %p8261_p11 = scmp.ne.s32.totalorder %s57_s17, %s8260_s1  ;;  %p8266_p13 = scmp.lt.s32.totalorder %s8260_s1, %s8260_s1 }
  0x22   :  { %p8267_p0 = por %p8266_p13, %p8265_p12 }
  0x24   :  { %p8268_p1 = pnand %p8267_p0, %p8261_p11 }
  0x26   :  { %8271 = shalt.err (!%p8268_p1)
}
  0x27   :  { %59 = dma.hbm_to_vmem [thread:$0]  %s8756_s4, 128, %s57_s17, [#allocation12]  }
  0x28   :  { %s8272_s8 = scalar_lea.hbm %s8752_s0, 1536 }
  0x29   :  { %p8273_p2 = scmp.ne.s32.totalorder %s8752_s0, %s8272_s8  ;;  %p8276_p3 = scmp.lt.u32.totalorder %s8272_s8, %s8752_s0 }
  0x2b   :  { %p8278_p4 = pnand %p8276_p3, %p8273_p2 }
  0x2d   :  { %8281 = shalt.err (!%p8278_p4)
}
  0x2e   :  { %s8282_s13 = scalar_lea.vmem %s25_s19, 1536  ;;  %p8287_p6 = scmp.lt.s32.totalorder %s25_s19, %s25_s19 }
  0x2f   :  { %p8283_p5 = scmp.ne.s32.totalorder %s25_s19, %s8282_s13  ;;  %p8288_p7 = scmp.lt.s32.totalorder %s8282_s13, %s8282_s13 }
  0x31   :  { %p8289_p8 = por %p8288_p7, %p8287_p6 }
  0x33   :  { %p8290_p9 = pnand %p8289_p8, %p8283_p5 }
  0x35   :  { %8293 = shalt.err (!%p8290_p9)
}
  0x36   :  { %27 = dma.hbm_to_vmem [thread:$0]  %s8752_s0, 1536, %s25_s19, [#allocation6]  }
  0x37   :  { %s8375_s15 = smov [#allocation10]   ;;  %s8376_s17 = smov [#allocation13]  }
  0x38   :  { %s46_s16 = sshll.u32 %s8375_s15, 4  ;;  %s66_s18 = sshll.u32 %s8376_s17, 4  ;;  %s47_s16 = int_to_ptr.vmem [resolvable:$true] %s46_s16  ;;  %s67_s18 = int_to_ptr.vmem [resolvable:$true] %s66_s18 }
  0x39   :  { %s8294_s22 = scalar_lea.hbm %s8754_s2, 128 }
  0x3a   :  { %p8295_p10 = scmp.ne.s32.totalorder %s8754_s2, %s8294_s22  ;;  %p8298_p11 = scmp.lt.u32.totalorder %s8294_s22, %s8754_s2 }
  0x3c   :  { %p8300_p12 = pnand %p8298_p11, %p8295_p10 }
  0x3e   :  { %8303 = shalt.err (!%p8300_p12)
}
  0x3f   :  { %s8304_s0 = scalar_lea.vmem %s47_s16, 128  ;;  %p8309_p0 = scmp.lt.s32.totalorder %s47_s16, %s47_s16 }
  0x40   :  { %p8305_p13 = scmp.ne.s32.totalorder %s47_s16, %s8304_s0  ;;  %p8310_p1 = scmp.lt.s32.totalorder %s8304_s0, %s8304_s0 }
  0x42   :  { %p8311_p2 = por %p8310_p1, %p8309_p0 }
  0x44   :  { %p8312_p3 = pnand %p8311_p2, %p8305_p13 }
  0x46   :  { %8315 = shalt.err (!%p8312_p3)
}
  0x47   :  { %49 = dma.hbm_to_vmem [thread:$0]  %s8754_s2, 128, %s47_s16, [#allocation9]  }
  0x48   :  { %s8316_s29 = scalar_lea.hbm %s8757_s5, 128 }
  0x49   :  { %p8317_p4 = scmp.ne.s32.totalorder %s8757_s5, %s8316_s29  ;;  %p8320_p5 = scmp.lt.u32.totalorder %s8316_s29, %s8757_s5 }
  0x4b   :  { %p8322_p6 = pnand %p8320_p5, %p8317_p4 }
  0x4d   :  { %8325 = shalt.err (!%p8322_p6)
}
  0x4e   :  { %s8326_s11 = scalar_lea.vmem %s67_s18, 128  ;;  %p8331_p8 = scmp.lt.s32.totalorder %s67_s18, %s67_s18 }
  0x4f   :  { %p8327_p7 = scmp.ne.s32.totalorder %s67_s18, %s8326_s11  ;;  %p8332_p9 = scmp.lt.s32.totalorder %s8326_s11, %s8326_s11 }
  0x51   :  { %p8333_p10 = por %p8332_p9, %p8331_p8 }
  0x53   :  { %p8334_p11 = pnand %p8333_p10, %p8327_p7 }
  0x55   :  { %8337 = shalt.err (!%p8334_p11)
}
  0x56   :  { %69 = dma.hbm_to_vmem [thread:$0]  %s8757_s5, 128, %s67_s18, [#allocation12]  }
  0x57   :  { %8360 = dma.done.wait [#allocation6], 1536  }
  0x58   :  { %8361 = vsyncadd [#allocation6], 4294965760 }
  0x59   :  { %8362 = dma.done.wait [#allocation9], 98432  }
  0x5a   :  { %8363 = vsyncadd [#allocation9], 4294868864 }
  0x5b   :  { %8364 = dma.done.wait [#allocation12], 256  }
  0x5c   :  { %8365 = vsyncadd [#allocation12], 4294967040  ;;  %s92_s13 = sld [smem:[#allocation0]]   ;;  %s8377_s4 = smov 1024  }
  0x5d   :  { %104 = sst [smem:[#allocation16]] %s8377_s4  ;;  %s8378_s14 = smov 8  }
  0x5e   :  { %106 = sst [smem:[#allocation16 + $0x1]] %s8377_s4  ;;  %s8379_s15 = smov 64  }
  0x5f   :  { %108 = sst [smem:[#allocation16 + $0x2]] %s8378_s14  ;;  %s8380_s16 = smov 128  }
  0x60   :  { %110 = sst [smem:[#allocation16 + $0x3]] %s8379_s15  ;;  %s8381_s17 = smov 2  }
  0x61   :  { %112 = sst [smem:[#allocation16 + $0x4]] %s8380_s16  ;;  %s8382_s18 = smov 4  }
  0x62   :  { %114 = sst [smem:[#allocation16 + $0x5]] %s8381_s17  ;;  %s7281_s20 = sshll.u32 %s92_s13, 26 }
  0x63   :  { %116 = sst [smem:[#allocation16 + $0x6]] %s8371_s12  ;;  %s7282_s5 = sadd.s32 134217728, %s7281_s20 }
  0x64   :  { %118 = sst [smem:[#allocation16 + $0x7]] %s8379_s15  ;;  %s8383_s21 = smov [#allocation2]  }
  0x65   :  { %120 = sst [smem:[#allocation16 + $0x8]] %s8382_s18  ;;  %s100_s22 = sshll.u32 %s8383_s21, 4  ;;  %s101_s22 = int_to_ptr.vmem [resolvable:$true] %s100_s22 }
  0x66   :  { %s8384_s23 = smov [#allocation3]   ;;  %s8385_s24 = smov [#allocation15]  }
  0x67   :  { %122 = dma.general %s8755_s3, 65536, %s101_s22, %s8384_s23, %s8385_s24, [#allocation16], %s7282_s5, 0  }
  0x68   :  { %v147_v1 = vld [vmem:[#allocation8] sm:$0xff]  ;;  %v148_v3 = vld [vmem:[#allocation8 + $0x8] sm:$0xff] }
  0x69   :  { %v151_v2 = vld [vmem:[#allocation8 + $0x20] sm:$0xff]  ;;  %v152_v5 = vld [vmem:[#allocation8 + $0x28] sm:$0xff] }
  0x6a   :  { %v7284_v4 = vcombine.high %v147_v1, %v151_v2  ;;  %v7283_v6 = vcombine.low %v147_v1, %v151_v2  ;;  %v155_v7 = vld [vmem:[#allocation8 + $0x40] sm:$0xff]  ;;  %v7286_v9 = vcombine.high %v148_v3, %v152_v5  ;;  %v7285_v10 = vcombine.low %v148_v3, %v152_v5  ;;  %v156_v12 = vld [vmem:[#allocation8 + $0x48] sm:$0xff] }
  0x6b   :  { %v159_v8 = vld [vmem:[#allocation8 + $0x60] sm:$0xff]  ;;  %v160_v13 = vld [vmem:[#allocation8 + $0x68] sm:$0xff] }
  0x6c   :  { %v7292_v11 = vcombine.high %v155_v7, %v159_v8  ;;  %v163_v14 = vld [vmem:[#allocation8 + $0x80] sm:$0xff]  ;;  %4797 = vmatprep.subr.bf16.mxu0 %v7284_v4  ;;  %v7294_v15 = vcombine.high %v156_v12, %v160_v13  ;;  %v164_v17 = vld [vmem:[#allocation8 + $0x88] sm:$0xff]  ;;  %5043 = vmatprep.subr.bf16.mxu1 %v7286_v9  ;;  %v7291_v19 = vcombine.low %v155_v7, %v159_v8 }
  0x6d   :  { %v167_v16 = vld [vmem:[#allocation8 + $0xa0] sm:$0xff]  ;;  %v168_v18 = vld [vmem:[#allocation8 + $0xa8] sm:$0xff]  ;;  %4798 = vmatpush1.bf16.msra.mxu0 %v7283_v6  ;;  %5044 = vmatpush1.bf16.msra.mxu1 %v7285_v10  ;;  %v7293_v20 = vcombine.low %v156_v12, %v160_v13 }
  0x6e   :  { %4799 = vmatprep.subr.bf16.mxu0 %v7292_v11  ;;  %v7300_v21 = vcombine.high %v163_v14, %v167_v16  ;;  %5045 = vmatprep.subr.bf16.mxu1 %v7294_v15  ;;  %v7302_v22 = vcombine.high %v164_v17, %v168_v18  ;;  %v171_v23 = vld [vmem:[#allocation8 + $0xc0] sm:$0xff]  ;;  %v172_v25 = vld [vmem:[#allocation8 + $0xc8] sm:$0xff]  ;;  %v7299_v27 = vcombine.low %v163_v14, %v167_v16 }
  0x6f   :  { %v175_v24 = vld [vmem:[#allocation8 + $0xe0] sm:$0xff]  ;;  %v176_v26 = vld [vmem:[#allocation8 + $0xe8] sm:$0xff]  ;;  %v7301_v28 = vcombine.low %v164_v17, %v168_v18 }
  0x70   :  { %v7308_v29 = vcombine.high %v171_v23, %v175_v24  ;;  %v7310_v30 = vcombine.high %v172_v25, %v176_v26  ;;  %v179_v31 = vld [vmem:[#allocation8 + $0x100] sm:$0xff]  ;;  %v180_v33 = vld [vmem:[#allocation8 + $0x108] sm:$0xff]  ;;  %v7307_v35 = vcombine.low %v171_v23, %v175_v24  ;;  %v7309_v36 = vcombine.low %v172_v25, %v176_v26 }
  0x71   :  { %4800 = vmatpush1.bf16.msra.mxu0 %v7291_v19  ;;  %5046 = vmatpush1.bf16.msra.mxu1 %v7293_v20  ;;  %v183_v32 = vld [vmem:[#allocation8 + $0x120] sm:$0xff]  ;;  %v184_v34 = vld [vmem:[#allocation8 + $0x128] sm:$0xff] }
  0x72   :  { %4801 = vmatprep.subr.bf16.mxu0 %v7300_v21  ;;  %5047 = vmatprep.subr.bf16.mxu1 %v7302_v22  ;;  %v7316_v37 = vcombine.high %v179_v31, %v183_v32  ;;  %v7318_v38 = vcombine.high %v180_v33, %v184_v34  ;;  %v187_v39 = vld [vmem:[#allocation8 + $0x140] sm:$0xff]  ;;  %v188_v41 = vld [vmem:[#allocation8 + $0x148] sm:$0xff]  ;;  %v7315_v43 = vcombine.low %v179_v31, %v183_v32 }
  0x73   :  { %v191_v40 = vld [vmem:[#allocation8 + $0x160] sm:$0xff]  ;;  %v192_v42 = vld [vmem:[#allocation8 + $0x168] sm:$0xff]  ;;  %v7317_v44 = vcombine.low %v180_v33, %v184_v34 }
  0x74   :  { %v7324_v45 = vcombine.high %v187_v39, %v191_v40  ;;  %v7326_v46 = vcombine.high %v188_v41, %v192_v42  ;;  %v195_v47 = vld [vmem:[#allocation8 + $0x180] sm:$0xff]  ;;  %v196_v49 = vld [vmem:[#allocation8 + $0x188] sm:$0xff]  ;;  %v7323_v51 = vcombine.low %v187_v39, %v191_v40  ;;  %v7325_v52 = vcombine.low %v188_v41, %v192_v42 }
  0x75   :  { %4802 = vmatpush1.bf16.msra.mxu0 %v7299_v27  ;;  %5048 = vmatpush1.bf16.msra.mxu1 %v7301_v28  ;;  %v199_v48 = vld [vmem:[#allocation8 + $0x1a0] sm:$0xff]  ;;  %v200_v50 = vld [vmem:[#allocation8 + $0x1a8] sm:$0xff] }
  0x76   :  { %4803 = vmatprep.subr.bf16.mxu0 %v7308_v29  ;;  %5049 = vmatprep.subr.bf16.mxu1 %v7310_v30  ;;  %v7332_v53 = vcombine.high %v195_v47, %v199_v48  ;;  %v124_v54 = vld [vmem:[#allocation5 + $0x8] sm:$0xff]  ;;  %v7334_v55 = vcombine.high %v196_v49, %v200_v50  ;;  %v203_v56 = vld [vmem:[#allocation8 + $0x1c0] sm:$0xff]  ;;  %v7331_v61 = vcombine.low %v195_v47, %v199_v48 }
  0x77   :  { %v207_v57 = vld [vmem:[#allocation8 + $0x1e0] sm:$0xff]  ;;  %v8498_v58 = vpack.c.bf16 %v124_v54, %v124_v54  ;;  %v204_v59 = vld [vmem:[#allocation8 + $0x1c8] sm:$0xff]  ;;  %v7333_v62 = vcombine.low %v196_v49, %v200_v50 }
  0x78   :  { %v208_v60 = vld [vmem:[#allocation8 + $0x1e8] sm:$0xff]  ;;  %v7340_v63 = vcombine.high %v203_v56, %v207_v57  ;;  %v211_v1 = vld [vmem:[#allocation8 + $0x200] sm:$0xff]  ;;  %v7339_v5 = vcombine.low %v203_v56, %v207_v57 }
  0x79   :  { %4804 = vmatpush1.bf16.msra.mxu0 %v7307_v35  ;;  %5050 = vmatpush1.bf16.msra.mxu1 %v7309_v36  ;;  %v7342_v0 = vcombine.high %v204_v59, %v208_v60  ;;  %v215_v2 = vld [vmem:[#allocation8 + $0x220] sm:$0xff]  ;;  %v212_v3 = vld [vmem:[#allocation8 + $0x208] sm:$0xff]  ;;  %v7341_v6 = vcombine.low %v204_v59, %v208_v60 }
  0x7a   :  { %4805 = vmatprep.subr.bf16.mxu0 %v7316_v37  ;;  %5051 = vmatprep.subr.bf16.mxu1 %v7318_v38  ;;  %v216_v4 = vld [vmem:[#allocation8 + $0x228] sm:$0xff]  ;;  %v7348_v7 = vcombine.high %v211_v1, %v215_v2  ;;  %v219_v9 = vld [vmem:[#allocation8 + $0x240] sm:$0xff]  ;;  %v7347_v13 = vcombine.low %v211_v1, %v215_v2 }
  0x7b   :  { %4829 = vmatprep.mubr.bf16.mxu0 %v8498_v58  ;;  %5075 = vmatprep.mubr.bf16.mxu1 %v8498_v58  ;;  %v7350_v8 = vcombine.high %v212_v3, %v216_v4  ;;  %v223_v10 = vld [vmem:[#allocation8 + $0x260] sm:$0xff]  ;;  %v220_v11 = vld [vmem:[#allocation8 + $0x248] sm:$0xff]  ;;  %v7349_v14 = vcombine.low %v212_v3, %v216_v4 }
  0x7c   :  { %v224_v12 = vld [vmem:[#allocation8 + $0x268] sm:$0xff]  ;;  %v7356_v15 = vcombine.high %v219_v9, %v223_v10  ;;  %v227_v17 = vld [vmem:[#allocation8 + $0x280] sm:$0xff]  ;;  %v7355_v21 = vcombine.low %v219_v9, %v223_v10 }
  0x7d   :  { %4806 = vmatpush1.bf16.msra.mxu0 %v7315_v43  ;;  %5052 = vmatpush1.bf16.msra.mxu1 %v7317_v44  ;;  %v7358_v16 = vcombine.high %v220_v11, %v224_v12  ;;  %v231_v18 = vld [vmem:[#allocation8 + $0x2a0] sm:$0xff]  ;;  %v228_v19 = vld [vmem:[#allocation8 + $0x288] sm:$0xff]  ;;  %v7357_v22 = vcombine.low %v220_v11, %v224_v12 }
  0x7e   :  { %4807 = vmatprep.subr.bf16.mxu0 %v7324_v45  ;;  %5053 = vmatprep.subr.bf16.mxu1 %v7326_v46  ;;  %v232_v20 = vld [vmem:[#allocation8 + $0x2a8] sm:$0xff]  ;;  %v7364_v23 = vcombine.high %v227_v17, %v231_v18  ;;  %v235_v25 = vld [vmem:[#allocation8 + $0x2c0] sm:$0xff]  ;;  %v7363_v29 = vcombine.low %v227_v17, %v231_v18 }
  0x7f   :  { %v7366_v24 = vcombine.high %v228_v19, %v232_v20  ;;  %v239_v26 = vld [vmem:[#allocation8 + $0x2e0] sm:$0xff]  ;;  %v236_v27 = vld [vmem:[#allocation8 + $0x2c8] sm:$0xff]  ;;  %v7365_v30 = vcombine.low %v228_v19, %v232_v20 }
  0x80   :  { %v240_v28 = vld [vmem:[#allocation8 + $0x2e8] sm:$0xff]  ;;  %v7372_v31 = vcombine.high %v235_v25, %v239_v26  ;;  %v243_v33 = vld [vmem:[#allocation8 + $0x300] sm:$0xff]  ;;  %v7371_v37 = vcombine.low %v235_v25, %v239_v26 }
  0x81   :  { %4808 = vmatpush1.bf16.msra.mxu0 %v7323_v51  ;;  %5054 = vmatpush1.bf16.msra.mxu1 %v7325_v52  ;;  %v7374_v32 = vcombine.high %v236_v27, %v240_v28  ;;  %v247_v34 = vld [vmem:[#allocation8 + $0x320] sm:$0xff]  ;;  %v244_v35 = vld [vmem:[#allocation8 + $0x308] sm:$0xff]  ;;  %v7373_v38 = vcombine.low %v236_v27, %v240_v28 }
  0x82   :  { %4809 = vmatprep.subr.bf16.mxu0 %v7332_v53  ;;  %5055 = vmatprep.subr.bf16.mxu1 %v7334_v55  ;;  %v248_v36 = vld [vmem:[#allocation8 + $0x328] sm:$0xff]  ;;  %v7380_v39 = vcombine.high %v243_v33, %v247_v34  ;;  %v251_v41 = vld [vmem:[#allocation8 + $0x340] sm:$0xff]  ;;  %v7379_v45 = vcombine.low %v243_v33, %v247_v34 }
  0x83   :  { %v7382_v40 = vcombine.high %v244_v35, %v248_v36  ;;  %v255_v42 = vld [vmem:[#allocation8 + $0x360] sm:$0xff]  ;;  %v252_v43 = vld [vmem:[#allocation8 + $0x348] sm:$0xff]  ;;  %v7381_v46 = vcombine.low %v244_v35, %v248_v36 }
  0x84   :  { %v256_v44 = vld [vmem:[#allocation8 + $0x368] sm:$0xff]  ;;  %v7388_v47 = vcombine.high %v251_v41, %v255_v42  ;;  %v259_v49 = vld [vmem:[#allocation8 + $0x380] sm:$0xff]  ;;  %v7387_v53 = vcombine.low %v251_v41, %v255_v42 }
  0x85   :  { %4810 = vmatpush1.bf16.msra.mxu0 %v7331_v61  ;;  %5056 = vmatpush1.bf16.msra.mxu1 %v7333_v62  ;;  %v7390_v48 = vcombine.high %v252_v43, %v256_v44  ;;  %v263_v50 = vld [vmem:[#allocation8 + $0x3a0] sm:$0xff]  ;;  %v260_v51 = vld [vmem:[#allocation8 + $0x388] sm:$0xff]  ;;  %v7389_v54 = vcombine.low %v252_v43, %v256_v44 }
  0x86   :  { %4811 = vmatprep.subr.bf16.mxu0 %v7340_v63  ;;  %5057 = vmatprep.subr.bf16.mxu1 %v7342_v0  ;;  %v264_v52 = vld [vmem:[#allocation8 + $0x3a8] sm:$0xff]  ;;  %v7396_v55 = vcombine.high %v259_v49, %v263_v50  ;;  %v267_v57 = vld [vmem:[#allocation8 + $0x3c0] sm:$0xff]  ;;  %v7395_v62 = vcombine.low %v259_v49, %v263_v50 }
  0x87   :  { %v7398_v56 = vcombine.high %v260_v51, %v264_v52  ;;  %v271_v59 = vld [vmem:[#allocation8 + $0x3e0] sm:$0xff]  ;;  %v268_v60 = vld [vmem:[#allocation8 + $0x3c8] sm:$0xff]  ;;  %v7397_v63 = vcombine.low %v260_v51, %v264_v52 }
  0x88   :  { %v272_v61 = vld [vmem:[#allocation8 + $0x3e8] sm:$0xff]  ;;  %v7404_v0 = vcombine.high %v267_v57, %v271_v59  ;;  %v275_v2 = vld [vmem:[#allocation8 + $0x400] sm:$0xff] }
  0x89   :  { %4812 = vmatpush1.bf16.msra.mxu0 %v7339_v5  ;;  %5058 = vmatpush1.bf16.msra.mxu1 %v7341_v6  ;;  %v7406_v1 = vcombine.high %v268_v60, %v272_v61  ;;  %v279_v3 = vld [vmem:[#allocation8 + $0x420] sm:$0xff]  ;;  %v276_v4 = vld [vmem:[#allocation8 + $0x408] sm:$0xff]  ;;  %v7403_v6 = vcombine.low %v267_v57, %v271_v59 }
  0x8a   :  { %4813 = vmatprep.subr.bf16.mxu0 %v7348_v7  ;;  %5059 = vmatprep.subr.bf16.mxu1 %v7350_v8  ;;  %v280_v5 = vld [vmem:[#allocation8 + $0x428] sm:$0xff]  ;;  %v123_v7 = vld [vmem:[#allocation5] sm:$0xff]  ;;  %v7405_v8 = vcombine.low %v268_v60, %v272_v61  ;;  %v7412_v9 = vcombine.high %v275_v2, %v279_v3  ;;  %v7411_v17 = vcombine.low %v275_v2, %v279_v3 }
  0x8b   :  { %v7414_v10 = vcombine.high %v276_v4, %v280_v5  ;;  %v283_v11 = vld [vmem:[#allocation8 + $0x440] sm:$0xff]  ;;  %v7413_v18 = vcombine.low %v276_v4, %v280_v5  ;;  %v296_v25 = vld [vmem:[#allocation8 + $0x4a8] sm:$0xff] }
  0x8c   :  { %v287_v12 = vld [vmem:[#allocation8 + $0x460] sm:$0xff]  ;;  %v304_v33 = vld [vmem:[#allocation8 + $0x4e8] sm:$0xff] }
  0x8d   :  { %4814 = vmatpush1.bf16.msra.mxu0 %v7347_v13  ;;  %5060 = vmatpush1.bf16.msra.mxu1 %v7349_v14  ;;  %v8502_v13 = vpack.c.bf16 %v123_v7, %v123_v7  ;;  %v284_v14 = vld [vmem:[#allocation8 + $0x448] sm:$0xff]  ;;  %v7420_v19 = vcombine.high %v283_v11, %v287_v12  ;;  %v7419_v26 = vcombine.low %v283_v11, %v287_v12  ;;  %v339_v7 = vld [vmem:[#allocation8 + $0x600] sm:$0xff] }
  0x8e   :  { %4815 = vmatprep.subr.bf16.mxu0 %v7356_v15  ;;  %5061 = vmatprep.subr.bf16.mxu1 %v7358_v16  ;;  %v288_v15 = vld [vmem:[#allocation8 + $0x468] sm:$0xff]  ;;  %v126_v16 = vld [vmem:[#allocation5 + $0x18] sm:$0xff] }
  0x8f   :  { %v7422_v20 = vcombine.high %v284_v14, %v288_v15  ;;  %v7421_v27 = vcombine.low %v284_v14, %v288_v15  ;;  %v312_v41 = vld [vmem:[#allocation8 + $0x528] sm:$0xff] }
  0x90   :  { %v320_v49 = vld [vmem:[#allocation8 + $0x568] sm:$0xff] }
  0x91   :  { %4816 = vmatpush1.bf16.msra.mxu0 %v7355_v21  ;;  %5062 = vmatpush1.bf16.msra.mxu1 %v7357_v22  ;;  %v291_v21 = vld [vmem:[#allocation8 + $0x480] sm:$0xff]  ;;  %v328_v57 = vld [vmem:[#allocation8 + $0x5a8] sm:$0xff] }
  0x92   :  { %4817 = vmatprep.subr.bf16.mxu0 %v7364_v23  ;;  %5063 = vmatprep.subr.bf16.mxu1 %v7366_v24  ;;  %v295_v22 = vld [vmem:[#allocation8 + $0x4a0] sm:$0xff]  ;;  %v8504_v23 = vpack.c.bf16 %v126_v16, %v126_v16  ;;  %v292_v24 = vld [vmem:[#allocation8 + $0x488] sm:$0xff] }
  0x93   :  { %v7428_v28 = vcombine.high %v291_v21, %v295_v22  ;;  %v7427_v34 = vcombine.low %v291_v21, %v295_v22  ;;  %v7429_v35 = vcombine.low %v292_v24, %v296_v25  ;;  %v336_v2 = vld [vmem:[#allocation8 + $0x5e8] sm:$0xff]  ;;  %v347_v16 = vld [vmem:[#allocation8 + $0x640] sm:$0xff] }
  0x95   :  { %4818 = vmatpush1.bf16.msra.mxu0 %v7363_v29  ;;  %5064 = vmatpush1.bf16.msra.mxu1 %v7365_v30  ;;  %v7430_v29 = vcombine.high %v292_v24, %v296_v25  ;;  %v299_v30 = vld [vmem:[#allocation8 + $0x4c0] sm:$0xff] }
  0x96   :  { %4819 = vmatprep.subr.bf16.mxu0 %v7372_v31  ;;  %5065 = vmatprep.subr.bf16.mxu1 %v7374_v32  ;;  %v303_v31 = vld [vmem:[#allocation8 + $0x4e0] sm:$0xff]  ;;  %v300_v32 = vld [vmem:[#allocation8 + $0x4c8] sm:$0xff] }
  0x97   :  { %v7436_v36 = vcombine.high %v299_v30, %v303_v31  ;;  %v7435_v42 = vcombine.low %v299_v30, %v303_v31  ;;  %v7437_v43 = vcombine.low %v300_v32, %v304_v33  ;;  %v355_v25 = vld [vmem:[#allocation8 + $0x680] sm:$0xff] }
  0x99   :  { %4820 = vmatpush1.bf16.msra.mxu0 %v7371_v37  ;;  %5066 = vmatpush1.bf16.msra.mxu1 %v7373_v38  ;;  %v7438_v37 = vcombine.high %v300_v32, %v304_v33  ;;  %v307_v38 = vld [vmem:[#allocation8 + $0x500] sm:$0xff] }
  0x9a   :  { %4821 = vmatprep.subr.bf16.mxu0 %v7380_v39  ;;  %5067 = vmatprep.subr.bf16.mxu1 %v7382_v40  ;;  %v311_v39 = vld [vmem:[#allocation8 + $0x520] sm:$0xff]  ;;  %v308_v40 = vld [vmem:[#allocation8 + $0x508] sm:$0xff] }
  0x9b   :  { %v7444_v44 = vcombine.high %v307_v38, %v311_v39  ;;  %v7443_v50 = vcombine.low %v307_v38, %v311_v39  ;;  %v7445_v51 = vcombine.low %v308_v40, %v312_v41  ;;  %v363_v33 = vld [vmem:[#allocation8 + $0x6c0] sm:$0xff] }
  0x9d   :  { %4822 = vmatpush1.bf16.msra.mxu0 %v7379_v45  ;;  %5068 = vmatpush1.bf16.msra.mxu1 %v7381_v46  ;;  %v7446_v45 = vcombine.high %v308_v40, %v312_v41  ;;  %v315_v46 = vld [vmem:[#allocation8 + $0x540] sm:$0xff] }
  0x9e   :  { %4823 = vmatprep.subr.bf16.mxu0 %v7388_v47  ;;  %5069 = vmatprep.subr.bf16.mxu1 %v7390_v48  ;;  %v319_v47 = vld [vmem:[#allocation8 + $0x560] sm:$0xff]  ;;  %v316_v48 = vld [vmem:[#allocation8 + $0x548] sm:$0xff] }
  0x9f   :  { %v7452_v52 = vcombine.high %v315_v46, %v319_v47  ;;  %v7451_v59 = vcombine.low %v315_v46, %v319_v47  ;;  %v7453_v60 = vcombine.low %v316_v48, %v320_v49  ;;  %v371_v41 = vld [vmem:[#allocation8 + $0x700] sm:$0xff] }
  0xa1   :  { %4824 = vmatpush1.bf16.msra.mxu0 %v7387_v53  ;;  %5070 = vmatpush1.bf16.msra.mxu1 %v7389_v54  ;;  %v7454_v53 = vcombine.high %v316_v48, %v320_v49  ;;  %v323_v54 = vld [vmem:[#allocation8 + $0x580] sm:$0xff] }
  0xa2   :  { %4825 = vmatprep.subr.bf16.mxu0 %v7396_v55  ;;  %5071 = vmatprep.subr.bf16.mxu1 %v7398_v56  ;;  %v327_v55 = vld [vmem:[#allocation8 + $0x5a0] sm:$0xff]  ;;  %v324_v56 = vld [vmem:[#allocation8 + $0x588] sm:$0xff] }
  0xa3   :  { %v7460_v61 = vcombine.high %v323_v54, %v327_v55  ;;  %v7459_v3 = vcombine.low %v323_v54, %v327_v55  ;;  %v7461_v4 = vcombine.low %v324_v56, %v328_v57  ;;  %v379_v49 = vld [vmem:[#allocation8 + $0x740] sm:$0xff] }
  0xa5   :  { %4826 = vmatpush1.bf16.msra.mxu0 %v7395_v62  ;;  %5072 = vmatpush1.bf16.msra.mxu1 %v7397_v63  ;;  %v7462_v62 = vcombine.high %v324_v56, %v328_v57  ;;  %v331_v63 = vld [vmem:[#allocation8 + $0x5c0] sm:$0xff] }
  0xa6   :  { %4827 = vmatprep.subr.bf16.mxu0 %v7404_v0  ;;  %5073 = vmatprep.subr.bf16.mxu1 %v7406_v1  ;;  %v335_v0 = vld [vmem:[#allocation8 + $0x5e0] sm:$0xff]  ;;  %v332_v1 = vld [vmem:[#allocation8 + $0x5c8] sm:$0xff] }
  0xa7   :  { %v7468_v5 = vcombine.high %v331_v63, %v335_v0  ;;  %v7467_v11 = vcombine.low %v331_v63, %v335_v0  ;;  %v7469_v12 = vcombine.low %v332_v1, %v336_v2  ;;  %v387_v57 = vld [vmem:[#allocation8 + $0x780] sm:$0xff] }
  0xa9   :  { %4828 = vmatpush1.bf16.msra.mxu0 %v7403_v6  ;;  %5074 = vmatpush1.bf16.msra.mxu1 %v7405_v8  ;;  %v7470_v6 = vcombine.high %v332_v1, %v336_v2  ;;  %v343_v8 = vld [vmem:[#allocation8 + $0x620] sm:$0xff] }
  0xaa   :  { %4838 = vmatprep.subr.bf16.mxu0 %v7412_v9  ;;  %5084 = vmatprep.subr.bf16.mxu1 %v7414_v10  ;;  %v340_v9 = vld [vmem:[#allocation8 + $0x608] sm:$0xff]  ;;  %v7476_v14 = vcombine.high %v339_v7, %v343_v8  ;;  %v395_v2 = vld [vmem:[#allocation8 + $0x7c0] sm:$0xff] }
  0xab   :  { %v344_v10 = vld [vmem:[#allocation8 + $0x628] sm:$0xff] }
  0xac   :  { %4830 = vmatmul.mubr.bf16.vlgmr.msra.gmra.mrb[0].mxu0 %v8502_v13  ;;  %5076 = vmatmul.mubr.bf16.vlgmr.msra.gmra.mrb[0].mxu1 %v8502_v13  ;;  %v7478_v15 = vcombine.high %v340_v9, %v344_v10  ;;  %v7477_v21 = vcombine.low %v340_v9, %v344_v10  ;;  %v403_v10 = vld [vmem:[#allocation8 + $0x800] sm:$0xff] }
  0xad   :  { %4839 = vmatpush1.bf16.msra.mxu0 %v7411_v17  ;;  %5085 = vmatpush1.bf16.msra.mxu1 %v7413_v18  ;;  %v351_v17 = vld [vmem:[#allocation8 + $0x660] sm:$0xff]  ;;  %v348_v18 = vld [vmem:[#allocation8 + $0x648] sm:$0xff] }
  0xae   :  { %4840 = vmatprep.subr.bf16.mxu0 %v7420_v19  ;;  %5086 = vmatprep.subr.bf16.mxu1 %v7422_v20  ;;  %v352_v19 = vld [vmem:[#allocation8 + $0x668] sm:$0xff]  ;;  %v7475_v20 = vcombine.low %v339_v7, %v343_v8  ;;  %v7484_v22 = vcombine.high %v347_v16, %v351_v17 }
  0xaf   :  { %4870 = vmatprep.mubr.bf16.mxu0 %v8504_v23  ;;  %5116 = vmatprep.mubr.bf16.mxu1 %v8504_v23  ;;  %v7486_v24 = vcombine.high %v348_v18, %v352_v19  ;;  %v7485_v30 = vcombine.low %v348_v18, %v352_v19 }
  0xb1   :  { %4841 = vmatpush1.bf16.msra.mxu0 %v7419_v26  ;;  %5087 = vmatpush1.bf16.msra.mxu1 %v7421_v27  ;;  %v359_v26 = vld [vmem:[#allocation8 + $0x6a0] sm:$0xff]  ;;  %v356_v27 = vld [vmem:[#allocation8 + $0x688] sm:$0xff] }
  0xb2   :  { %4842 = vmatprep.subr.bf16.mxu0 %v7428_v28  ;;  %5088 = vmatprep.subr.bf16.mxu1 %v7430_v29  ;;  %v360_v28 = vld [vmem:[#allocation8 + $0x6a8] sm:$0xff]  ;;  %v7483_v29 = vcombine.low %v347_v16, %v351_v17  ;;  %v7492_v31 = vcombine.high %v355_v25, %v359_v26  ;;  %v125_v16 = vld [vmem:[#allocation5 + $0x10] sm:$0xff] }
  0xb3   :  { %v7494_v32 = vcombine.high %v356_v27, %v360_v28  ;;  %v7493_v38 = vcombine.low %v356_v27, %v360_v28 }
  0xb5   :  { %4843 = vmatpush1.bf16.msra.mxu0 %v7427_v34  ;;  %5089 = vmatpush1.bf16.msra.mxu1 %v7429_v35  ;;  %v367_v34 = vld [vmem:[#allocation8 + $0x6e0] sm:$0xff]  ;;  %v364_v35 = vld [vmem:[#allocation8 + $0x6c8] sm:$0xff] }
  0xb6   :  { %4844 = vmatprep.subr.bf16.mxu0 %v7436_v36  ;;  %5090 = vmatprep.subr.bf16.mxu1 %v7438_v37  ;;  %v368_v36 = vld [vmem:[#allocation8 + $0x6e8] sm:$0xff]  ;;  %v7491_v37 = vcombine.low %v355_v25, %v359_v26  ;;  %v7500_v39 = vcombine.high %v363_v33, %v367_v34 }
  0xb7   :  { %v7502_v40 = vcombine.high %v364_v35, %v368_v36  ;;  %v7501_v46 = vcombine.low %v364_v35, %v368_v36  ;;  %v416_v25 = vld [vmem:[#allocation8 + $0x868] sm:$0xff] }
  0xb8   :  { %v128_v26 = vld [vmem:[#allocation5 + $0x28] sm:$0xff] }
  0xb9   :  { %4845 = vmatpush1.bf16.msra.mxu0 %v7435_v42  ;;  %5091 = vmatpush1.bf16.msra.mxu1 %v7437_v43  ;;  %v375_v42 = vld [vmem:[#allocation8 + $0x720] sm:$0xff]  ;;  %v372_v43 = vld [vmem:[#allocation8 + $0x708] sm:$0xff] }
  0xba   :  { %4846 = vmatprep.subr.bf16.mxu0 %v7444_v44  ;;  %5092 = vmatprep.subr.bf16.mxu1 %v7446_v45  ;;  %v376_v44 = vld [vmem:[#allocation8 + $0x728] sm:$0xff]  ;;  %v7499_v45 = vcombine.low %v363_v33, %v367_v34  ;;  %v7508_v47 = vcombine.high %v371_v41, %v375_v42  ;;  %v8512_v33 = vpack.c.bf16 %v128_v26, %v128_v26 }
  0xbb   :  { %v7510_v48 = vcombine.high %v372_v43, %v376_v44  ;;  %v7509_v54 = vcombine.low %v372_v43, %v376_v44  ;;  %v420_v34 = vld [vmem:[#allocation8 + $0x888] sm:$0xff] }
  0xbc   :  { %v424_v35 = vld [vmem:[#allocation8 + $0x8a8] sm:$0xff] }
  0xbd   :  { %4847 = vmatpush1.bf16.msra.mxu0 %v7443_v50  ;;  %5093 = vmatpush1.bf16.msra.mxu1 %v7445_v51  ;;  %v383_v50 = vld [vmem:[#allocation8 + $0x760] sm:$0xff]  ;;  %v380_v51 = vld [vmem:[#allocation8 + $0x748] sm:$0xff] }
  0xbe   :  { %4848 = vmatprep.subr.bf16.mxu0 %v7452_v52  ;;  %5094 = vmatprep.subr.bf16.mxu1 %v7454_v53  ;;  %v384_v52 = vld [vmem:[#allocation8 + $0x768] sm:$0xff]  ;;  %v7507_v53 = vcombine.low %v371_v41, %v375_v42  ;;  %v7516_v55 = vcombine.high %v379_v49, %v383_v50  ;;  %v431_v41 = vld [vmem:[#allocation8 + $0x8e0] sm:$0xff] }
  0xbf   :  { %v7518_v56 = vcombine.high %v380_v51, %v384_v52  ;;  %v7517_v63 = vcombine.low %v380_v51, %v384_v52  ;;  %v428_v42 = vld [vmem:[#allocation8 + $0x8c8] sm:$0xff] }
  0xc0   :  { %v432_v43 = vld [vmem:[#allocation8 + $0x8e8] sm:$0xff] }
  0xc1   :  { %4849 = vmatpush1.bf16.msra.mxu0 %v7451_v59  ;;  %5095 = vmatpush1.bf16.msra.mxu1 %v7453_v60  ;;  %v391_v59 = vld [vmem:[#allocation8 + $0x7a0] sm:$0xff]  ;;  %v388_v60 = vld [vmem:[#allocation8 + $0x788] sm:$0xff] }
  0xc2   :  { %4850 = vmatprep.subr.bf16.mxu0 %v7460_v61  ;;  %5096 = vmatprep.subr.bf16.mxu1 %v7462_v62  ;;  %v392_v61 = vld [vmem:[#allocation8 + $0x7a8] sm:$0xff]  ;;  %v7515_v62 = vcombine.low %v379_v49, %v383_v50  ;;  %v7524_v0 = vcombine.high %v387_v57, %v391_v59  ;;  %v439_v49 = vld [vmem:[#allocation8 + $0x920] sm:$0xff] }
  0xc3   :  { %v7526_v1 = vcombine.high %v388_v60, %v392_v61  ;;  %v7525_v7 = vcombine.low %v388_v60, %v392_v61  ;;  %v436_v50 = vld [vmem:[#allocation8 + $0x908] sm:$0xff] }
  0xc4   :  { %v440_v51 = vld [vmem:[#allocation8 + $0x928] sm:$0xff] }
  0xc5   :  { %4851 = vmatpush1.bf16.msra.mxu0 %v7459_v3  ;;  %5097 = vmatpush1.bf16.msra.mxu1 %v7461_v4  ;;  %v399_v3 = vld [vmem:[#allocation8 + $0x7e0] sm:$0xff]  ;;  %v396_v4 = vld [vmem:[#allocation8 + $0x7c8] sm:$0xff] }
  0xc6   :  { %4852 = vmatprep.subr.bf16.mxu0 %v7468_v5  ;;  %5098 = vmatprep.subr.bf16.mxu1 %v7470_v6  ;;  %v400_v5 = vld [vmem:[#allocation8 + $0x7e8] sm:$0xff]  ;;  %v7523_v6 = vcombine.low %v387_v57, %v391_v59  ;;  %v7532_v8 = vcombine.high %v395_v2, %v399_v3  ;;  %v447_v57 = vld [vmem:[#allocation8 + $0x960] sm:$0xff] }
  0xc7   :  { %v7534_v9 = vcombine.high %v396_v4, %v400_v5  ;;  %v7533_v17 = vcombine.low %v396_v4, %v400_v5  ;;  %v444_v59 = vld [vmem:[#allocation8 + $0x948] sm:$0xff] }
  0xc8   :  { %v448_v60 = vld [vmem:[#allocation8 + $0x968] sm:$0xff] }
  0xc9   :  { %4853 = vmatpush1.bf16.msra.mxu0 %v7467_v11  ;;  %5099 = vmatpush1.bf16.msra.mxu1 %v7469_v12  ;;  %v407_v11 = vld [vmem:[#allocation8 + $0x820] sm:$0xff]  ;;  %v404_v12 = vld [vmem:[#allocation8 + $0x808] sm:$0xff] }
  0xca   :  { %4854 = vmatprep.subr.bf16.mxu0 %v7476_v14  ;;  %5100 = vmatprep.subr.bf16.mxu1 %v7478_v15  ;;  %v408_v14 = vld [vmem:[#allocation8 + $0x828] sm:$0xff]  ;;  %v7531_v15 = vcombine.low %v395_v2, %v399_v3  ;;  %v7540_v18 = vcombine.high %v403_v10, %v407_v11  ;;  %v7539_v27 = vcombine.low %v403_v10, %v407_v11  ;;  %v455_v2 = vld [vmem:[#allocation8 + $0x9a0] sm:$0xff] }
  0xcb   :  { %v7542_v19 = vcombine.high %v404_v12, %v408_v14  ;;  %v7541_v28 = vcombine.low %v404_v12, %v408_v14  ;;  %v452_v3 = vld [vmem:[#allocation8 + $0x988] sm:$0xff]  ;;  %v463_v10 = vld [vmem:[#allocation8 + $0x9e0] sm:$0xff] }
  0xcc   :  { %v456_v4 = vld [vmem:[#allocation8 + $0x9a8] sm:$0xff] }
  0xcd   :  { %4855 = vmatpush1.bf16.msra.mxu0 %v7475_v20  ;;  %5101 = vmatpush1.bf16.msra.mxu1 %v7477_v21  ;;  %v411_v20 = vld [vmem:[#allocation8 + $0x840] sm:$0xff]  ;;  %v460_v11 = vld [vmem:[#allocation8 + $0x9c8] sm:$0xff] }
  0xce   :  { %4856 = vmatprep.subr.bf16.mxu0 %v7484_v22  ;;  %5102 = vmatprep.subr.bf16.mxu1 %v7486_v24  ;;  %v415_v21 = vld [vmem:[#allocation8 + $0x860] sm:$0xff]  ;;  %v8510_v22 = vpack.c.bf16 %v125_v16, %v125_v16  ;;  %v412_v24 = vld [vmem:[#allocation8 + $0x848] sm:$0xff] }
  0xcf   :  { %v7547_v36 = vcombine.low %v411_v20, %v415_v21  ;;  %v464_v12 = vld [vmem:[#allocation8 + $0x9e8] sm:$0xff] }
  0xd1   :  { %4857 = vmatpush1.bf16.msra.mxu0 %v7483_v29  ;;  %5103 = vmatpush1.bf16.msra.mxu1 %v7485_v30  ;;  %v7548_v29 = vcombine.high %v411_v20, %v415_v21  ;;  %v7550_v30 = vcombine.high %v412_v24, %v416_v25  ;;  %v468_v20 = vld [vmem:[#allocation8 + $0xa08] sm:$0xff] }
  0xd2   :  { %4858 = vmatprep.subr.bf16.mxu0 %v7492_v31  ;;  %5104 = vmatprep.subr.bf16.mxu1 %v7494_v32  ;;  %v419_v31 = vld [vmem:[#allocation8 + $0x880] sm:$0xff]  ;;  %v472_v21 = vld [vmem:[#allocation8 + $0xa28] sm:$0xff] }
  0xd3   :  { %v423_v32 = vld [vmem:[#allocation8 + $0x8a0] sm:$0xff] }
  0xd4   :  { %v7555_v44 = vcombine.low %v419_v31, %v423_v32 }
  0xd5   :  { %4859 = vmatpush1.bf16.msra.mxu0 %v7491_v37  ;;  %5105 = vmatpush1.bf16.msra.mxu1 %v7493_v38  ;;  %v7549_v37 = vcombine.low %v412_v24, %v416_v25  ;;  %v7556_v38 = vcombine.high %v419_v31, %v423_v32  ;;  %v7597_v25 = vcombine.low %v460_v11, %v464_v12  ;;  %v480_v31 = vld [vmem:[#allocation8 + $0xa68] sm:$0xff] }
  0xd6   :  { %4860 = vmatprep.subr.bf16.mxu0 %v7500_v39  ;;  %5106 = vmatprep.subr.bf16.mxu1 %v7502_v40  ;;  %v7558_v39 = vcombine.high %v420_v34, %v424_v35  ;;  %v427_v40 = vld [vmem:[#allocation8 + $0x8c0] sm:$0xff] }
  0xd7   :  { %v7563_v52 = vcombine.low %v427_v40, %v431_v41 }
  0xd9   :  { %4861 = vmatpush1.bf16.msra.mxu0 %v7499_v45  ;;  %5107 = vmatpush1.bf16.msra.mxu1 %v7501_v46  ;;  %v7557_v45 = vcombine.low %v420_v34, %v424_v35  ;;  %v7564_v46 = vcombine.high %v427_v40, %v431_v41  ;;  %v7605_v34 = vcombine.low %v468_v20, %v472_v21  ;;  %v488_v40 = vld [vmem:[#allocation8 + $0xaa8] sm:$0xff] }
  0xda   :  { %4862 = vmatprep.subr.bf16.mxu0 %v7508_v47  ;;  %5108 = vmatprep.subr.bf16.mxu1 %v7510_v48  ;;  %v7566_v47 = vcombine.high %v428_v42, %v432_v43  ;;  %v435_v48 = vld [vmem:[#allocation8 + $0x900] sm:$0xff] }
  0xdb   :  { %v7571_v61 = vcombine.low %v435_v48, %v439_v49 }
  0xdd   :  { %4863 = vmatpush1.bf16.msra.mxu0 %v7507_v53  ;;  %5109 = vmatpush1.bf16.msra.mxu1 %v7509_v54  ;;  %v7565_v53 = vcombine.low %v428_v42, %v432_v43  ;;  %v7572_v54 = vcombine.high %v435_v48, %v439_v49  ;;  %v496_v48 = vld [vmem:[#allocation8 + $0xae8] sm:$0xff] }
  0xde   :  { %4864 = vmatprep.subr.bf16.mxu0 %v7516_v55  ;;  %5110 = vmatprep.subr.bf16.mxu1 %v7518_v56  ;;  %v7574_v55 = vcombine.high %v436_v50, %v440_v51  ;;  %v443_v56 = vld [vmem:[#allocation8 + $0x940] sm:$0xff] }
  0xdf   :  { %v7579_v5 = vcombine.low %v443_v56, %v447_v57 }
  0xe1   :  { %4865 = vmatpush1.bf16.msra.mxu0 %v7515_v62  ;;  %5111 = vmatpush1.bf16.msra.mxu1 %v7517_v63  ;;  %v7573_v62 = vcombine.low %v436_v50, %v440_v51  ;;  %v7580_v63 = vcombine.high %v443_v56, %v447_v57  ;;  %v504_v56 = vld [vmem:[#allocation8 + $0xb28] sm:$0xff] }
  0xe2   :  { %4866 = vmatprep.subr.bf16.mxu0 %v7524_v0  ;;  %5112 = vmatprep.subr.bf16.mxu1 %v7526_v1  ;;  %v7582_v0 = vcombine.high %v444_v59, %v448_v60  ;;  %v451_v1 = vld [vmem:[#allocation8 + $0x980] sm:$0xff] }
  0xe3   :  { %v7587_v14 = vcombine.low %v451_v1, %v455_v2 }
  0xe5   :  { %4867 = vmatpush1.bf16.msra.mxu0 %v7523_v6  ;;  %5113 = vmatpush1.bf16.msra.mxu1 %v7525_v7  ;;  %v7581_v6 = vcombine.low %v444_v59, %v448_v60  ;;  %v7588_v7 = vcombine.high %v451_v1, %v455_v2  ;;  %v512_v1 = vld [vmem:[#allocation8 + $0xb68] sm:$0xff] }
  0xe6   :  { %4868 = vmatprep.subr.bf16.mxu0 %v7532_v8  ;;  %5114 = vmatprep.subr.bf16.mxu1 %v7534_v9  ;;  %v7590_v8 = vcombine.high %v452_v3, %v456_v4  ;;  %v459_v9 = vld [vmem:[#allocation8 + $0x9c0] sm:$0xff] }
  0xe7   :  { %v7596_v16 = vcombine.high %v459_v9, %v463_v10  ;;  %v7595_v24 = vcombine.low %v459_v9, %v463_v10  ;;  %v520_v9 = vld [vmem:[#allocation8 + $0xba8] sm:$0xff] }
  0xe9   :  { %4869 = vmatpush1.bf16.msra.mxu0 %v7531_v15  ;;  %5115 = vmatpush1.bf16.msra.mxu1 %v7533_v17  ;;  %v7589_v15 = vcombine.low %v452_v3, %v456_v4  ;;  %v7598_v17 = vcombine.high %v460_v11, %v464_v12 }
  0xea   :  { %4879 = vmatprep.subr.bf16.mxu0 %v7540_v18  ;;  %5125 = vmatprep.subr.bf16.mxu1 %v7542_v19  ;;  %v467_v18 = vld [vmem:[#allocation8 + $0xa00] sm:$0xff] }
  0xeb   :  { %v471_v19 = vld [vmem:[#allocation8 + $0xa20] sm:$0xff] }
  0xec   :  { %4871 = vmatmul.mubr.bf16.vlgmr.msra.gmra.mrb[0].mxu0 %v8510_v22  ;;  %5117 = vmatmul.mubr.bf16.vlgmr.msra.gmra.mrb[0].mxu1 %v8510_v22  ;;  %v7604_v26 = vcombine.high %v467_v18, %v471_v19  ;;  %v7603_v32 = vcombine.low %v467_v18, %v471_v19  ;;  %v528_v18 = vld [vmem:[#allocation8 + $0xbe8] sm:$0xff] }
  0xed   :  { %4880 = vmatpush1.bf16.msra.mxu0 %v7539_v27  ;;  %5126 = vmatpush1.bf16.msra.mxu1 %v7541_v28  ;;  %v7606_v27 = vcombine.high %v468_v20, %v472_v21  ;;  %v475_v28 = vld [vmem:[#allocation8 + $0xa40] sm:$0xff] }
  0xee   :  { %4881 = vmatprep.subr.bf16.mxu0 %v7548_v29  ;;  %5127 = vmatprep.subr.bf16.mxu1 %v7550_v30  ;;  %v479_v29 = vld [vmem:[#allocation8 + $0xa60] sm:$0xff]  ;;  %v476_v30 = vld [vmem:[#allocation8 + $0xa48] sm:$0xff] }
  0xef   :  { %4911 = vmatprep.mubr.bf16.mxu0 %v8512_v33  ;;  %5157 = vmatprep.mubr.bf16.mxu1 %v8512_v33  ;;  %v7612_v35 = vcombine.high %v475_v28, %v479_v29  ;;  %v7611_v41 = vcombine.low %v475_v28, %v479_v29  ;;  %v7613_v42 = vcombine.low %v476_v30, %v480_v31  ;;  %v536_v28 = vld [vmem:[#allocation8 + $0xc28] sm:$0xff] }
  0xf1   :  { %4882 = vmatpush1.bf16.msra.mxu0 %v7547_v36  ;;  %5128 = vmatpush1.bf16.msra.mxu1 %v7549_v37  ;;  %v7614_v36 = vcombine.high %v476_v30, %v480_v31  ;;  %v483_v37 = vld [vmem:[#allocation8 + $0xa80] sm:$0xff] }
  0xf2   :  { %4883 = vmatprep.subr.bf16.mxu0 %v7556_v38  ;;  %5129 = vmatprep.subr.bf16.mxu1 %v7558_v39  ;;  %v487_v38 = vld [vmem:[#allocation8 + $0xaa0] sm:$0xff]  ;;  %v484_v39 = vld [vmem:[#allocation8 + $0xa88] sm:$0xff] }
  0xf3   :  { %v7620_v43 = vcombine.high %v483_v37, %v487_v38  ;;  %v7619_v49 = vcombine.low %v483_v37, %v487_v38  ;;  %v7621_v50 = vcombine.low %v484_v39, %v488_v40  ;;  %v127_v30 = vld [vmem:[#allocation5 + $0x20] sm:$0xff]  ;;  %v540_v38 = vld [vmem:[#allocation8 + $0xc48] sm:$0xff] }
  0xf4   :  { %v8518_v37 = vpack.c.bf16 %v127_v30, %v127_v30 }
  0xf5   :  { %4884 = vmatpush1.bf16.msra.mxu0 %v7555_v44  ;;  %5130 = vmatpush1.bf16.msra.mxu1 %v7557_v45  ;;  %v7622_v44 = vcombine.high %v484_v39, %v488_v40  ;;  %v491_v45 = vld [vmem:[#allocation8 + $0xac0] sm:$0xff]  ;;  %v544_v39 = vld [vmem:[#allocation8 + $0xc68] sm:$0xff]  ;;  %v130_v40 = vld [vmem:[#allocation5 + $0x38] sm:$0xff] }
  0xf6   :  { %4885 = vmatprep.subr.bf16.mxu0 %v7564_v46  ;;  %5131 = vmatprep.subr.bf16.mxu1 %v7566_v47  ;;  %v495_v46 = vld [vmem:[#allocation8 + $0xae0] sm:$0xff]  ;;  %v492_v47 = vld [vmem:[#allocation8 + $0xac8] sm:$0xff] }
  0xf7   :  { %v7628_v51 = vcombine.high %v491_v45, %v495_v46  ;;  %v7627_v57 = vcombine.low %v491_v45, %v495_v46  ;;  %v7629_v59 = vcombine.low %v492_v47, %v496_v48  ;;  %v547_v45 = vld [vmem:[#allocation8 + $0xc80] sm:$0xff] }
  0xf8   :  { %v551_v46 = vld [vmem:[#allocation8 + $0xca0] sm:$0xff] }
  0xf9   :  { %4886 = vmatpush1.bf16.msra.mxu0 %v7563_v52  ;;  %5132 = vmatpush1.bf16.msra.mxu1 %v7565_v53  ;;  %v7630_v52 = vcombine.high %v492_v47, %v496_v48  ;;  %v499_v53 = vld [vmem:[#allocation8 + $0xb00] sm:$0xff]  ;;  %v8520_v47 = vpack.c.bf16 %v130_v40, %v130_v40  ;;  %v548_v48 = vld [vmem:[#allocation8 + $0xc88] sm:$0xff] }
  0xfa   :  { %4887 = vmatprep.subr.bf16.mxu0 %v7572_v54  ;;  %5133 = vmatprep.subr.bf16.mxu1 %v7574_v55  ;;  %v503_v54 = vld [vmem:[#allocation8 + $0xb20] sm:$0xff]  ;;  %v500_v55 = vld [vmem:[#allocation8 + $0xb08] sm:$0xff] }
  0xfb   :  { %v7636_v60 = vcombine.high %v499_v53, %v503_v54  ;;  %v7635_v2 = vcombine.low %v499_v53, %v503_v54  ;;  %v7637_v3 = vcombine.low %v500_v55, %v504_v56  ;;  %v555_v54 = vld [vmem:[#allocation8 + $0xcc0] sm:$0xff] }
  0xfd   :  { %4888 = vmatpush1.bf16.msra.mxu0 %v7571_v61  ;;  %5134 = vmatpush1.bf16.msra.mxu1 %v7573_v62  ;;  %v7638_v61 = vcombine.high %v500_v55, %v504_v56  ;;  %v507_v62 = vld [vmem:[#allocation8 + $0xb40] sm:$0xff]  ;;  %v556_v56 = vld [vmem:[#allocation8 + $0xcc8] sm:$0xff] }
  0xfe   :  { %4889 = vmatprep.subr.bf16.mxu0 %v7580_v63  ;;  %5135 = vmatprep.subr.bf16.mxu1 %v7582_v0  ;;  %v511_v63 = vld [vmem:[#allocation8 + $0xb60] sm:$0xff]  ;;  %v508_v0 = vld [vmem:[#allocation8 + $0xb48] sm:$0xff] }
  0xff   :  { %v7644_v4 = vcombine.high %v507_v62, %v511_v63  ;;  %v7643_v10 = vcombine.low %v507_v62, %v511_v63  ;;  %v7645_v11 = vcombine.low %v508_v0, %v512_v1  ;;  %v559_v55 = vld [vmem:[#allocation8 + $0xce0] sm:$0xff] }
 0x100   :  { %v563_v63 = vld [vmem:[#allocation8 + $0xd00] sm:$0xff] }
 0x101   :  { %4890 = vmatpush1.bf16.msra.mxu0 %v7579_v5  ;;  %5136 = vmatpush1.bf16.msra.mxu1 %v7581_v6  ;;  %v7646_v5 = vcombine.high %v508_v0, %v512_v1  ;;  %v515_v6 = vld [vmem:[#allocation8 + $0xb80] sm:$0xff]  ;;  %v564_v1 = vld [vmem:[#allocation8 + $0xd08] sm:$0xff] }
 0x102   :  { %4891 = vmatprep.subr.bf16.mxu0 %v7588_v7  ;;  %5137 = vmatprep.subr.bf16.mxu1 %v7590_v8  ;;  %v519_v7 = vld [vmem:[#allocation8 + $0xba0] sm:$0xff]  ;;  %v516_v8 = vld [vmem:[#allocation8 + $0xb88] sm:$0xff] }
 0x103   :  { %v7652_v12 = vcombine.high %v515_v6, %v519_v7  ;;  %v7651_v19 = vcombine.low %v515_v6, %v519_v7  ;;  %v7653_v20 = vcombine.low %v516_v8, %v520_v9  ;;  %v567_v0 = vld [vmem:[#allocation8 + $0xd20] sm:$0xff] }
 0x104   :  { %v571_v7 = vld [vmem:[#allocation8 + $0xd40] sm:$0xff] }
 0x105   :  { %4892 = vmatpush1.bf16.msra.mxu0 %v7587_v14  ;;  %5138 = vmatpush1.bf16.msra.mxu1 %v7589_v15  ;;  %v7654_v14 = vcombine.high %v516_v8, %v520_v9  ;;  %v523_v15 = vld [vmem:[#allocation8 + $0xbc0] sm:$0xff]  ;;  %v572_v9 = vld [vmem:[#allocation8 + $0xd48] sm:$0xff] }
 0x106   :  { %4893 = vmatprep.subr.bf16.mxu0 %v7596_v16  ;;  %5139 = vmatprep.subr.bf16.mxu1 %v7598_v17  ;;  %v527_v16 = vld [vmem:[#allocation8 + $0xbe0] sm:$0xff]  ;;  %v524_v17 = vld [vmem:[#allocation8 + $0xbc8] sm:$0xff] }
 0x107   :  { %v7660_v21 = vcombine.high %v523_v15, %v527_v16  ;;  %v7659_v29 = vcombine.low %v523_v15, %v527_v16  ;;  %v7661_v31 = vcombine.low %v524_v17, %v528_v18  ;;  %v575_v8 = vld [vmem:[#allocation8 + $0xd60] sm:$0xff] }
 0x108   :  { %v579_v16 = vld [vmem:[#allocation8 + $0xd80] sm:$0xff] }
 0x109   :  { %4894 = vmatpush1.bf16.msra.mxu0 %v7595_v24  ;;  %5140 = vmatpush1.bf16.msra.mxu1 %v7597_v25  ;;  %v7662_v24 = vcombine.high %v524_v17, %v528_v18  ;;  %v531_v25 = vld [vmem:[#allocation8 + $0xc00] sm:$0xff]  ;;  %v580_v18 = vld [vmem:[#allocation8 + $0xd88] sm:$0xff] }
 0x10a   :  { %4895 = vmatprep.subr.bf16.mxu0 %v7604_v26  ;;  %5141 = vmatprep.subr.bf16.mxu1 %v7606_v27  ;;  %v535_v26 = vld [vmem:[#allocation8 + $0xc20] sm:$0xff]  ;;  %v532_v27 = vld [vmem:[#allocation8 + $0xc08] sm:$0xff] }
 0x10b   :  { %v583_v17 = vld [vmem:[#allocation8 + $0xda0] sm:$0xff] }
 0x10c   :  { %v7715_v30 = vcombine.low %v579_v16, %v583_v17 }
 0x10d   :  { %4896 = vmatpush1.bf16.msra.mxu0 %v7603_v32  ;;  %5142 = vmatpush1.bf16.msra.mxu1 %v7605_v34  ;;  %v7668_v32 = vcombine.high %v531_v25, %v535_v26  ;;  %v7670_v34 = vcombine.high %v532_v27, %v536_v28 }
 0x10e   :  { %4897 = vmatprep.subr.bf16.mxu0 %v7612_v35  ;;  %5143 = vmatprep.subr.bf16.mxu1 %v7614_v36  ;;  %v539_v35 = vld [vmem:[#allocation8 + $0xc40] sm:$0xff] }
 0x10f   :  { %v543_v36 = vld [vmem:[#allocation8 + $0xc60] sm:$0xff] }
 0x111   :  { %4898 = vmatpush1.bf16.msra.mxu0 %v7611_v41  ;;  %5144 = vmatpush1.bf16.msra.mxu1 %v7613_v42  ;;  %v7667_v41 = vcombine.low %v531_v25, %v535_v26  ;;  %v7669_v42 = vcombine.low %v532_v27, %v536_v28  ;;  %v587_v26 = vld [vmem:[#allocation8 + $0xdc0] sm:$0xff]  ;;  %v588_v28 = vld [vmem:[#allocation8 + $0xdc8] sm:$0xff] }
 0x112   :  { %4899 = vmatprep.subr.bf16.mxu0 %v7620_v43  ;;  %5145 = vmatprep.subr.bf16.mxu1 %v7622_v44  ;;  %v7676_v43 = vcombine.high %v539_v35, %v543_v36  ;;  %v7678_v44 = vcombine.high %v540_v38, %v544_v39  ;;  %v591_v27 = vld [vmem:[#allocation8 + $0xde0] sm:$0xff] }
 0x113   :  { %v7723_v40 = vcombine.low %v587_v26, %v591_v27 }
 0x115   :  { %4900 = vmatpush1.bf16.msra.mxu0 %v7619_v49  ;;  %5146 = vmatpush1.bf16.msra.mxu1 %v7621_v50  ;;  %v552_v49 = vld [vmem:[#allocation8 + $0xca8] sm:$0xff]  ;;  %v7675_v50 = vcombine.low %v539_v35, %v543_v36  ;;  %v595_v35 = vld [vmem:[#allocation8 + $0xe00] sm:$0xff] }
 0x116   :  { %4901 = vmatprep.subr.bf16.mxu0 %v7628_v51  ;;  %5147 = vmatprep.subr.bf16.mxu1 %v7630_v52  ;;  %v7677_v51 = vcombine.low %v540_v38, %v544_v39  ;;  %v7684_v52 = vcombine.high %v547_v45, %v551_v46  ;;  %v7686_v53 = vcombine.high %v548_v48, %v552_v49  ;;  %v599_v36 = vld [vmem:[#allocation8 + $0xe20] sm:$0xff]  ;;  %v596_v38 = vld [vmem:[#allocation8 + $0xe08] sm:$0xff] }
 0x117   :  { %v600_v39 = vld [vmem:[#allocation8 + $0xe28] sm:$0xff] }
 0x119   :  { %4902 = vmatpush1.bf16.msra.mxu0 %v7627_v57  ;;  %5148 = vmatpush1.bf16.msra.mxu1 %v7629_v59  ;;  %v560_v57 = vld [vmem:[#allocation8 + $0xce8] sm:$0xff]  ;;  %v7683_v59 = vcombine.low %v547_v45, %v551_v46  ;;  %v607_v45 = vld [vmem:[#allocation8 + $0xe60] sm:$0xff] }
 0x11a   :  { %4903 = vmatprep.subr.bf16.mxu0 %v7636_v60  ;;  %5149 = vmatprep.subr.bf16.mxu1 %v7638_v61  ;;  %v7685_v60 = vcombine.low %v548_v48, %v552_v49  ;;  %v7692_v61 = vcombine.high %v555_v54, %v559_v55  ;;  %v7694_v62 = vcombine.high %v556_v56, %v560_v57  ;;  %v604_v46 = vld [vmem:[#allocation8 + $0xe48] sm:$0xff] }
 0x11b   :  { %v608_v48 = vld [vmem:[#allocation8 + $0xe68] sm:$0xff]  ;;  %v7731_v49 = vcombine.low %v595_v35, %v599_v36 }
 0x11d   :  { %4904 = vmatpush1.bf16.msra.mxu0 %v7635_v2  ;;  %5150 = vmatpush1.bf16.msra.mxu1 %v7637_v3  ;;  %v568_v2 = vld [vmem:[#allocation8 + $0xd28] sm:$0xff]  ;;  %v7691_v3 = vcombine.low %v555_v54, %v559_v55  ;;  %v615_v54 = vld [vmem:[#allocation8 + $0xea0] sm:$0xff] }
 0x11e   :  { %4905 = vmatprep.subr.bf16.mxu0 %v7644_v4  ;;  %5151 = vmatprep.subr.bf16.mxu1 %v7646_v5  ;;  %v7693_v4 = vcombine.low %v556_v56, %v560_v57  ;;  %v7700_v5 = vcombine.high %v563_v63, %v567_v0  ;;  %v7702_v6 = vcombine.high %v564_v1, %v568_v2  ;;  %v612_v55 = vld [vmem:[#allocation8 + $0xe88] sm:$0xff] }
 0x11f   :  { %v616_v56 = vld [vmem:[#allocation8 + $0xea8] sm:$0xff] }
 0x121   :  { %4906 = vmatpush1.bf16.msra.mxu0 %v7643_v10  ;;  %5152 = vmatpush1.bf16.msra.mxu1 %v7645_v11  ;;  %v576_v10 = vld [vmem:[#allocation8 + $0xd68] sm:$0xff]  ;;  %v7699_v11 = vcombine.low %v563_v63, %v567_v0  ;;  %v623_v63 = vld [vmem:[#allocation8 + $0xee0] sm:$0xff] }
 0x122   :  { %4907 = vmatprep.subr.bf16.mxu0 %v7652_v12  ;;  %5153 = vmatprep.subr.bf16.mxu1 %v7654_v14  ;;  %v7701_v12 = vcombine.low %v564_v1, %v568_v2  ;;  %v7708_v14 = vcombine.high %v571_v7, %v575_v8  ;;  %v7710_v15 = vcombine.high %v572_v9, %v576_v10  ;;  %v620_v0 = vld [vmem:[#allocation8 + $0xec8] sm:$0xff] }
 0x123   :  { %v624_v1 = vld [vmem:[#allocation8 + $0xee8] sm:$0xff] }
 0x125   :  { %4908 = vmatpush1.bf16.msra.mxu0 %v7651_v19  ;;  %5154 = vmatpush1.bf16.msra.mxu1 %v7653_v20  ;;  %v584_v19 = vld [vmem:[#allocation8 + $0xda8] sm:$0xff]  ;;  %v7707_v20 = vcombine.low %v571_v7, %v575_v8  ;;  %v631_v7 = vld [vmem:[#allocation8 + $0xf20] sm:$0xff] }
 0x126   :  { %4909 = vmatprep.subr.bf16.mxu0 %v7660_v21  ;;  %5155 = vmatprep.subr.bf16.mxu1 %v7662_v24  ;;  %v7709_v21 = vcombine.low %v572_v9, %v576_v10  ;;  %v7716_v24 = vcombine.high %v579_v16, %v583_v17  ;;  %v7718_v25 = vcombine.high %v580_v18, %v584_v19  ;;  %v628_v8 = vld [vmem:[#allocation8 + $0xf08] sm:$0xff]  ;;  %v639_v16 = vld [vmem:[#allocation8 + $0xf60] sm:$0xff] }
 0x127   :  { %v632_v9 = vld [vmem:[#allocation8 + $0xf28] sm:$0xff] }
 0x128   :  { %v636_v17 = vld [vmem:[#allocation8 + $0xf48] sm:$0xff] }
 0x129   :  { %4910 = vmatpush1.bf16.msra.mxu0 %v7659_v29  ;;  %5156 = vmatpush1.bf16.msra.mxu1 %v7661_v31  ;;  %v592_v29 = vld [vmem:[#allocation8 + $0xde8] sm:$0xff]  ;;  %v7717_v31 = vcombine.low %v580_v18, %v584_v19 }
 0x12a   :  { %4920 = vmatprep.subr.bf16.mxu0 %v7668_v32  ;;  %5166 = vmatprep.subr.bf16.mxu1 %v7670_v34  ;;  %v7724_v32 = vcombine.high %v587_v26, %v591_v27  ;;  %v7726_v34 = vcombine.high %v588_v28, %v592_v29  ;;  %v640_v18 = vld [vmem:[#allocation8 + $0xf68] sm:$0xff]  ;;  %v647_v26 = vld [vmem:[#allocation8 + $0xfa0] sm:$0xff] }
 0x12b   :  { %v644_v27 = vld [vmem:[#allocation8 + $0xf88] sm:$0xff] }
 0x12c   :  { %4912 = vmatmul.mubr.bf16.vlgmr.msra.gmra.mrb[0].mxu0 %v8518_v37  ;;  %5158 = vmatmul.mubr.bf16.vlgmr.msra.gmra.mrb[0].mxu1 %v8518_v37 }
 0x12d   :  { %4921 = vmatpush1.bf16.msra.mxu0 %v7667_v41  ;;  %5167 = vmatpush1.bf16.msra.mxu1 %v7669_v42  ;;  %v7725_v41 = vcombine.low %v588_v28, %v592_v29  ;;  %v7732_v42 = vcombine.high %v595_v35, %v599_v36  ;;  %v648_v28 = vld [vmem:[#allocation8 + $0xfa8] sm:$0xff]  ;;  %v655_v35 = vld [vmem:[#allocation8 + $0xfe0] sm:$0xff] }
 0x12e   :  { %4922 = vmatprep.subr.bf16.mxu0 %v7676_v43  ;;  %5168 = vmatprep.subr.bf16.mxu1 %v7678_v44  ;;  %v7734_v43 = vcombine.high %v596_v38, %v600_v39  ;;  %v603_v44 = vld [vmem:[#allocation8 + $0xe40] sm:$0xff]  ;;  %v652_v36 = vld [vmem:[#allocation8 + $0xfc8] sm:$0xff] }
 0x12f   :  { %4952 = vmatprep.mubr.bf16.mxu0 %v8520_v47  ;;  %5198 = vmatprep.mubr.bf16.mxu1 %v8520_v47  ;;  %v7739_v57 = vcombine.low %v603_v44, %v607_v45 }
 0x131   :  { %4923 = vmatpush1.bf16.msra.mxu0 %v7675_v50  ;;  %5169 = vmatpush1.bf16.msra.mxu1 %v7677_v51  ;;  %v7733_v50 = vcombine.low %v596_v38, %v600_v39  ;;  %v7740_v51 = vcombine.high %v603_v44, %v607_v45  ;;  %v656_v38 = vld [vmem:[#allocation8 + $0xfe8] sm:$0xff]  ;;  %v663_v44 = vld [vmem:[#allocation8 + $0x1020] sm:$0xff] }
 0x132   :  { %4924 = vmatprep.subr.bf16.mxu0 %v7684_v52  ;;  %5170 = vmatprep.subr.bf16.mxu1 %v7686_v53  ;;  %v7742_v52 = vcombine.high %v604_v46, %v608_v48  ;;  %v611_v53 = vld [vmem:[#allocation8 + $0xe80] sm:$0xff]  ;;  %v660_v45 = vld [vmem:[#allocation8 + $0x1008] sm:$0xff] }
 0x133   :  { %v7747_v2 = vcombine.low %v611_v53, %v615_v54 }
 0x135   :  { %4925 = vmatpush1.bf16.msra.mxu0 %v7683_v59  ;;  %5171 = vmatpush1.bf16.msra.mxu1 %v7685_v60  ;;  %v7741_v59 = vcombine.low %v604_v46, %v608_v48  ;;  %v7748_v60 = vcombine.high %v611_v53, %v615_v54  ;;  %v664_v46 = vld [vmem:[#allocation8 + $0x1028] sm:$0xff]  ;;  %v667_v53 = vld [vmem:[#allocation8 + $0x1040] sm:$0xff] }
 0x136   :  { %4926 = vmatprep.subr.bf16.mxu0 %v7692_v61  ;;  %5172 = vmatprep.subr.bf16.mxu1 %v7694_v62  ;;  %v7750_v61 = vcombine.high %v612_v55, %v616_v56  ;;  %v619_v62 = vld [vmem:[#allocation8 + $0xec0] sm:$0xff] }
 0x137   :  { %v7755_v10 = vcombine.low %v619_v62, %v623_v63  ;;  %v671_v54 = vld [vmem:[#allocation8 + $0x1060] sm:$0xff] }
 0x139   :  { %4927 = vmatpush1.bf16.msra.mxu0 %v7691_v3  ;;  %5173 = vmatpush1.bf16.msra.mxu1 %v7693_v4  ;;  %v7749_v3 = vcombine.low %v612_v55, %v616_v56  ;;  %v7756_v4 = vcombine.high %v619_v62, %v623_v63  ;;  %v668_v56 = vld [vmem:[#allocation8 + $0x1048] sm:$0xff]  ;;  %v7804_v62 = vcombine.high %v667_v53, %v671_v54 }
 0x13a   :  { %4928 = vmatprep.subr.bf16.mxu0 %v7700_v5  ;;  %5174 = vmatprep.subr.bf16.mxu1 %v7702_v6  ;;  %v7758_v5 = vcombine.high %v620_v0, %v624_v1  ;;  %v627_v6 = vld [vmem:[#allocation8 + $0xf00] sm:$0xff] }
 0x13b   :  { %v7763_v19 = vcombine.low %v627_v6, %v631_v7 }
 0x13d   :  { %4929 = vmatpush1.bf16.msra.mxu0 %v7699_v11  ;;  %5175 = vmatpush1.bf16.msra.mxu1 %v7701_v12  ;;  %v7757_v11 = vcombine.low %v620_v0, %v624_v1  ;;  %v7764_v12 = vcombine.high %v627_v6, %v631_v7  ;;  %v675_v0 = vld [vmem:[#allocation8 + $0x1080] sm:$0xff] }
 0x13e   :  { %4930 = vmatprep.subr.bf16.mxu0 %v7708_v14  ;;  %5176 = vmatprep.subr.bf16.mxu1 %v7710_v15  ;;  %v7766_v14 = vcombine.high %v628_v8, %v632_v9  ;;  %v635_v15 = vld [vmem:[#allocation8 + $0xf40] sm:$0xff] }
 0x13f   :  { %v7771_v29 = vcombine.low %v635_v15, %v639_v16  ;;  %v679_v1 = vld [vmem:[#allocation8 + $0x10a0] sm:$0xff] }
 0x140   :  { %v7812_v7 = vcombine.high %v675_v0, %v679_v1 }
 0x141   :  { %4931 = vmatpush1.bf16.msra.mxu0 %v7707_v20  ;;  %5177 = vmatpush1.bf16.msra.mxu1 %v7709_v21  ;;  %v7765_v20 = vcombine.low %v628_v8, %v632_v9  ;;  %v7772_v21 = vcombine.high %v635_v15, %v639_v16  ;;  %v683_v9 = vld [vmem:[#allocation8 + $0x10c0] sm:$0xff] }
 0x142   :  { %4932 = vmatprep.subr.bf16.mxu0 %v7716_v24  ;;  %5178 = vmatprep.subr.bf16.mxu1 %v7718_v25  ;;  %v7774_v24 = vcombine.high %v636_v17, %v640_v18  ;;  %v643_v25 = vld [vmem:[#allocation8 + $0xf80] sm:$0xff] }
 0x143   :  { %v7779_v39 = vcombine.low %v643_v25, %v647_v26 }
 0x145   :  { %4933 = vmatpush1.bf16.msra.mxu0 %v7715_v30  ;;  %5179 = vmatpush1.bf16.msra.mxu1 %v7717_v31  ;;  %v7773_v30 = vcombine.low %v636_v17, %v640_v18  ;;  %v7780_v31 = vcombine.high %v643_v25, %v647_v26  ;;  %v691_v18 = vld [vmem:[#allocation8 + $0x1100] sm:$0xff] }
 0x146   :  { %4934 = vmatprep.subr.bf16.mxu0 %v7724_v32  ;;  %5180 = vmatprep.subr.bf16.mxu1 %v7726_v34  ;;  %v7782_v32 = vcombine.high %v644_v27, %v648_v28  ;;  %v651_v34 = vld [vmem:[#allocation8 + $0xfc0] sm:$0xff] }
 0x147   :  { %v7787_v48 = vcombine.low %v651_v34, %v655_v35 }
 0x149   :  { %4935 = vmatpush1.bf16.msra.mxu0 %v7723_v40  ;;  %5181 = vmatpush1.bf16.msra.mxu1 %v7725_v41  ;;  %v7781_v40 = vcombine.low %v644_v27, %v648_v28  ;;  %v7788_v41 = vcombine.high %v651_v34, %v655_v35  ;;  %v699_v28 = vld [vmem:[#allocation8 + $0x1140] sm:$0xff] }
 0x14a   :  { %4936 = vmatprep.subr.bf16.mxu0 %v7732_v42  ;;  %5182 = vmatprep.subr.bf16.mxu1 %v7734_v43  ;;  %v7790_v42 = vcombine.high %v652_v36, %v656_v38  ;;  %v659_v43 = vld [vmem:[#allocation8 + $0x1000] sm:$0xff] }
 0x14d   :  { %4937 = vmatpush1.bf16.msra.mxu0 %v7731_v49  ;;  %5183 = vmatpush1.bf16.msra.mxu1 %v7733_v50  ;;  %v129_v49 = vld [vmem:[#allocation5 + $0x30] sm:$0xff]  ;;  %v7789_v50 = vcombine.low %v652_v36, %v656_v38  ;;  %v707_v38 = vld [vmem:[#allocation8 + $0x1180] sm:$0xff] }
 0x14e   :  { %4938 = vmatprep.subr.bf16.mxu0 %v7740_v51  ;;  %5184 = vmatprep.subr.bf16.mxu1 %v7742_v52  ;;  %v7796_v51 = vcombine.high %v659_v43, %v663_v44  ;;  %v7798_v52 = vcombine.high %v660_v45, %v664_v46  ;;  %v8526_v55 = vpack.c.bf16 %v129_v49, %v129_v49  ;;  %v716_v49 = vld [vmem:[#allocation8 + $0x11c8] sm:$0xff] }
 0x151   :  { %4939 = vmatpush1.bf16.msra.mxu0 %v7739_v57  ;;  %5185 = vmatpush1.bf16.msra.mxu1 %v7741_v59  ;;  %v672_v57 = vld [vmem:[#allocation8 + $0x1068] sm:$0xff] }
 0x152   :  { %4940 = vmatprep.subr.bf16.mxu0 %v7748_v60  ;;  %5186 = vmatprep.subr.bf16.mxu1 %v7750_v61  ;;  %v132_v59 = vld [vmem:[#allocation5 + $0x48] sm:$0xff]  ;;  %v7795_v60 = vcombine.low %v659_v43, %v663_v44  ;;  %v7797_v61 = vcombine.low %v660_v45, %v664_v46  ;;  %v7806_v63 = vcombine.high %v668_v56, %v672_v57  ;;  %v715_v46 = vld [vmem:[#allocation8 + $0x11c0] sm:$0xff] }
 0x153   :  { %v7805_v6 = vcombine.low %v668_v56, %v672_v57  ;;  %v723_v56 = vld [vmem:[#allocation8 + $0x1200] sm:$0xff] }
 0x154   :  { %v727_v57 = vld [vmem:[#allocation8 + $0x1220] sm:$0xff] }
 0x155   :  { %4941 = vmatpush1.bf16.msra.mxu0 %v7747_v2  ;;  %5187 = vmatpush1.bf16.msra.mxu1 %v7749_v3  ;;  %v8528_v2 = vpack.c.bf16 %v132_v59, %v132_v59  ;;  %v676_v3 = vld [vmem:[#allocation8 + $0x1088] sm:$0xff] }
 0x156   :  { %4942 = vmatprep.subr.bf16.mxu0 %v7756_v4  ;;  %5188 = vmatprep.subr.bf16.mxu1 %v7758_v5  ;;  %v680_v4 = vld [vmem:[#allocation8 + $0x10a8] sm:$0xff]  ;;  %v7803_v5 = vcombine.low %v667_v53, %v671_v54 }
 0x157   :  { %v7814_v8 = vcombine.high %v676_v3, %v680_v4  ;;  %v7813_v15 = vcombine.low %v676_v3, %v680_v4  ;;  %v724_v59 = vld [vmem:[#allocation8 + $0x1208] sm:$0xff]  ;;  %v735_v3 = vld [vmem:[#allocation8 + $0x1260] sm:$0xff] }
 0x158   :  { %v732_v4 = vld [vmem:[#allocation8 + $0x1248] sm:$0xff] }
 0x159   :  { %4943 = vmatpush1.bf16.msra.mxu0 %v7755_v10  ;;  %5189 = vmatpush1.bf16.msra.mxu1 %v7757_v11  ;;  %v687_v10 = vld [vmem:[#allocation8 + $0x10e0] sm:$0xff]  ;;  %v684_v11 = vld [vmem:[#allocation8 + $0x10c8] sm:$0xff] }
 0x15a   :  { %4944 = vmatprep.subr.bf16.mxu0 %v7764_v12  ;;  %5190 = vmatprep.subr.bf16.mxu1 %v7766_v14  ;;  %v688_v12 = vld [vmem:[#allocation8 + $0x10e8] sm:$0xff]  ;;  %v7811_v14 = vcombine.low %v675_v0, %v679_v1  ;;  %v7820_v16 = vcombine.high %v683_v9, %v687_v10  ;;  %v731_v1 = vld [vmem:[#allocation8 + $0x1240] sm:$0xff] }
 0x15b   :  { %v7822_v17 = vcombine.high %v684_v11, %v688_v12  ;;  %v7821_v25 = vcombine.low %v684_v11, %v688_v12  ;;  %v743_v11 = vld [vmem:[#allocation8 + $0x12a0] sm:$0xff]  ;;  %v740_v12 = vld [vmem:[#allocation8 + $0x1288] sm:$0xff] }
 0x15d   :  { %4945 = vmatpush1.bf16.msra.mxu0 %v7763_v19  ;;  %5191 = vmatpush1.bf16.msra.mxu1 %v7765_v20  ;;  %v695_v19 = vld [vmem:[#allocation8 + $0x1120] sm:$0xff]  ;;  %v692_v20 = vld [vmem:[#allocation8 + $0x1108] sm:$0xff] }
 0x15e   :  { %4946 = vmatprep.subr.bf16.mxu0 %v7772_v21  ;;  %5192 = vmatprep.subr.bf16.mxu1 %v7774_v24  ;;  %v696_v21 = vld [vmem:[#allocation8 + $0x1128] sm:$0xff]  ;;  %v7819_v24 = vcombine.low %v683_v9, %v687_v10  ;;  %v7828_v26 = vcombine.high %v691_v18, %v695_v19  ;;  %v739_v10 = vld [vmem:[#allocation8 + $0x1280] sm:$0xff] }
 0x15f   :  { %v7830_v27 = vcombine.high %v692_v20, %v696_v21  ;;  %v7829_v34 = vcombine.low %v692_v20, %v696_v21  ;;  %v751_v20 = vld [vmem:[#allocation8 + $0x12e0] sm:$0xff]  ;;  %v748_v21 = vld [vmem:[#allocation8 + $0x12c8] sm:$0xff] }
 0x161   :  { %4947 = vmatpush1.bf16.msra.mxu0 %v7771_v29  ;;  %5193 = vmatpush1.bf16.msra.mxu1 %v7773_v30  ;;  %v703_v29 = vld [vmem:[#allocation8 + $0x1160] sm:$0xff]  ;;  %v700_v30 = vld [vmem:[#allocation8 + $0x1148] sm:$0xff] }
 0x162   :  { %4948 = vmatprep.subr.bf16.mxu0 %v7780_v31  ;;  %5194 = vmatprep.subr.bf16.mxu1 %v7782_v32  ;;  %v704_v31 = vld [vmem:[#allocation8 + $0x1168] sm:$0xff]  ;;  %v7827_v32 = vcombine.low %v691_v18, %v695_v19  ;;  %v7836_v35 = vcombine.high %v699_v28, %v703_v29  ;;  %v747_v19 = vld [vmem:[#allocation8 + $0x12c0] sm:$0xff] }
 0x163   :  { %v7838_v36 = vcombine.high %v700_v30, %v704_v31  ;;  %v7837_v43 = vcombine.low %v700_v30, %v704_v31  ;;  %v759_v30 = vld [vmem:[#allocation8 + $0x1320] sm:$0xff]  ;;  %v756_v31 = vld [vmem:[#allocation8 + $0x1308] sm:$0xff] }
 0x165   :  { %4949 = vmatpush1.bf16.msra.mxu0 %v7779_v39  ;;  %5195 = vmatpush1.bf16.msra.mxu1 %v7781_v40  ;;  %v711_v39 = vld [vmem:[#allocation8 + $0x11a0] sm:$0xff]  ;;  %v708_v40 = vld [vmem:[#allocation8 + $0x1188] sm:$0xff] }
 0x166   :  { %4950 = vmatprep.subr.bf16.mxu0 %v7788_v41  ;;  %5196 = vmatprep.subr.bf16.mxu1 %v7790_v42  ;;  %v712_v41 = vld [vmem:[#allocation8 + $0x11a8] sm:$0xff]  ;;  %v7835_v42 = vcombine.low %v699_v28, %v703_v29  ;;  %v7844_v44 = vcombine.high %v707_v38, %v711_v39  ;;  %v755_v29 = vld [vmem:[#allocation8 + $0x1300] sm:$0xff] }
 0x167   :  { %v7846_v45 = vcombine.high %v708_v40, %v712_v41 }
 0x169   :  { %4951 = vmatpush1.bf16.msra.mxu0 %v7787_v48  ;;  %5197 = vmatpush1.bf16.msra.mxu1 %v7789_v50  ;;  %v719_v48 = vld [vmem:[#allocation8 + $0x11e0] sm:$0xff]  ;;  %v720_v50 = vld [vmem:[#allocation8 + $0x11e8] sm:$0xff] }
 0x16a   :  { %4961 = vmatprep.subr.bf16.mxu0 %v7796_v51  ;;  %5207 = vmatprep.subr.bf16.mxu1 %v7798_v52  ;;  %v7843_v51 = vcombine.low %v707_v38, %v711_v39  ;;  %v7845_v52 = vcombine.low %v708_v40, %v712_v41  ;;  %v7852_v53 = vcombine.high %v715_v46, %v719_v48  ;;  %v763_v39 = vld [vmem:[#allocation8 + $0x1340] sm:$0xff]  ;;  %v764_v41 = vld [vmem:[#allocation8 + $0x1348] sm:$0xff] }
 0x16b   :  { %v7854_v54 = vcombine.high %v716_v49, %v720_v50  ;;  %v767_v40 = vld [vmem:[#allocation8 + $0x1360] sm:$0xff] }
 0x16c   :  { %4953 = vmatmul.mubr.bf16.vlgmr.msra.gmra.mrb[0].mxu0 %v8526_v55  ;;  %5199 = vmatmul.mubr.bf16.vlgmr.msra.gmra.mrb[0].mxu1 %v8526_v55 }
 0x16d   :  { %4962 = vmatpush1.bf16.msra.mxu0 %v7795_v60  ;;  %5208 = vmatpush1.bf16.msra.mxu1 %v7797_v61  ;;  %v728_v60 = vld [vmem:[#allocation8 + $0x1228] sm:$0xff]  ;;  %v7851_v61 = vcombine.low %v715_v46, %v719_v48  ;;  %v771_v48 = vld [vmem:[#allocation8 + $0x1380] sm:$0xff] }
 0x16e   :  { %4963 = vmatprep.subr.bf16.mxu0 %v7804_v62  ;;  %5209 = vmatprep.subr.bf16.mxu1 %v7806_v63  ;;  %v7853_v62 = vcombine.low %v716_v49, %v720_v50  ;;  %v7860_v63 = vcombine.high %v723_v56, %v727_v57  ;;  %v7862_v0 = vcombine.high %v724_v59, %v728_v60  ;;  %v775_v49 = vld [vmem:[#allocation8 + $0x13a0] sm:$0xff]  ;;  %v772_v50 = vld [vmem:[#allocation8 + $0x1388] sm:$0xff] }
 0x16f   :  { %4993 = vmatprep.mubr.bf16.mxu0 %v8528_v2  ;;  %5239 = vmatprep.mubr.bf16.mxu1 %v8528_v2 }
 0x171   :  { %4964 = vmatpush1.bf16.msra.mxu0 %v7803_v5  ;;  %5210 = vmatpush1.bf16.msra.mxu1 %v7805_v6  ;;  %v736_v5 = vld [vmem:[#allocation8 + $0x1268] sm:$0xff]  ;;  %v7859_v6 = vcombine.low %v723_v56, %v727_v57  ;;  %v779_v57 = vld [vmem:[#allocation8 + $0x13c0] sm:$0xff] }
 0x172   :  { %4965 = vmatprep.subr.bf16.mxu0 %v7812_v7  ;;  %5211 = vmatprep.subr.bf16.mxu1 %v7814_v8  ;;  %v7861_v7 = vcombine.low %v724_v59, %v728_v60  ;;  %v7868_v8 = vcombine.high %v731_v1, %v735_v3  ;;  %v7870_v9 = vcombine.high %v732_v4, %v736_v5  ;;  %v783_v59 = vld [vmem:[#allocation8 + $0x13e0] sm:$0xff]  ;;  %v780_v60 = vld [vmem:[#allocation8 + $0x13c8] sm:$0xff] }
 0x175   :  { %4966 = vmatpush1.bf16.msra.mxu0 %v7811_v14  ;;  %5212 = vmatpush1.bf16.msra.mxu1 %v7813_v15  ;;  %v744_v14 = vld [vmem:[#allocation8 + $0x12a8] sm:$0xff]  ;;  %v7867_v15 = vcombine.low %v731_v1, %v735_v3  ;;  %v787_v3 = vld [vmem:[#allocation8 + $0x1400] sm:$0xff] }
 0x176   :  { %4967 = vmatprep.subr.bf16.mxu0 %v7820_v16  ;;  %5213 = vmatprep.subr.bf16.mxu1 %v7822_v17  ;;  %v7869_v16 = vcombine.low %v732_v4, %v736_v5  ;;  %v7876_v17 = vcombine.high %v739_v10, %v743_v11  ;;  %v7878_v18 = vcombine.high %v740_v12, %v744_v14  ;;  %v791_v4 = vld [vmem:[#allocation8 + $0x1420] sm:$0xff]  ;;  %v788_v5 = vld [vmem:[#allocation8 + $0x1408] sm:$0xff] }
 0x179   :  { %4968 = vmatpush1.bf16.msra.mxu0 %v7819_v24  ;;  %5214 = vmatpush1.bf16.msra.mxu1 %v7821_v25  ;;  %v752_v24 = vld [vmem:[#allocation8 + $0x12e8] sm:$0xff]  ;;  %v7875_v25 = vcombine.low %v739_v10, %v743_v11  ;;  %v7924_v10 = vcombine.high %v787_v3, %v791_v4 }
 0x17a   :  { %4969 = vmatprep.subr.bf16.mxu0 %v7828_v26  ;;  %5215 = vmatprep.subr.bf16.mxu1 %v7830_v27  ;;  %v7877_v26 = vcombine.low %v740_v12, %v744_v14  ;;  %v7884_v27 = vcombine.high %v747_v19, %v751_v20  ;;  %v7886_v28 = vcombine.high %v748_v21, %v752_v24  ;;  %v795_v12 = vld [vmem:[#allocation8 + $0x1440] sm:$0xff] }
 0x17b   :  { %v799_v14 = vld [vmem:[#allocation8 + $0x1460] sm:$0xff] }
 0x17d   :  { %4970 = vmatpush1.bf16.msra.mxu0 %v7827_v32  ;;  %5216 = vmatpush1.bf16.msra.mxu1 %v7829_v34  ;;  %v760_v32 = vld [vmem:[#allocation8 + $0x1328] sm:$0xff]  ;;  %v7883_v34 = vcombine.low %v747_v19, %v751_v20  ;;  %v7923_v19 = vcombine.low %v787_v3, %v791_v4 }
 0x17e   :  { %4971 = vmatprep.subr.bf16.mxu0 %v7836_v35  ;;  %5217 = vmatprep.subr.bf16.mxu1 %v7838_v36  ;;  %v7885_v35 = vcombine.low %v748_v21, %v752_v24  ;;  %v7892_v36 = vcombine.high %v755_v29, %v759_v30  ;;  %v7894_v38 = vcombine.high %v756_v31, %v760_v32  ;;  %v840_v3 = vld [vmem:[#allocation8 + $0x15a8] sm:$0xff] }
 0x17f   :  { %v7932_v21 = vcombine.high %v795_v12, %v799_v14 }
 0x181   :  { %4972 = vmatpush1.bf16.msra.mxu0 %v7835_v42  ;;  %5218 = vmatpush1.bf16.msra.mxu1 %v7837_v43  ;;  %v768_v42 = vld [vmem:[#allocation8 + $0x1368] sm:$0xff]  ;;  %v7891_v43 = vcombine.low %v755_v29, %v759_v30  ;;  %v7931_v30 = vcombine.low %v795_v12, %v799_v14 }
 0x182   :  { %4973 = vmatprep.subr.bf16.mxu0 %v7844_v44  ;;  %5219 = vmatprep.subr.bf16.mxu1 %v7846_v45  ;;  %v7893_v44 = vcombine.low %v756_v31, %v760_v32  ;;  %v7900_v45 = vcombine.high %v763_v39, %v767_v40  ;;  %v7902_v46 = vcombine.high %v764_v41, %v768_v42  ;;  %v808_v29 = vld [vmem:[#allocation8 + $0x14a8] sm:$0xff] }
 0x185   :  { %4974 = vmatpush1.bf16.msra.mxu0 %v7843_v51  ;;  %5220 = vmatpush1.bf16.msra.mxu1 %v7845_v52  ;;  %v776_v51 = vld [vmem:[#allocation8 + $0x13a8] sm:$0xff]  ;;  %v7899_v52 = vcombine.low %v763_v39, %v767_v40 }
 0x186   :  { %4975 = vmatprep.subr.bf16.mxu0 %v7852_v53  ;;  %5221 = vmatprep.subr.bf16.mxu1 %v7854_v54  ;;  %v7901_v53 = vcombine.low %v764_v41, %v768_v42  ;;  %v7908_v54 = vcombine.high %v771_v48, %v775_v49  ;;  %v7910_v56 = vcombine.high %v772_v50, %v776_v51  ;;  %v816_v39 = vld [vmem:[#allocation8 + $0x14e8] sm:$0xff] }
 0x189   :  { %4976 = vmatpush1.bf16.msra.mxu0 %v7851_v61  ;;  %5222 = vmatpush1.bf16.msra.mxu1 %v7853_v62  ;;  %v784_v61 = vld [vmem:[#allocation8 + $0x13e8] sm:$0xff]  ;;  %v7907_v62 = vcombine.low %v771_v48, %v775_v49 }
 0x18a   :  { %4977 = vmatprep.subr.bf16.mxu0 %v7860_v63  ;;  %5223 = vmatprep.subr.bf16.mxu1 %v7862_v0  ;;  %v7909_v63 = vcombine.low %v772_v50, %v776_v51  ;;  %v7916_v0 = vcombine.high %v779_v57, %v783_v59  ;;  %v7918_v1 = vcombine.high %v780_v60, %v784_v61  ;;  %v824_v48 = vld [vmem:[#allocation8 + $0x1528] sm:$0xff] }
 0x18d   :  { %4978 = vmatpush1.bf16.msra.mxu0 %v7859_v6  ;;  %5224 = vmatpush1.bf16.msra.mxu1 %v7861_v7  ;;  %v792_v6 = vld [vmem:[#allocation8 + $0x1428] sm:$0xff]  ;;  %v7915_v7 = vcombine.low %v779_v57, %v783_v59 }
 0x18e   :  { %4979 = vmatprep.subr.bf16.mxu0 %v7868_v8  ;;  %5225 = vmatprep.subr.bf16.mxu1 %v7870_v9  ;;  %v131_v8 = vld [vmem:[#allocation5 + $0x40] sm:$0xff]  ;;  %v7917_v9 = vcombine.low %v780_v60, %v784_v61  ;;  %v7926_v11 = vcombine.high %v788_v5, %v792_v6  ;;  %v7925_v20 = vcombine.low %v788_v5, %v792_v6  ;;  %v832_v57 = vld [vmem:[#allocation8 + $0x1568] sm:$0xff] }
 0x191   :  { %4980 = vmatpush1.bf16.msra.mxu0 %v7867_v15  ;;  %5226 = vmatpush1.bf16.msra.mxu1 %v7869_v16  ;;  %v8534_v15 = vpack.c.bf16 %v131_v8, %v131_v8  ;;  %v796_v16 = vld [vmem:[#allocation8 + $0x1448] sm:$0xff]  ;;  %v843_v8 = vld [vmem:[#allocation8 + $0x15c0] sm:$0xff] }
 0x192   :  { %4981 = vmatprep.subr.bf16.mxu0 %v7876_v17  ;;  %5227 = vmatprep.subr.bf16.mxu1 %v7878_v18  ;;  %v800_v17 = vld [vmem:[#allocation8 + $0x1468] sm:$0xff]  ;;  %v134_v18 = vld [vmem:[#allocation5 + $0x58] sm:$0xff] }
 0x193   :  { %v7934_v24 = vcombine.high %v796_v16, %v800_v17  ;;  %v7933_v31 = vcombine.low %v796_v16, %v800_v17 }
 0x195   :  { %4982 = vmatpush1.bf16.msra.mxu0 %v7875_v25  ;;  %5228 = vmatpush1.bf16.msra.mxu1 %v7877_v26  ;;  %v803_v25 = vld [vmem:[#allocation8 + $0x1480] sm:$0xff] }
 0x196   :  { %4983 = vmatprep.subr.bf16.mxu0 %v7884_v27  ;;  %5229 = vmatprep.subr.bf16.mxu1 %v7886_v28  ;;  %v807_v26 = vld [vmem:[#allocation8 + $0x14a0] sm:$0xff]  ;;  %v8536_v27 = vpack.c.bf16 %v134_v18, %v134_v18  ;;  %v804_v28 = vld [vmem:[#allocation8 + $0x1488] sm:$0xff] }
 0x197   :  { %v7940_v32 = vcombine.high %v803_v25, %v807_v26  ;;  %v7939_v40 = vcombine.low %v803_v25, %v807_v26  ;;  %v7941_v41 = vcombine.low %v804_v28, %v808_v29  ;;  %v851_v18 = vld [vmem:[#allocation8 + $0x1600] sm:$0xff] }
 0x199   :  { %4984 = vmatpush1.bf16.msra.mxu0 %v7883_v34  ;;  %5230 = vmatpush1.bf16.msra.mxu1 %v7885_v35  ;;  %v7942_v34 = vcombine.high %v804_v28, %v808_v29  ;;  %v811_v35 = vld [vmem:[#allocation8 + $0x14c0] sm:$0xff] }
 0x19a   :  { %4985 = vmatprep.subr.bf16.mxu0 %v7892_v36  ;;  %5231 = vmatprep.subr.bf16.mxu1 %v7894_v38  ;;  %v815_v36 = vld [vmem:[#allocation8 + $0x14e0] sm:$0xff]  ;;  %v812_v38 = vld [vmem:[#allocation8 + $0x14c8] sm:$0xff] }
 0x19b   :  { %v7948_v42 = vcombine.high %v811_v35, %v815_v36  ;;  %v7947_v49 = vcombine.low %v811_v35, %v815_v36  ;;  %v7949_v50 = vcombine.low %v812_v38, %v816_v39  ;;  %v859_v29 = vld [vmem:[#allocation8 + $0x1640] sm:$0xff] }
 0x19d   :  { %4986 = vmatpush1.bf16.msra.mxu0 %v7891_v43  ;;  %5232 = vmatpush1.bf16.msra.mxu1 %v7893_v44  ;;  %v7950_v43 = vcombine.high %v812_v38, %v816_v39  ;;  %v819_v44 = vld [vmem:[#allocation8 + $0x1500] sm:$0xff] }
 0x19e   :  { %4987 = vmatprep.subr.bf16.mxu0 %v7900_v45  ;;  %5233 = vmatprep.subr.bf16.mxu1 %v7902_v46  ;;  %v823_v45 = vld [vmem:[#allocation8 + $0x1520] sm:$0xff]  ;;  %v820_v46 = vld [vmem:[#allocation8 + $0x1508] sm:$0xff] }
 0x19f   :  { %v7956_v51 = vcombine.high %v819_v44, %v823_v45  ;;  %v7955_v59 = vcombine.low %v819_v44, %v823_v45  ;;  %v7957_v60 = vcombine.low %v820_v46, %v824_v48  ;;  %v867_v39 = vld [vmem:[#allocation8 + $0x1680] sm:$0xff] }
 0x1a1   :  { %4988 = vmatpush1.bf16.msra.mxu0 %v7899_v52  ;;  %5234 = vmatpush1.bf16.msra.mxu1 %v7901_v53  ;;  %v7958_v52 = vcombine.high %v820_v46, %v824_v48  ;;  %v827_v53 = vld [vmem:[#allocation8 + $0x1540] sm:$0xff] }
 0x1a2   :  { %4989 = vmatprep.subr.bf16.mxu0 %v7908_v54  ;;  %5235 = vmatprep.subr.bf16.mxu1 %v7910_v56  ;;  %v831_v54 = vld [vmem:[#allocation8 + $0x1560] sm:$0xff]  ;;  %v828_v56 = vld [vmem:[#allocation8 + $0x1548] sm:$0xff] }
 0x1a3   :  { %v7964_v61 = vcombine.high %v827_v53, %v831_v54  ;;  %v7963_v4 = vcombine.low %v827_v53, %v831_v54  ;;  %v7965_v5 = vcombine.low %v828_v56, %v832_v57  ;;  %v875_v48 = vld [vmem:[#allocation8 + $0x16c0] sm:$0xff] }
 0x1a5   :  { %4990 = vmatpush1.bf16.msra.mxu0 %v7907_v62  ;;  %5236 = vmatpush1.bf16.msra.mxu1 %v7909_v63  ;;  %v7966_v62 = vcombine.high %v828_v56, %v832_v57  ;;  %v835_v63 = vld [vmem:[#allocation8 + $0x1580] sm:$0xff] }
 0x1a6   :  { %4991 = vmatprep.subr.bf16.mxu0 %v7916_v0  ;;  %5237 = vmatprep.subr.bf16.mxu1 %v7918_v1  ;;  %v839_v0 = vld [vmem:[#allocation8 + $0x15a0] sm:$0xff]  ;;  %v836_v1 = vld [vmem:[#allocation8 + $0x1588] sm:$0xff] }
 0x1a7   :  { %v7972_v6 = vcombine.high %v835_v63, %v839_v0  ;;  %v7971_v12 = vcombine.low %v835_v63, %v839_v0  ;;  %v7973_v14 = vcombine.low %v836_v1, %v840_v3  ;;  %v883_v57 = vld [vmem:[#allocation8 + $0x1700] sm:$0xff] }
 0x1a9   :  { %4992 = vmatpush1.bf16.msra.mxu0 %v7915_v7  ;;  %5238 = vmatpush1.bf16.msra.mxu1 %v7917_v9  ;;  %v7974_v7 = vcombine.high %v836_v1, %v840_v3  ;;  %v847_v9 = vld [vmem:[#allocation8 + $0x15e0] sm:$0xff] }
 0x1aa   :  { %5002 = vmatprep.subr.bf16.mxu0 %v7924_v10  ;;  %5248 = vmatprep.subr.bf16.mxu1 %v7926_v11  ;;  %v844_v10 = vld [vmem:[#allocation8 + $0x15c8] sm:$0xff]  ;;  %v7980_v16 = vcombine.high %v843_v8, %v847_v9  ;;  %v891_v3 = vld [vmem:[#allocation8 + $0x1740] sm:$0xff] }
 0x1ab   :  { %v848_v11 = vld [vmem:[#allocation8 + $0x15e8] sm:$0xff] }
 0x1ac   :  { %4994 = vmatmul.mubr.bf16.vlgmr.msra.gmra.mrb[0].mxu0 %v8534_v15  ;;  %5240 = vmatmul.mubr.bf16.vlgmr.msra.gmra.mrb[0].mxu1 %v8534_v15  ;;  %v7982_v17 = vcombine.high %v844_v10, %v848_v11  ;;  %v7981_v25 = vcombine.low %v844_v10, %v848_v11  ;;  %v899_v11 = vld [vmem:[#allocation8 + $0x1780] sm:$0xff] }
 0x1ad   :  { %5003 = vmatpush1.bf16.msra.mxu0 %v7923_v19  ;;  %5249 = vmatpush1.bf16.msra.mxu1 %v7925_v20  ;;  %v855_v19 = vld [vmem:[#allocation8 + $0x1620] sm:$0xff]  ;;  %v852_v20 = vld [vmem:[#allocation8 + $0x1608] sm:$0xff] }
 0x1ae   :  { %5004 = vmatprep.subr.bf16.mxu0 %v7932_v21  ;;  %5250 = vmatprep.subr.bf16.mxu1 %v7934_v24  ;;  %v856_v21 = vld [vmem:[#allocation8 + $0x1628] sm:$0xff]  ;;  %v7979_v24 = vcombine.low %v843_v8, %v847_v9  ;;  %v7988_v26 = vcombine.high %v851_v18, %v855_v19 }
 0x1af   :  { %5034 = vmatprep.mubr.bf16.mxu0 %v8536_v27  ;;  %5280 = vmatprep.mubr.bf16.mxu1 %v8536_v27  ;;  %v7990_v28 = vcombine.high %v852_v20, %v856_v21  ;;  %v7989_v35 = vcombine.low %v852_v20, %v856_v21  ;;  %v907_v21 = vld [vmem:[#allocation8 + $0x17c0] sm:$0xff] }
 0x1b1   :  { %5005 = vmatpush1.bf16.msra.mxu0 %v7931_v30  ;;  %5251 = vmatpush1.bf16.msra.mxu1 %v7933_v31  ;;  %v863_v30 = vld [vmem:[#allocation8 + $0x1660] sm:$0xff]  ;;  %v860_v31 = vld [vmem:[#allocation8 + $0x1648] sm:$0xff] }
 0x1b2   :  { %5006 = vmatprep.subr.bf16.mxu0 %v7940_v32  ;;  %5252 = vmatprep.subr.bf16.mxu1 %v7942_v34  ;;  %v864_v32 = vld [vmem:[#allocation8 + $0x1668] sm:$0xff]  ;;  %v7987_v34 = vcombine.low %v851_v18, %v855_v19  ;;  %v7996_v36 = vcombine.high %v859_v29, %v863_v30 }
 0x1b3   :  { %v7998_v38 = vcombine.high %v860_v31, %v864_v32  ;;  %v7997_v44 = vcombine.low %v860_v31, %v864_v32  ;;  %v149_v32 = vld [vmem:[#allocation8 + $0x10] sm:$0xff] }
 0x1b5   :  { %5007 = vmatpush1.bf16.msra.mxu0 %v7939_v40  ;;  %5253 = vmatpush1.bf16.msra.mxu1 %v7941_v41  ;;  %v871_v40 = vld [vmem:[#allocation8 + $0x16a0] sm:$0xff]  ;;  %v868_v41 = vld [vmem:[#allocation8 + $0x1688] sm:$0xff] }
 0x1b6   :  { %5008 = vmatprep.subr.bf16.mxu0 %v7948_v42  ;;  %5254 = vmatprep.subr.bf16.mxu1 %v7950_v43  ;;  %v872_v42 = vld [vmem:[#allocation8 + $0x16a8] sm:$0xff]  ;;  %v7995_v43 = vcombine.low %v859_v29, %v863_v30  ;;  %v8004_v45 = vcombine.high %v867_v39, %v871_v40 }
 0x1b7   :  { %v8006_v46 = vcombine.high %v868_v41, %v872_v42  ;;  %v8005_v53 = vcombine.low %v868_v41, %v872_v42 }
 0x1b9   :  { %5009 = vmatpush1.bf16.msra.mxu0 %v7947_v49  ;;  %5255 = vmatpush1.bf16.msra.mxu1 %v7949_v50  ;;  %v879_v49 = vld [vmem:[#allocation8 + $0x16e0] sm:$0xff]  ;;  %v876_v50 = vld [vmem:[#allocation8 + $0x16c8] sm:$0xff] }
 0x1ba   :  { %5010 = vmatprep.subr.bf16.mxu0 %v7956_v51  ;;  %5256 = vmatprep.subr.bf16.mxu1 %v7958_v52  ;;  %v880_v51 = vld [vmem:[#allocation8 + $0x16e8] sm:$0xff]  ;;  %v8003_v52 = vcombine.low %v867_v39, %v871_v40  ;;  %v8012_v54 = vcombine.high %v875_v48, %v879_v49  ;;  %v133_v39 = vld [vmem:[#allocation5 + $0x50] sm:$0xff] }
 0x1bb   :  { %v8014_v56 = vcombine.high %v876_v50, %v880_v51  ;;  %v8013_v63 = vcombine.low %v876_v50, %v880_v51 }
 0x1bd   :  { %5011 = vmatpush1.bf16.msra.mxu0 %v7955_v59  ;;  %5257 = vmatpush1.bf16.msra.mxu1 %v7957_v60  ;;  %v887_v59 = vld [vmem:[#allocation8 + $0x1720] sm:$0xff]  ;;  %v884_v60 = vld [vmem:[#allocation8 + $0x1708] sm:$0xff] }
 0x1be   :  { %5012 = vmatprep.subr.bf16.mxu0 %v7964_v61  ;;  %5258 = vmatprep.subr.bf16.mxu1 %v7966_v62  ;;  %v888_v61 = vld [vmem:[#allocation8 + $0x1728] sm:$0xff]  ;;  %v8011_v62 = vcombine.low %v875_v48, %v879_v49  ;;  %v8020_v0 = vcombine.high %v883_v57, %v887_v59  ;;  %v162_v48 = vld [vmem:[#allocation8 + $0x78] sm:$0xff] }
 0x1bf   :  { %v8022_v1 = vcombine.high %v884_v60, %v888_v61  ;;  %v8021_v8 = vcombine.low %v884_v60, %v888_v61 }
 0x1c1   :  { %5013 = vmatpush1.bf16.msra.mxu0 %v7963_v4  ;;  %5259 = vmatpush1.bf16.msra.mxu1 %v7965_v5  ;;  %v895_v4 = vld [vmem:[#allocation8 + $0x1760] sm:$0xff]  ;;  %v892_v5 = vld [vmem:[#allocation8 + $0x1748] sm:$0xff] }
 0x1c2   :  { %5014 = vmatprep.subr.bf16.mxu0 %v7972_v6  ;;  %5260 = vmatprep.subr.bf16.mxu1 %v7974_v7  ;;  %v896_v6 = vld [vmem:[#allocation8 + $0x1768] sm:$0xff]  ;;  %v8019_v7 = vcombine.low %v883_v57, %v887_v59  ;;  %v8028_v9 = vcombine.high %v891_v3, %v895_v4  ;;  %v170_v57 = vld [vmem:[#allocation8 + $0xb8] sm:$0xff] }
 0x1c3   :  { %v8030_v10 = vcombine.high %v892_v5, %v896_v6  ;;  %v8029_v18 = vcombine.low %v892_v5, %v896_v6 }
 0x1c5   :  { %5015 = vmatpush1.bf16.msra.mxu0 %v7971_v12  ;;  %5261 = vmatpush1.bf16.msra.mxu1 %v7973_v14  ;;  %v903_v12 = vld [vmem:[#allocation8 + $0x17a0] sm:$0xff]  ;;  %v900_v14 = vld [vmem:[#allocation8 + $0x1788] sm:$0xff] }
 0x1c6   :  { %5016 = vmatprep.subr.bf16.mxu0 %v7980_v16  ;;  %5262 = vmatprep.subr.bf16.mxu1 %v7982_v17  ;;  %v904_v16 = vld [vmem:[#allocation8 + $0x17a8] sm:$0xff]  ;;  %v8027_v17 = vcombine.low %v891_v3, %v895_v4  ;;  %v8036_v19 = vcombine.high %v899_v11, %v903_v12  ;;  %v178_v3 = vld [vmem:[#allocation8 + $0xf8] sm:$0xff] }
 0x1c7   :  { %v8038_v20 = vcombine.high %v900_v14, %v904_v16  ;;  %v8037_v29 = vcombine.low %v900_v14, %v904_v16 }
 0x1c9   :  { %5017 = vmatpush1.bf16.msra.mxu0 %v7979_v24  ;;  %5263 = vmatpush1.bf16.msra.mxu1 %v7981_v25  ;;  %v911_v24 = vld [vmem:[#allocation8 + $0x17e0] sm:$0xff]  ;;  %v908_v25 = vld [vmem:[#allocation8 + $0x17c8] sm:$0xff] }
 0x1ca   :  { %5018 = vmatprep.subr.bf16.mxu0 %v7988_v26  ;;  %5264 = vmatprep.subr.bf16.mxu1 %v7990_v28  ;;  %v912_v26 = vld [vmem:[#allocation8 + $0x17e8] sm:$0xff]  ;;  %v8035_v28 = vcombine.low %v899_v11, %v903_v12  ;;  %v8044_v30 = vcombine.high %v907_v21, %v911_v24  ;;  %v186_v11 = vld [vmem:[#allocation8 + $0x138] sm:$0xff] }
 0x1cb   :  { %v8046_v31 = vcombine.high %v908_v25, %v912_v26  ;;  %v8045_v40 = vcombine.low %v908_v25, %v912_v26 }
 0x1cd   :  { %5019 = vmatpush1.bf16.msra.mxu0 %v7987_v34  ;;  %5265 = vmatpush1.bf16.msra.mxu1 %v7989_v35  ;;  %v153_v34 = vld [vmem:[#allocation8 + $0x30] sm:$0xff]  ;;  %v150_v35 = vld [vmem:[#allocation8 + $0x18] sm:$0xff] }
 0x1ce   :  { %5020 = vmatprep.subr.bf16.mxu0 %v7996_v36  ;;  %5266 = vmatprep.subr.bf16.mxu1 %v7998_v38  ;;  %v154_v36 = vld [vmem:[#allocation8 + $0x38] sm:$0xff]  ;;  %v8043_v38 = vcombine.low %v907_v21, %v911_v24  ;;  %v7288_v41 = vcombine.high %v149_v32, %v153_v34  ;;  %v7287_v49 = vcombine.low %v149_v32, %v153_v34 }
 0x1cf   :  { %v7290_v42 = vcombine.high %v150_v35, %v154_v36  ;;  %v7289_v50 = vcombine.low %v150_v35, %v154_v36 }
 0x1d1   :  { %5021 = vmatpush1.bf16.msra.mxu0 %v7995_v43  ;;  %5267 = vmatpush1.bf16.msra.mxu1 %v7997_v44  ;;  %v157_v43 = vld [vmem:[#allocation8 + $0x50] sm:$0xff] }
 0x1d2   :  { %5022 = vmatprep.subr.bf16.mxu0 %v8004_v45  ;;  %5268 = vmatprep.subr.bf16.mxu1 %v8006_v46  ;;  %v161_v44 = vld [vmem:[#allocation8 + $0x70] sm:$0xff]  ;;  %v8542_v45 = vpack.c.bf16 %v133_v39, %v133_v39  ;;  %v158_v46 = vld [vmem:[#allocation8 + $0x58] sm:$0xff] }
 0x1d3   :  { %v7296_v51 = vcombine.high %v157_v43, %v161_v44  ;;  %v7295_v59 = vcombine.low %v157_v43, %v161_v44  ;;  %v7297_v60 = vcombine.low %v158_v46, %v162_v48  ;;  %v209_v39 = vld [vmem:[#allocation8 + $0x1f0] sm:$0xff] }
 0x1d5   :  { %5023 = vmatpush1.bf16.msra.mxu0 %v8003_v52  ;;  %5269 = vmatpush1.bf16.msra.mxu1 %v8005_v53  ;;  %v7298_v52 = vcombine.high %v158_v46, %v162_v48  ;;  %v165_v53 = vld [vmem:[#allocation8 + $0x90] sm:$0xff] }
 0x1d6   :  { %5024 = vmatprep.subr.bf16.mxu0 %v8012_v54  ;;  %5270 = vmatprep.subr.bf16.mxu1 %v8014_v56  ;;  %v169_v54 = vld [vmem:[#allocation8 + $0xb0] sm:$0xff]  ;;  %v166_v56 = vld [vmem:[#allocation8 + $0x98] sm:$0xff] }
 0x1d7   :  { %v7304_v61 = vcombine.high %v165_v53, %v169_v54  ;;  %v7303_v4 = vcombine.low %v165_v53, %v169_v54  ;;  %v7305_v5 = vcombine.low %v166_v56, %v170_v57  ;;  %v213_v48 = vld [vmem:[#allocation8 + $0x210] sm:$0xff] }
 0x1d9   :  { %5025 = vmatpush1.bf16.msra.mxu0 %v8011_v62  ;;  %5271 = vmatpush1.bf16.msra.mxu1 %v8013_v63  ;;  %v7306_v62 = vcombine.high %v166_v56, %v170_v57  ;;  %v173_v63 = vld [vmem:[#allocation8 + $0xd0] sm:$0xff] }
 0x1da   :  { %5026 = vmatprep.subr.bf16.mxu0 %v8020_v0  ;;  %5272 = vmatprep.subr.bf16.mxu1 %v8022_v1  ;;  %v177_v0 = vld [vmem:[#allocation8 + $0xf0] sm:$0xff]  ;;  %v174_v1 = vld [vmem:[#allocation8 + $0xd8] sm:$0xff] }
 0x1db   :  { %v7312_v6 = vcombine.high %v173_v63, %v177_v0  ;;  %v7311_v12 = vcombine.low %v173_v63, %v177_v0  ;;  %v7313_v14 = vcombine.low %v174_v1, %v178_v3  ;;  %v221_v57 = vld [vmem:[#allocation8 + $0x250] sm:$0xff] }
 0x1dd   :  { %5027 = vmatpush1.bf16.msra.mxu0 %v8019_v7  ;;  %5273 = vmatpush1.bf16.msra.mxu1 %v8021_v8  ;;  %v7314_v7 = vcombine.high %v174_v1, %v178_v3  ;;  %v181_v8 = vld [vmem:[#allocation8 + $0x110] sm:$0xff] }
 0x1de   :  { %5028 = vmatprep.subr.bf16.mxu0 %v8028_v9  ;;  %5274 = vmatprep.subr.bf16.mxu1 %v8030_v10  ;;  %v185_v9 = vld [vmem:[#allocation8 + $0x130] sm:$0xff]  ;;  %v182_v10 = vld [vmem:[#allocation8 + $0x118] sm:$0xff] }
 0x1df   :  { %v7320_v16 = vcombine.high %v181_v8, %v185_v9  ;;  %v7319_v21 = vcombine.low %v181_v8, %v185_v9  ;;  %v7321_v24 = vcombine.low %v182_v10, %v186_v11  ;;  %v229_v3 = vld [vmem:[#allocation8 + $0x290] sm:$0xff] }
 0x1e1   :  { %5029 = vmatpush1.bf16.msra.mxu0 %v8027_v17  ;;  %5275 = vmatpush1.bf16.msra.mxu1 %v8029_v18  ;;  %v189_v17 = vld [vmem:[#allocation8 + $0x150] sm:$0xff] }
 0x1e2   :  { %5030 = vmatprep.subr.bf16.mxu0 %v8036_v19  ;;  %5276 = vmatprep.subr.bf16.mxu1 %v8038_v20  ;;  %v193_v18 = vld [vmem:[#allocation8 + $0x170] sm:$0xff]  ;;  %v190_v19 = vld [vmem:[#allocation8 + $0x158] sm:$0xff] }
 0x1e3   :  { %v194_v20 = vld [vmem:[#allocation8 + $0x178] sm:$0xff]  ;;  %v7328_v25 = vcombine.high %v189_v17, %v193_v18  ;;  %v7327_v32 = vcombine.low %v189_v17, %v193_v18 }
 0x1e4   :  { %v7330_v26 = vcombine.high %v190_v19, %v194_v20  ;;  %v7329_v34 = vcombine.low %v190_v19, %v194_v20  ;;  %v245_v20 = vld [vmem:[#allocation8 + $0x310] sm:$0xff] }
 0x1e5   :  { %5031 = vmatpush1.bf16.msra.mxu0 %v8035_v28  ;;  %5277 = vmatpush1.bf16.msra.mxu1 %v8037_v29  ;;  %v197_v28 = vld [vmem:[#allocation8 + $0x190] sm:$0xff] }
 0x1e6   :  { %5032 = vmatprep.subr.bf16.mxu0 %v8044_v30  ;;  %5278 = vmatprep.subr.bf16.mxu1 %v8046_v31  ;;  %v201_v29 = vld [vmem:[#allocation8 + $0x1b0] sm:$0xff]  ;;  %v198_v30 = vld [vmem:[#allocation8 + $0x198] sm:$0xff] }
 0x1e7   :  { %v202_v31 = vld [vmem:[#allocation8 + $0x1b8] sm:$0xff]  ;;  %v7336_v35 = vcombine.high %v197_v28, %v201_v29 }
 0x1e8   :  { %v7338_v36 = vcombine.high %v198_v30, %v202_v31  ;;  %v7337_v43 = vcombine.low %v198_v30, %v202_v31  ;;  %v253_v31 = vld [vmem:[#allocation8 + $0x350] sm:$0xff] }
 0x1e9   :  { %5033 = vmatpush1.bf16.msra.mxu0 %v8043_v38  ;;  %5279 = vmatpush1.bf16.msra.mxu1 %v8045_v40  ;;  %v205_v38 = vld [vmem:[#allocation8 + $0x1d0] sm:$0xff]  ;;  %v206_v40 = vld [vmem:[#allocation8 + $0x1d8] sm:$0xff] }
 0x1ea   :  { %5289 = vmatprep.subr.bf16.mxu0 %v7288_v41  ;;  %5535 = vmatprep.subr.bf16.mxu1 %v7290_v42  ;;  %v210_v41 = vld [vmem:[#allocation8 + $0x1f8] sm:$0xff]  ;;  %v7335_v42 = vcombine.low %v197_v28, %v201_v29  ;;  %v7344_v44 = vcombine.high %v205_v38, %v209_v39 }
 0x1eb   :  { %v7346_v46 = vcombine.high %v206_v40, %v210_v41  ;;  %v7345_v53 = vcombine.low %v206_v40, %v210_v41  ;;  %v261_v41 = vld [vmem:[#allocation8 + $0x390] sm:$0xff] }
 0x1ec   :  { %5035 = vmatmul.mubr.bf16.vlgmr.msra.gmra.mrb[0].mxu0 %v8542_v45  ;;  %5281 = vmatmul.mubr.bf16.vlgmr.msra.gmra.mrb[0].mxu1 %v8542_v45 }
 0x1ed   :  { %5290 = vmatpush1.bf16.msra.mxu0 %v7287_v49  ;;  %5536 = vmatpush1.bf16.msra.mxu1 %v7289_v50  ;;  %v217_v49 = vld [vmem:[#allocation8 + $0x230] sm:$0xff]  ;;  %v214_v50 = vld [vmem:[#allocation8 + $0x218] sm:$0xff] }
 0x1ee   :  { %5291 = vmatprep.subr.bf16.mxu0 %v7296_v51  ;;  %5537 = vmatprep.subr.bf16.mxu1 %v7298_v52  ;;  %v218_v51 = vld [vmem:[#allocation8 + $0x238] sm:$0xff]  ;;  %v7343_v52 = vcombine.low %v205_v38, %v209_v39  ;;  %v7352_v54 = vcombine.high %v213_v48, %v217_v49 }
 0x1ef   :  { %5321 = vmatprep.mubr.bf16.mxu0 %v8498_v58  ;;  %5567 = vmatprep.mubr.bf16.mxu1 %v8498_v58  ;;  %v7322_v58 = vcombine.high %v182_v10, %v186_v11  ;;  %v7354_v56 = vcombine.high %v214_v50, %v218_v51  ;;  %v7353_v63 = vcombine.low %v214_v50, %v218_v51  ;;  %v237_v11 = vld [vmem:[#allocation8 + $0x2d0] sm:$0xff] }
 0x1f0   :  { %v269_v51 = vld [vmem:[#allocation8 + $0x3d0] sm:$0xff] }
 0x1f1   :  { %5292 = vmatpush1.bf16.msra.mxu0 %v7295_v59  ;;  %5538 = vmatpush1.bf16.msra.mxu1 %v7297_v60  ;;  %v225_v59 = vld [vmem:[#allocation8 + $0x270] sm:$0xff]  ;;  %v222_v60 = vld [vmem:[#allocation8 + $0x258] sm:$0xff] }
 0x1f2   :  { %5293 = vmatprep.subr.bf16.mxu0 %v7304_v61  ;;  %5539 = vmatprep.subr.bf16.mxu1 %v7306_v62  ;;  %v226_v61 = vld [vmem:[#allocation8 + $0x278] sm:$0xff]  ;;  %v7351_v62 = vcombine.low %v213_v48, %v217_v49  ;;  %v7360_v0 = vcombine.high %v221_v57, %v225_v59 }
 0x1f3   :  { %v7362_v1 = vcombine.high %v222_v60, %v226_v61  ;;  %v7361_v8 = vcombine.low %v222_v60, %v226_v61  ;;  %v277_v61 = vld [vmem:[#allocation8 + $0x410] sm:$0xff] }
 0x1f5   :  { %5294 = vmatpush1.bf16.msra.mxu0 %v7303_v4  ;;  %5540 = vmatpush1.bf16.msra.mxu1 %v7305_v5  ;;  %v233_v4 = vld [vmem:[#allocation8 + $0x2b0] sm:$0xff]  ;;  %v230_v5 = vld [vmem:[#allocation8 + $0x298] sm:$0xff] }
 0x1f6   :  { %5295 = vmatprep.subr.bf16.mxu0 %v7312_v6  ;;  %5541 = vmatprep.subr.bf16.mxu1 %v7314_v7  ;;  %v234_v6 = vld [vmem:[#allocation8 + $0x2b8] sm:$0xff]  ;;  %v7359_v7 = vcombine.low %v221_v57, %v225_v59  ;;  %v7368_v9 = vcombine.high %v229_v3, %v233_v4 }
 0x1f7   :  { %v7370_v10 = vcombine.high %v230_v5, %v234_v6  ;;  %v7369_v17 = vcombine.low %v230_v5, %v234_v6  ;;  %v285_v6 = vld [vmem:[#allocation8 + $0x450] sm:$0xff] }
 0x1f9   :  { %5296 = vmatpush1.bf16.msra.mxu0 %v7311_v12  ;;  %5542 = vmatpush1.bf16.msra.mxu1 %v7313_v14  ;;  %v241_v12 = vld [vmem:[#allocation8 + $0x2f0] sm:$0xff]  ;;  %v238_v14 = vld [vmem:[#allocation8 + $0x2d8] sm:$0xff] }
 0x1fa   :  { %5297 = vmatprep.subr.bf16.mxu0 %v7320_v16  ;;  %5543 = vmatprep.subr.bf16.mxu1 %v7322_v58  ;;  %v242_v16 = vld [vmem:[#allocation8 + $0x2f8] sm:$0xff]  ;;  %v7367_v58 = vcombine.low %v229_v3, %v233_v4  ;;  %v7376_v18 = vcombine.high %v237_v11, %v241_v12 }
 0x1fb   :  { %v7378_v19 = vcombine.high %v238_v14, %v242_v16  ;;  %v7377_v28 = vcombine.low %v238_v14, %v242_v16  ;;  %v293_v16 = vld [vmem:[#allocation8 + $0x490] sm:$0xff] }
 0x1fd   :  { %5298 = vmatpush1.bf16.msra.mxu0 %v7319_v21  ;;  %5544 = vmatpush1.bf16.msra.mxu1 %v7321_v24  ;;  %v249_v21 = vld [vmem:[#allocation8 + $0x330] sm:$0xff]  ;;  %v246_v24 = vld [vmem:[#allocation8 + $0x318] sm:$0xff] }
 0x1fe   :  { %5299 = vmatprep.subr.bf16.mxu0 %v7328_v25  ;;  %5545 = vmatprep.subr.bf16.mxu1 %v7330_v26  ;;  %v250_v25 = vld [vmem:[#allocation8 + $0x338] sm:$0xff]  ;;  %v7375_v26 = vcombine.low %v237_v11, %v241_v12  ;;  %v7384_v29 = vcombine.high %v245_v20, %v249_v21 }
 0x1ff   :  { %v7386_v30 = vcombine.high %v246_v24, %v250_v25  ;;  %v7385_v38 = vcombine.low %v246_v24, %v250_v25  ;;  %v301_v25 = vld [vmem:[#allocation8 + $0x4d0] sm:$0xff] }
 0x201   :  { %5300 = vmatpush1.bf16.msra.mxu0 %v7327_v32  ;;  %5546 = vmatpush1.bf16.msra.mxu1 %v7329_v34  ;;  %v257_v32 = vld [vmem:[#allocation8 + $0x370] sm:$0xff]  ;;  %v254_v34 = vld [vmem:[#allocation8 + $0x358] sm:$0xff] }
 0x202   :  { %5301 = vmatprep.subr.bf16.mxu0 %v7336_v35  ;;  %5547 = vmatprep.subr.bf16.mxu1 %v7338_v36  ;;  %v258_v35 = vld [vmem:[#allocation8 + $0x378] sm:$0xff]  ;;  %v7383_v36 = vcombine.low %v245_v20, %v249_v21  ;;  %v7392_v39 = vcombine.high %v253_v31, %v257_v32 }
 0x203   :  { %v7394_v40 = vcombine.high %v254_v34, %v258_v35  ;;  %v7393_v48 = vcombine.low %v254_v34, %v258_v35  ;;  %v309_v34 = vld [vmem:[#allocation8 + $0x510] sm:$0xff] }
 0x204   :  { %v313_v35 = vld [vmem:[#allocation8 + $0x530] sm:$0xff] }
 0x205   :  { %5302 = vmatpush1.bf16.msra.mxu0 %v7335_v42  ;;  %5548 = vmatpush1.bf16.msra.mxu1 %v7337_v43  ;;  %v265_v42 = vld [vmem:[#allocation8 + $0x3b0] sm:$0xff]  ;;  %v262_v43 = vld [vmem:[#allocation8 + $0x398] sm:$0xff] }
 0x206   :  { %5303 = vmatprep.subr.bf16.mxu0 %v7344_v44  ;;  %5549 = vmatprep.subr.bf16.mxu1 %v7346_v46  ;;  %v266_v44 = vld [vmem:[#allocation8 + $0x3b8] sm:$0xff]  ;;  %v7391_v46 = vcombine.low %v253_v31, %v257_v32  ;;  %v7400_v49 = vcombine.high %v261_v41, %v265_v42 }
 0x207   :  { %v7402_v50 = vcombine.high %v262_v43, %v266_v44  ;;  %v7401_v57 = vcombine.low %v262_v43, %v266_v44  ;;  %v321_v43 = vld [vmem:[#allocation8 + $0x570] sm:$0xff]  ;;  %v318_v44 = vld [vmem:[#allocation8 + $0x558] sm:$0xff] }
 0x209   :  { %5304 = vmatpush1.bf16.msra.mxu0 %v7343_v52  ;;  %5550 = vmatpush1.bf16.msra.mxu1 %v7345_v53  ;;  %v273_v52 = vld [vmem:[#allocation8 + $0x3f0] sm:$0xff]  ;;  %v270_v53 = vld [vmem:[#allocation8 + $0x3d8] sm:$0xff] }
 0x20a   :  { %5305 = vmatprep.subr.bf16.mxu0 %v7352_v54  ;;  %5551 = vmatprep.subr.bf16.mxu1 %v7354_v56  ;;  %v274_v54 = vld [vmem:[#allocation8 + $0x3f8] sm:$0xff]  ;;  %v7399_v56 = vcombine.low %v261_v41, %v265_v42  ;;  %v7408_v59 = vcombine.high %v269_v51, %v273_v52  ;;  %v7448_v41 = vcombine.high %v309_v34, %v313_v35  ;;  %v317_v42 = vld [vmem:[#allocation8 + $0x550] sm:$0xff] }
 0x20b   :  { %v7410_v60 = vcombine.high %v270_v53, %v274_v54  ;;  %v7409_v3 = vcombine.low %v270_v53, %v274_v54  ;;  %v329_v53 = vld [vmem:[#allocation8 + $0x5b0] sm:$0xff]  ;;  %v326_v54 = vld [vmem:[#allocation8 + $0x598] sm:$0xff] }
 0x20d   :  { %5306 = vmatpush1.bf16.msra.mxu0 %v7351_v62  ;;  %5552 = vmatpush1.bf16.msra.mxu1 %v7353_v63  ;;  %v281_v62 = vld [vmem:[#allocation8 + $0x430] sm:$0xff]  ;;  %v278_v63 = vld [vmem:[#allocation8 + $0x418] sm:$0xff] }
 0x20e   :  { %5307 = vmatprep.subr.bf16.mxu0 %v7360_v0  ;;  %5553 = vmatprep.subr.bf16.mxu1 %v7362_v1  ;;  %v282_v0 = vld [vmem:[#allocation8 + $0x438] sm:$0xff]  ;;  %v7407_v1 = vcombine.low %v269_v51, %v273_v52  ;;  %v7416_v4 = vcombine.high %v277_v61, %v281_v62  ;;  %v325_v52 = vld [vmem:[#allocation8 + $0x590] sm:$0xff] }
 0x20f   :  { %v7418_v5 = vcombine.high %v278_v63, %v282_v0  ;;  %v7417_v11 = vcombine.low %v278_v63, %v282_v0  ;;  %v337_v63 = vld [vmem:[#allocation8 + $0x5f0] sm:$0xff]  ;;  %v334_v0 = vld [vmem:[#allocation8 + $0x5d8] sm:$0xff] }
 0x211   :  { %5308 = vmatpush1.bf16.msra.mxu0 %v7359_v7  ;;  %5554 = vmatpush1.bf16.msra.mxu1 %v7361_v8  ;;  %v289_v7 = vld [vmem:[#allocation8 + $0x470] sm:$0xff]  ;;  %v286_v8 = vld [vmem:[#allocation8 + $0x458] sm:$0xff] }
 0x212   :  { %5309 = vmatprep.subr.bf16.mxu0 %v7368_v9  ;;  %5555 = vmatprep.subr.bf16.mxu1 %v7370_v10  ;;  %v290_v9 = vld [vmem:[#allocation8 + $0x478] sm:$0xff]  ;;  %v7415_v10 = vcombine.low %v277_v61, %v281_v62  ;;  %v7424_v12 = vcombine.high %v285_v6, %v289_v7  ;;  %v333_v62 = vld [vmem:[#allocation8 + $0x5d0] sm:$0xff] }
 0x213   :  { %v7426_v14 = vcombine.high %v286_v8, %v290_v9  ;;  %v7425_v20 = vcombine.low %v286_v8, %v290_v9  ;;  %v345_v8 = vld [vmem:[#allocation8 + $0x630] sm:$0xff]  ;;  %v342_v9 = vld [vmem:[#allocation8 + $0x618] sm:$0xff] }
 0x215   :  { %5310 = vmatpush1.bf16.msra.mxu0 %v7367_v58  ;;  %5556 = vmatpush1.bf16.msra.mxu1 %v7369_v17  ;;  %v297_v58 = vld [vmem:[#allocation8 + $0x4b0] sm:$0xff]  ;;  %v294_v17 = vld [vmem:[#allocation8 + $0x498] sm:$0xff] }
 0x216   :  { %5311 = vmatprep.subr.bf16.mxu0 %v7376_v18  ;;  %5557 = vmatprep.subr.bf16.mxu1 %v7378_v19  ;;  %v298_v18 = vld [vmem:[#allocation8 + $0x4b8] sm:$0xff]  ;;  %v7423_v19 = vcombine.low %v285_v6, %v289_v7  ;;  %v7432_v21 = vcombine.high %v293_v16, %v297_v58  ;;  %v341_v7 = vld [vmem:[#allocation8 + $0x610] sm:$0xff] }
 0x217   :  { %v7434_v24 = vcombine.high %v294_v17, %v298_v18 }
 0x219   :  { %5312 = vmatpush1.bf16.msra.mxu0 %v7375_v26  ;;  %5558 = vmatpush1.bf16.msra.mxu1 %v7377_v28  ;;  %v305_v26 = vld [vmem:[#allocation8 + $0x4f0] sm:$0xff]  ;;  %v302_v28 = vld [vmem:[#allocation8 + $0x4d8] sm:$0xff] }
 0x21a   :  { %5313 = vmatprep.subr.bf16.mxu0 %v7384_v29  ;;  %5559 = vmatprep.subr.bf16.mxu1 %v7386_v30  ;;  %v306_v29 = vld [vmem:[#allocation8 + $0x4f8] sm:$0xff]  ;;  %v7431_v30 = vcombine.low %v293_v16, %v297_v58  ;;  %v7440_v31 = vcombine.high %v301_v25, %v305_v26  ;;  %v349_v58 = vld [vmem:[#allocation8 + $0x650] sm:$0xff] }
 0x21b   :  { %v7442_v32 = vcombine.high %v302_v28, %v306_v29 }
 0x21d   :  { %5314 = vmatpush1.bf16.msra.mxu0 %v7383_v36  ;;  %5560 = vmatpush1.bf16.msra.mxu1 %v7385_v38  ;;  %v310_v36 = vld [vmem:[#allocation8 + $0x518] sm:$0xff] }
 0x21e   :  { %5315 = vmatprep.subr.bf16.mxu0 %v7392_v39  ;;  %5561 = vmatprep.subr.bf16.mxu1 %v7394_v40  ;;  %v314_v38 = vld [vmem:[#allocation8 + $0x538] sm:$0xff]  ;;  %v7439_v39 = vcombine.low %v301_v25, %v305_v26  ;;  %v7441_v40 = vcombine.low %v302_v28, %v306_v29  ;;  %v357_v26 = vld [vmem:[#allocation8 + $0x690] sm:$0xff] }
 0x21f   :  { %v361_v28 = vld [vmem:[#allocation8 + $0x6b0] sm:$0xff]  ;;  %v358_v29 = vld [vmem:[#allocation8 + $0x698] sm:$0xff] }
 0x221   :  { %5316 = vmatpush1.bf16.msra.mxu0 %v7391_v46  ;;  %5562 = vmatpush1.bf16.msra.mxu1 %v7393_v48  ;;  %v322_v46 = vld [vmem:[#allocation8 + $0x578] sm:$0xff]  ;;  %v7447_v48 = vcombine.low %v309_v34, %v313_v35  ;;  %v365_v35 = vld [vmem:[#allocation8 + $0x6d0] sm:$0xff] }
 0x222   :  { %5317 = vmatprep.subr.bf16.mxu0 %v7400_v49  ;;  %5563 = vmatprep.subr.bf16.mxu1 %v7402_v50  ;;  %v7449_v49 = vcombine.low %v310_v36, %v314_v38  ;;  %v7456_v50 = vcombine.high %v317_v42, %v321_v43  ;;  %v7458_v51 = vcombine.high %v318_v44, %v322_v46 }
 0x225   :  { %5318 = vmatpush1.bf16.msra.mxu0 %v7399_v56  ;;  %5564 = vmatpush1.bf16.msra.mxu1 %v7401_v57  ;;  %v330_v56 = vld [vmem:[#allocation8 + $0x5b8] sm:$0xff]  ;;  %v7455_v57 = vcombine.low %v317_v42, %v321_v43  ;;  %v373_v43 = vld [vmem:[#allocation8 + $0x710] sm:$0xff] }
 0x226   :  { %5319 = vmatprep.subr.bf16.mxu0 %v7408_v59  ;;  %5565 = vmatprep.subr.bf16.mxu1 %v7410_v60  ;;  %v7457_v59 = vcombine.low %v318_v44, %v322_v46  ;;  %v7464_v60 = vcombine.high %v325_v52, %v329_v53  ;;  %v7466_v61 = vcombine.high %v326_v54, %v330_v56  ;;  %v377_v44 = vld [vmem:[#allocation8 + $0x730] sm:$0xff]  ;;  %v374_v46 = vld [vmem:[#allocation8 + $0x718] sm:$0xff] }
 0x229   :  { %5320 = vmatpush1.bf16.msra.mxu0 %v7407_v1  ;;  %5566 = vmatpush1.bf16.msra.mxu1 %v7409_v3  ;;  %v338_v1 = vld [vmem:[#allocation8 + $0x5f8] sm:$0xff]  ;;  %v7463_v3 = vcombine.low %v325_v52, %v329_v53  ;;  %v381_v53 = vld [vmem:[#allocation8 + $0x750] sm:$0xff] }
 0x22a   :  { %5330 = vmatprep.subr.bf16.mxu0 %v7416_v4  ;;  %5576 = vmatprep.subr.bf16.mxu1 %v7418_v5  ;;  %v7465_v4 = vcombine.low %v326_v54, %v330_v56  ;;  %v7472_v5 = vcombine.high %v333_v62, %v337_v63  ;;  %v7474_v6 = vcombine.high %v334_v0, %v338_v1  ;;  %v385_v54 = vld [vmem:[#allocation8 + $0x770] sm:$0xff]  ;;  %v382_v56 = vld [vmem:[#allocation8 + $0x758] sm:$0xff] }
 0x22c   :  { %5322 = vmatmul.mubr.bf16.vlgmr.msra.gmra.mrb[4].mxu0 %v8502_v13  ;;  %5568 = vmatmul.mubr.bf16.vlgmr.msra.gmra.mrb[4].mxu1 %v8502_v13  ;;  %v7433_v13 = vcombine.low %v294_v17, %v298_v18  ;;  %v353_v17 = vld [vmem:[#allocation8 + $0x670] sm:$0xff]  ;;  %v350_v18 = vld [vmem:[#allocation8 + $0x658] sm:$0xff] }
 0x22d   :  { %5331 = vmatpush1.bf16.msra.mxu0 %v7415_v10  ;;  %5577 = vmatpush1.bf16.msra.mxu1 %v7417_v11  ;;  %v346_v10 = vld [vmem:[#allocation8 + $0x638] sm:$0xff]  ;;  %v7471_v11 = vcombine.low %v333_v62, %v337_v63  ;;  %v389_v63 = vld [vmem:[#allocation8 + $0x790] sm:$0xff] }
 0x22e   :  { %5332 = vmatprep.subr.bf16.mxu0 %v7424_v12  ;;  %5578 = vmatprep.subr.bf16.mxu1 %v7426_v14  ;;  %v7473_v12 = vcombine.low %v334_v0, %v338_v1  ;;  %v7480_v14 = vcombine.high %v341_v7, %v345_v8  ;;  %v7482_v16 = vcombine.high %v342_v9, %v346_v10  ;;  %v393_v0 = vld [vmem:[#allocation8 + $0x7b0] sm:$0xff]  ;;  %v390_v1 = vld [vmem:[#allocation8 + $0x798] sm:$0xff] }
 0x22f   :  { %5362 = vmatprep.mubr.bf16.mxu0 %v8504_v23  ;;  %5608 = vmatprep.mubr.bf16.mxu1 %v8504_v23  ;;  %v7450_v23 = vcombine.high %v310_v36, %v314_v38  ;;  %v369_v36 = vld [vmem:[#allocation8 + $0x6f0] sm:$0xff]  ;;  %v366_v38 = vld [vmem:[#allocation8 + $0x6d8] sm:$0xff] }
 0x231   :  { %5333 = vmatpush1.bf16.msra.mxu0 %v7423_v19  ;;  %5579 = vmatpush1.bf16.msra.mxu1 %v7425_v20  ;;  %v354_v19 = vld [vmem:[#allocation8 + $0x678] sm:$0xff]  ;;  %v7479_v20 = vcombine.low %v341_v7, %v345_v8  ;;  %v397_v8 = vld [vmem:[#allocation8 + $0x7d0] sm:$0xff] }
 0x232   :  { %5334 = vmatprep.subr.bf16.mxu0 %v7432_v21  ;;  %5580 = vmatprep.subr.bf16.mxu1 %v7434_v24  ;;  %v7481_v21 = vcombine.low %v342_v9, %v346_v10  ;;  %v7488_v24 = vcombine.high %v349_v58, %v353_v17  ;;  %v7490_v25 = vcombine.high %v350_v18, %v354_v19  ;;  %v401_v9 = vld [vmem:[#allocation8 + $0x7f0] sm:$0xff]  ;;  %v398_v10 = vld [vmem:[#allocation8 + $0x7d8] sm:$0xff] }
 0x235   :  { %5335 = vmatpush1.bf16.msra.mxu0 %v7431_v30  ;;  %5581 = vmatpush1.bf16.msra.mxu1 %v7433_v13  ;;  %v362_v30 = vld [vmem:[#allocation8 + $0x6b8] sm:$0xff]  ;;  %v7487_v13 = vcombine.low %v349_v58, %v353_v17  ;;  %v405_v17 = vld [vmem:[#allocation8 + $0x810] sm:$0xff] }
 0x236   :  { %5336 = vmatprep.subr.bf16.mxu0 %v7440_v31  ;;  %5582 = vmatprep.subr.bf16.mxu1 %v7442_v32  ;;  %v7489_v31 = vcombine.low %v350_v18, %v354_v19  ;;  %v7496_v32 = vcombine.high %v357_v26, %v361_v28  ;;  %v7498_v34 = vcombine.high %v358_v29, %v362_v30  ;;  %v409_v18 = vld [vmem:[#allocation8 + $0x830] sm:$0xff]  ;;  %v406_v19 = vld [vmem:[#allocation8 + $0x818] sm:$0xff] }
 0x239   :  { %5337 = vmatpush1.bf16.msra.mxu0 %v7439_v39  ;;  %5583 = vmatpush1.bf16.msra.mxu1 %v7441_v40  ;;  %v370_v39 = vld [vmem:[#allocation8 + $0x6f8] sm:$0xff]  ;;  %v7495_v40 = vcombine.low %v357_v26, %v361_v28  ;;  %v413_v28 = vld [vmem:[#allocation8 + $0x850] sm:$0xff] }
 0x23a   :  { %5338 = vmatprep.subr.bf16.mxu0 %v7448_v41  ;;  %5584 = vmatprep.subr.bf16.mxu1 %v7450_v23  ;;  %v7497_v41 = vcombine.low %v358_v29, %v362_v30  ;;  %v7504_v23 = vcombine.high %v365_v35, %v369_v36  ;;  %v7506_v42 = vcombine.high %v366_v38, %v370_v39  ;;  %v417_v29 = vld [vmem:[#allocation8 + $0x870] sm:$0xff]  ;;  %v414_v30 = vld [vmem:[#allocation8 + $0x858] sm:$0xff] }
 0x23d   :  { %5339 = vmatpush1.bf16.msra.mxu0 %v7447_v48  ;;  %5585 = vmatpush1.bf16.msra.mxu1 %v7449_v49  ;;  %v378_v48 = vld [vmem:[#allocation8 + $0x738] sm:$0xff]  ;;  %v7503_v49 = vcombine.low %v365_v35, %v369_v36  ;;  %v421_v36 = vld [vmem:[#allocation8 + $0x890] sm:$0xff] }
 0x23e   :  { %5340 = vmatprep.subr.bf16.mxu0 %v7456_v50  ;;  %5586 = vmatprep.subr.bf16.mxu1 %v7458_v51  ;;  %v7505_v50 = vcombine.low %v366_v38, %v370_v39  ;;  %v7512_v51 = vcombine.high %v373_v43, %v377_v44  ;;  %v7514_v52 = vcombine.high %v374_v46, %v378_v48  ;;  %v425_v38 = vld [vmem:[#allocation8 + $0x8b0] sm:$0xff]  ;;  %v422_v39 = vld [vmem:[#allocation8 + $0x898] sm:$0xff] }
 0x241   :  { %5341 = vmatpush1.bf16.msra.mxu0 %v7455_v57  ;;  %5587 = vmatpush1.bf16.msra.mxu1 %v7457_v59  ;;  %v386_v57 = vld [vmem:[#allocation8 + $0x778] sm:$0xff]  ;;  %v7511_v59 = vcombine.low %v373_v43, %v377_v44  ;;  %v429_v44 = vld [vmem:[#allocation8 + $0x8d0] sm:$0xff] }
 0x242   :  { %5342 = vmatprep.subr.bf16.mxu0 %v7464_v60  ;;  %5588 = vmatprep.subr.bf16.mxu1 %v7466_v61  ;;  %v7513_v60 = vcombine.low %v374_v46, %v378_v48  ;;  %v7520_v61 = vcombine.high %v381_v53, %v385_v54  ;;  %v7522_v62 = vcombine.high %v382_v56, %v386_v57  ;;  %v433_v46 = vld [vmem:[#allocation8 + $0x8f0] sm:$0xff]  ;;  %v430_v48 = vld [vmem:[#allocation8 + $0x8d8] sm:$0xff] }
 0x245   :  { %5343 = vmatpush1.bf16.msra.mxu0 %v7463_v3  ;;  %5589 = vmatpush1.bf16.msra.mxu1 %v7465_v4  ;;  %v394_v3 = vld [vmem:[#allocation8 + $0x7b8] sm:$0xff]  ;;  %v7519_v4 = vcombine.low %v381_v53, %v385_v54  ;;  %v437_v53 = vld [vmem:[#allocation8 + $0x910] sm:$0xff] }
 0x246   :  { %5344 = vmatprep.subr.bf16.mxu0 %v7472_v5  ;;  %5590 = vmatprep.subr.bf16.mxu1 %v7474_v6  ;;  %v7521_v5 = vcombine.low %v382_v56, %v386_v57  ;;  %v7528_v6 = vcombine.high %v389_v63, %v393_v0  ;;  %v7530_v7 = vcombine.high %v390_v1, %v394_v3  ;;  %v441_v54 = vld [vmem:[#allocation8 + $0x930] sm:$0xff]  ;;  %v438_v56 = vld [vmem:[#allocation8 + $0x918] sm:$0xff] }
 0x247   :  { %v442_v57 = vld [vmem:[#allocation8 + $0x938] sm:$0xff] }
 0x249   :  { %5345 = vmatpush1.bf16.msra.mxu0 %v7471_v11  ;;  %5591 = vmatpush1.bf16.msra.mxu1 %v7473_v12  ;;  %v402_v11 = vld [vmem:[#allocation8 + $0x7f8] sm:$0xff]  ;;  %v7527_v12 = vcombine.low %v389_v63, %v393_v0  ;;  %v449_v63 = vld [vmem:[#allocation8 + $0x970] sm:$0xff] }
 0x24a   :  { %5346 = vmatprep.subr.bf16.mxu0 %v7480_v14  ;;  %5592 = vmatprep.subr.bf16.mxu1 %v7482_v16  ;;  %v7529_v14 = vcombine.low %v390_v1, %v394_v3  ;;  %v7536_v16 = vcombine.high %v397_v8, %v401_v9  ;;  %v7538_v58 = vcombine.high %v398_v10, %v402_v11  ;;  %v446_v0 = vld [vmem:[#allocation8 + $0x958] sm:$0xff] }
 0x24b   :  { %v450_v1 = vld [vmem:[#allocation8 + $0x978] sm:$0xff]  ;;  %v7575_v3 = vcombine.low %v437_v53, %v441_v54 }
 0x24d   :  { %5347 = vmatpush1.bf16.msra.mxu0 %v7479_v20  ;;  %5593 = vmatpush1.bf16.msra.mxu1 %v7481_v21  ;;  %v410_v20 = vld [vmem:[#allocation8 + $0x838] sm:$0xff]  ;;  %v7535_v21 = vcombine.low %v397_v8, %v401_v9  ;;  %v457_v8 = vld [vmem:[#allocation8 + $0x9b0] sm:$0xff] }
 0x24e   :  { %5348 = vmatprep.subr.bf16.mxu0 %v7488_v24  ;;  %5594 = vmatprep.subr.bf16.mxu1 %v7490_v25  ;;  %v7537_v24 = vcombine.low %v398_v10, %v402_v11  ;;  %v7544_v25 = vcombine.high %v405_v17, %v409_v18  ;;  %v7546_v26 = vcombine.high %v406_v19, %v410_v20  ;;  %v454_v9 = vld [vmem:[#allocation8 + $0x998] sm:$0xff] }
 0x24f   :  { %v458_v10 = vld [vmem:[#allocation8 + $0x9b8] sm:$0xff] }
 0x251   :  { %5349 = vmatpush1.bf16.msra.mxu0 %v7487_v13  ;;  %5595 = vmatpush1.bf16.msra.mxu1 %v7489_v31  ;;  %v418_v13 = vld [vmem:[#allocation8 + $0x878] sm:$0xff]  ;;  %v7543_v31 = vcombine.low %v405_v17, %v409_v18  ;;  %v465_v17 = vld [vmem:[#allocation8 + $0x9f0] sm:$0xff] }
 0x252   :  { %5350 = vmatprep.subr.bf16.mxu0 %v7496_v32  ;;  %5596 = vmatprep.subr.bf16.mxu1 %v7498_v34  ;;  %v7545_v32 = vcombine.low %v406_v19, %v410_v20  ;;  %v7552_v34 = vcombine.high %v413_v28, %v417_v29  ;;  %v7554_v35 = vcombine.high %v414_v30, %v418_v13  ;;  %v462_v18 = vld [vmem:[#allocation8 + $0x9d8] sm:$0xff] }
 0x253   :  { %v466_v19 = vld [vmem:[#allocation8 + $0x9f8] sm:$0xff] }
 0x255   :  { %5351 = vmatpush1.bf16.msra.mxu0 %v7495_v40  ;;  %5597 = vmatpush1.bf16.msra.mxu1 %v7497_v41  ;;  %v426_v40 = vld [vmem:[#allocation8 + $0x8b8] sm:$0xff]  ;;  %v7551_v41 = vcombine.low %v413_v28, %v417_v29  ;;  %v473_v28 = vld [vmem:[#allocation8 + $0xa30] sm:$0xff] }
 0x256   :  { %5352 = vmatprep.subr.bf16.mxu0 %v7504_v23  ;;  %5598 = vmatprep.subr.bf16.mxu1 %v7506_v42  ;;  %v7553_v23 = vcombine.low %v414_v30, %v418_v13  ;;  %v7560_v42 = vcombine.high %v421_v36, %v425_v38  ;;  %v7562_v43 = vcombine.high %v422_v39, %v426_v40  ;;  %v470_v29 = vld [vmem:[#allocation8 + $0xa18] sm:$0xff] }
 0x257   :  { %v474_v30 = vld [vmem:[#allocation8 + $0xa38] sm:$0xff] }
 0x259   :  { %5353 = vmatpush1.bf16.msra.mxu0 %v7503_v49  ;;  %5599 = vmatpush1.bf16.msra.mxu1 %v7505_v50  ;;  %v434_v49 = vld [vmem:[#allocation8 + $0x8f8] sm:$0xff]  ;;  %v7559_v50 = vcombine.low %v421_v36, %v425_v38  ;;  %v481_v36 = vld [vmem:[#allocation8 + $0xa70] sm:$0xff] }
 0x25a   :  { %5354 = vmatprep.subr.bf16.mxu0 %v7512_v51  ;;  %5600 = vmatprep.subr.bf16.mxu1 %v7514_v52  ;;  %v7568_v51 = vcombine.high %v429_v44, %v433_v46  ;;  %v7570_v52 = vcombine.high %v430_v48, %v434_v49  ;;  %v478_v38 = vld [vmem:[#allocation8 + $0xa58] sm:$0xff] }
 0x25d   :  { %5355 = vmatpush1.bf16.msra.mxu0 %v7511_v59  ;;  %5601 = vmatpush1.bf16.msra.mxu1 %v7513_v60  ;;  %v7567_v59 = vcombine.low %v429_v44, %v433_v46  ;;  %v7569_v60 = vcombine.low %v430_v48, %v434_v49  ;;  %v489_v44 = vld [vmem:[#allocation8 + $0xab0] sm:$0xff]  ;;  %v486_v46 = vld [vmem:[#allocation8 + $0xa98] sm:$0xff] }
 0x25e   :  { %5356 = vmatprep.subr.bf16.mxu0 %v7520_v61  ;;  %5602 = vmatprep.subr.bf16.mxu1 %v7522_v62  ;;  %v7576_v61 = vcombine.high %v437_v53, %v441_v54  ;;  %v445_v62 = vld [vmem:[#allocation8 + $0x950] sm:$0xff]  ;;  %v490_v48 = vld [vmem:[#allocation8 + $0xab8] sm:$0xff] }
 0x25f   :  { %v7583_v11 = vcombine.low %v445_v62, %v449_v63  ;;  %v497_v53 = vld [vmem:[#allocation8 + $0xaf0] sm:$0xff]  ;;  %v494_v54 = vld [vmem:[#allocation8 + $0xad8] sm:$0xff] }
 0x261   :  { %5357 = vmatpush1.bf16.msra.mxu0 %v7519_v4  ;;  %5603 = vmatpush1.bf16.msra.mxu1 %v7521_v5  ;;  %v7577_v4 = vcombine.low %v438_v56, %v442_v57  ;;  %v7584_v5 = vcombine.high %v445_v62, %v449_v63  ;;  %v505_v62 = vld [vmem:[#allocation8 + $0xb30] sm:$0xff]  ;;  %v502_v63 = vld [vmem:[#allocation8 + $0xb18] sm:$0xff] }
 0x262   :  { %5358 = vmatprep.subr.bf16.mxu0 %v7528_v6  ;;  %5604 = vmatprep.subr.bf16.mxu1 %v7530_v7  ;;  %v7586_v6 = vcombine.high %v446_v0, %v450_v1  ;;  %v453_v7 = vld [vmem:[#allocation8 + $0x990] sm:$0xff] }
 0x263   :  { %v7591_v20 = vcombine.low %v453_v7, %v457_v8 }
 0x265   :  { %5359 = vmatpush1.bf16.msra.mxu0 %v7527_v12  ;;  %5605 = vmatpush1.bf16.msra.mxu1 %v7529_v14  ;;  %v7585_v12 = vcombine.low %v446_v0, %v450_v1  ;;  %v7592_v14 = vcombine.high %v453_v7, %v457_v8  ;;  %v506_v0 = vld [vmem:[#allocation8 + $0xb38] sm:$0xff]  ;;  %v513_v7 = vld [vmem:[#allocation8 + $0xb70] sm:$0xff] }
 0x266   :  { %5360 = vmatprep.subr.bf16.mxu0 %v7536_v16  ;;  %5606 = vmatprep.subr.bf16.mxu1 %v7538_v58  ;;  %v7594_v16 = vcombine.high %v454_v9, %v458_v10  ;;  %v461_v58 = vld [vmem:[#allocation8 + $0x9d0] sm:$0xff]  ;;  %v510_v8 = vld [vmem:[#allocation8 + $0xb58] sm:$0xff] }
 0x267   :  { %v7599_v13 = vcombine.low %v461_v58, %v465_v17 }
 0x269   :  { %5361 = vmatpush1.bf16.msra.mxu0 %v7535_v21  ;;  %5607 = vmatpush1.bf16.msra.mxu1 %v7537_v24  ;;  %v7593_v21 = vcombine.low %v454_v9, %v458_v10  ;;  %v7600_v24 = vcombine.high %v461_v58, %v465_v17  ;;  %v514_v9 = vld [vmem:[#allocation8 + $0xb78] sm:$0xff]  ;;  %v521_v58 = vld [vmem:[#allocation8 + $0xbb0] sm:$0xff] }
 0x26a   :  { %5371 = vmatprep.subr.bf16.mxu0 %v7544_v25  ;;  %5617 = vmatprep.subr.bf16.mxu1 %v7546_v26  ;;  %v7602_v25 = vcombine.high %v462_v18, %v466_v19  ;;  %v469_v26 = vld [vmem:[#allocation8 + $0xa10] sm:$0xff]  ;;  %v518_v17 = vld [vmem:[#allocation8 + $0xb98] sm:$0xff] }
 0x26c   :  { %5363 = vmatmul.mubr.bf16.vlgmr.msra.gmra.mrb[4].mxu0 %v8510_v22  ;;  %5609 = vmatmul.mubr.bf16.vlgmr.msra.gmra.mrb[4].mxu1 %v8510_v22  ;;  %v7561_v22 = vcombine.low %v422_v39, %v426_v40  ;;  %v482_v39 = vld [vmem:[#allocation8 + $0xa78] sm:$0xff]  ;;  %v7607_v40 = vcombine.low %v469_v26, %v473_v28 }
 0x26d   :  { %5372 = vmatpush1.bf16.msra.mxu0 %v7543_v31  ;;  %5618 = vmatpush1.bf16.msra.mxu1 %v7545_v32  ;;  %v7601_v31 = vcombine.low %v462_v18, %v466_v19  ;;  %v7608_v32 = vcombine.high %v469_v26, %v473_v28  ;;  %v522_v18 = vld [vmem:[#allocation8 + $0xbb8] sm:$0xff]  ;;  %v529_v26 = vld [vmem:[#allocation8 + $0xbf0] sm:$0xff] }
 0x26e   :  { %5373 = vmatprep.subr.bf16.mxu0 %v7552_v34  ;;  %5619 = vmatprep.subr.bf16.mxu1 %v7554_v35  ;;  %v7610_v34 = vcombine.high %v470_v29, %v474_v30  ;;  %v477_v35 = vld [vmem:[#allocation8 + $0xa50] sm:$0xff]  ;;  %v526_v28 = vld [vmem:[#allocation8 + $0xbd8] sm:$0xff] }
 0x26f   :  { %5403 = vmatprep.mubr.bf16.mxu0 %v8512_v33  ;;  %5649 = vmatprep.mubr.bf16.mxu1 %v8512_v33  ;;  %v7578_v33 = vcombine.high %v438_v56, %v442_v57  ;;  %v7615_v49 = vcombine.low %v477_v35, %v481_v36  ;;  %v498_v56 = vld [vmem:[#allocation8 + $0xaf8] sm:$0xff] }
 0x271   :  { %5374 = vmatpush1.bf16.msra.mxu0 %v7551_v41  ;;  %5620 = vmatpush1.bf16.msra.mxu1 %v7553_v23  ;;  %v7609_v41 = vcombine.low %v470_v29, %v474_v30  ;;  %v7616_v23 = vcombine.high %v477_v35, %v481_v36  ;;  %v530_v29 = vld [vmem:[#allocation8 + $0xbf8] sm:$0xff]  ;;  %v537_v35 = vld [vmem:[#allocation8 + $0xc30] sm:$0xff] }
 0x272   :  { %5375 = vmatprep.subr.bf16.mxu0 %v7560_v42  ;;  %5621 = vmatprep.subr.bf16.mxu1 %v7562_v43  ;;  %v7618_v42 = vcombine.high %v478_v38, %v482_v39  ;;  %v485_v43 = vld [vmem:[#allocation8 + $0xa90] sm:$0xff]  ;;  %v534_v36 = vld [vmem:[#allocation8 + $0xc18] sm:$0xff] }
 0x273   :  { %v7623_v57 = vcombine.low %v485_v43, %v489_v44 }
 0x275   :  { %5376 = vmatpush1.bf16.msra.mxu0 %v7559_v50  ;;  %5622 = vmatpush1.bf16.msra.mxu1 %v7561_v22  ;;  %v7617_v50 = vcombine.low %v478_v38, %v482_v39  ;;  %v7624_v22 = vcombine.high %v485_v43, %v489_v44  ;;  %v538_v38 = vld [vmem:[#allocation8 + $0xc38] sm:$0xff]  ;;  %v545_v43 = vld [vmem:[#allocation8 + $0xc70] sm:$0xff] }
 0x276   :  { %5377 = vmatprep.subr.bf16.mxu0 %v7568_v51  ;;  %5623 = vmatprep.subr.bf16.mxu1 %v7570_v52  ;;  %v7626_v51 = vcombine.high %v486_v46, %v490_v48  ;;  %v493_v52 = vld [vmem:[#allocation8 + $0xad0] sm:$0xff]  ;;  %v542_v44 = vld [vmem:[#allocation8 + $0xc58] sm:$0xff] }
 0x277   :  { %v7631_v1 = vcombine.low %v493_v52, %v497_v53 }
 0x279   :  { %5378 = vmatpush1.bf16.msra.mxu0 %v7567_v59  ;;  %5624 = vmatpush1.bf16.msra.mxu1 %v7569_v60  ;;  %v7625_v59 = vcombine.low %v486_v46, %v490_v48  ;;  %v7632_v60 = vcombine.high %v493_v52, %v497_v53  ;;  %v546_v46 = vld [vmem:[#allocation8 + $0xc78] sm:$0xff]  ;;  %v553_v52 = vld [vmem:[#allocation8 + $0xcb0] sm:$0xff] }
 0x27a   :  { %5379 = vmatprep.subr.bf16.mxu0 %v7576_v61  ;;  %5625 = vmatprep.subr.bf16.mxu1 %v7578_v33  ;;  %v7634_v61 = vcombine.high %v494_v54, %v498_v56  ;;  %v501_v33 = vld [vmem:[#allocation8 + $0xb10] sm:$0xff]  ;;  %v550_v53 = vld [vmem:[#allocation8 + $0xc98] sm:$0xff] }
 0x27b   :  { %v7639_v10 = vcombine.low %v501_v33, %v505_v62 }
 0x27d   :  { %5380 = vmatpush1.bf16.msra.mxu0 %v7575_v3  ;;  %5626 = vmatpush1.bf16.msra.mxu1 %v7577_v4  ;;  %v7633_v3 = vcombine.low %v494_v54, %v498_v56  ;;  %v7640_v4 = vcombine.high %v501_v33, %v505_v62  ;;  %v554_v54 = vld [vmem:[#allocation8 + $0xcb8] sm:$0xff]  ;;  %v561_v33 = vld [vmem:[#allocation8 + $0xcf0] sm:$0xff] }
 0x27e   :  { %5381 = vmatprep.subr.bf16.mxu0 %v7584_v5  ;;  %5627 = vmatprep.subr.bf16.mxu1 %v7586_v6  ;;  %v7642_v5 = vcombine.high %v502_v63, %v506_v0  ;;  %v509_v6 = vld [vmem:[#allocation8 + $0xb50] sm:$0xff]  ;;  %v558_v62 = vld [vmem:[#allocation8 + $0xcd8] sm:$0xff] }
 0x27f   :  { %v7647_v19 = vcombine.low %v509_v6, %v513_v7 }
 0x281   :  { %5382 = vmatpush1.bf16.msra.mxu0 %v7583_v11  ;;  %5628 = vmatpush1.bf16.msra.mxu1 %v7585_v12  ;;  %v7641_v11 = vcombine.low %v502_v63, %v506_v0  ;;  %v7648_v12 = vcombine.high %v509_v6, %v513_v7  ;;  %v562_v63 = vld [vmem:[#allocation8 + $0xcf8] sm:$0xff]  ;;  %v917_v0 = vlaneseq  ;;  %v569_v6 = vld [vmem:[#allocation8 + $0xd30] sm:$0xff] }
 0x282   :  { %5383 = vmatprep.subr.bf16.mxu0 %v7592_v14  ;;  %5629 = vmatprep.subr.bf16.mxu1 %v7594_v16  ;;  %v7650_v14 = vcombine.high %v510_v8, %v514_v9  ;;  %v517_v16 = vld [vmem:[#allocation8 + $0xb90] sm:$0xff]  ;;  %v566_v7 = vld [vmem:[#allocation8 + $0xd18] sm:$0xff] }
 0x283   :  { %v7655_v30 = vcombine.low %v517_v16, %v521_v58 }
 0x285   :  { %5384 = vmatpush1.bf16.msra.mxu0 %v7591_v20  ;;  %5630 = vmatpush1.bf16.msra.mxu1 %v7593_v21  ;;  %v7649_v20 = vcombine.low %v510_v8, %v514_v9  ;;  %v7656_v21 = vcombine.high %v517_v16, %v521_v58  ;;  %v570_v8 = vld [vmem:[#allocation8 + $0xd38] sm:$0xff]  ;;  %v8560_v9 = vshrl.u32 %v917_v0, 7  ;;  %v577_v16 = vld [vmem:[#allocation8 + $0xd70] sm:$0xff] }
 0x286   :  { %5385 = vmatprep.subr.bf16.mxu0 %v7600_v24  ;;  %5631 = vmatprep.subr.bf16.mxu1 %v7602_v25  ;;  %v7658_v24 = vcombine.high %v518_v17, %v522_v18  ;;  %v525_v25 = vld [vmem:[#allocation8 + $0xbd0] sm:$0xff] }
 0x287   :  { %v7663_v39 = vcombine.low %v525_v25, %v529_v26  ;;  %v8563_v58 = vsub.s32 0, %v8560_v9 }
 0x289   :  { %5386 = vmatpush1.bf16.msra.mxu0 %v7599_v13  ;;  %5632 = vmatpush1.bf16.msra.mxu1 %v7601_v31  ;;  %v7657_v13 = vcombine.low %v518_v17, %v522_v18  ;;  %v7664_v31 = vcombine.high %v525_v25, %v529_v26  ;;  %v574_v17 = vld [vmem:[#allocation8 + $0xd58] sm:$0xff]  ;;  %v7705_v25 = vcombine.low %v566_v7, %v570_v8  ;;  %v931_v26 = vsub.s32 3, %v8560_v9 }
 0x28a   :  { %5387 = vmatprep.subr.bf16.mxu0 %v7608_v32  ;;  %5633 = vmatprep.subr.bf16.mxu1 %v7610_v34  ;;  %v7666_v32 = vcombine.high %v526_v28, %v530_v29  ;;  %v533_v34 = vld [vmem:[#allocation8 + $0xc10] sm:$0xff]  ;;  %v578_v18 = vld [vmem:[#allocation8 + $0xd78] sm:$0xff] }
 0x28b   :  { %v7671_v48 = vcombine.low %v533_v34, %v537_v35 }
 0x28d   :  { %5388 = vmatpush1.bf16.msra.mxu0 %v7607_v40  ;;  %5634 = vmatpush1.bf16.msra.mxu1 %v7609_v41  ;;  %v7665_v40 = vcombine.low %v526_v28, %v530_v29  ;;  %v7672_v41 = vcombine.high %v533_v34, %v537_v35  ;;  %v7714_v29 = vcombine.high %v574_v17, %v578_v18  ;;  %v586_v34 = vld [vmem:[#allocation8 + $0xdb8] sm:$0xff] }
 0x28e   :  { %5389 = vmatprep.subr.bf16.mxu0 %v7616_v23  ;;  %5635 = vmatprep.subr.bf16.mxu1 %v7618_v42  ;;  %v7674_v23 = vcombine.high %v534_v36, %v538_v38  ;;  %v541_v42 = vld [vmem:[#allocation8 + $0xc50] sm:$0xff] }
 0x28f   :  { %v7679_v56 = vcombine.low %v541_v42, %v545_v43 }
 0x291   :  { %5390 = vmatpush1.bf16.msra.mxu0 %v7615_v49  ;;  %5636 = vmatpush1.bf16.msra.mxu1 %v7617_v50  ;;  %v7673_v49 = vcombine.low %v534_v36, %v538_v38  ;;  %v7680_v50 = vcombine.high %v541_v42, %v545_v43  ;;  %v589_v43 = vld [vmem:[#allocation8 + $0xdd0] sm:$0xff] }
 0x292   :  { %5391 = vmatprep.subr.bf16.mxu0 %v7624_v22  ;;  %5637 = vmatprep.subr.bf16.mxu1 %v7626_v51  ;;  %v7682_v22 = vcombine.high %v542_v44, %v546_v46  ;;  %v549_v51 = vld [vmem:[#allocation8 + $0xc90] sm:$0xff] }
 0x295   :  { %5392 = vmatpush1.bf16.msra.mxu0 %v7623_v57  ;;  %5638 = vmatpush1.bf16.msra.mxu1 %v7625_v59  ;;  %v7681_v57 = vcombine.low %v542_v44, %v546_v46  ;;  %v7688_v59 = vcombine.high %v549_v51, %v553_v52  ;;  %v593_v44 = vld [vmem:[#allocation8 + $0xdf0] sm:$0xff] }
 0x296   :  { %5393 = vmatprep.subr.bf16.mxu0 %v7632_v60  ;;  %5639 = vmatprep.subr.bf16.mxu1 %v7634_v61  ;;  %v7690_v60 = vcombine.high %v550_v53, %v554_v54  ;;  %v557_v61 = vld [vmem:[#allocation8 + $0xcd0] sm:$0xff] }
 0x299   :  { %5394 = vmatpush1.bf16.msra.mxu0 %v7631_v1  ;;  %5640 = vmatpush1.bf16.msra.mxu1 %v7633_v3  ;;  %v7687_v1 = vcombine.low %v549_v51, %v553_v52  ;;  %v7696_v3 = vcombine.high %v557_v61, %v561_v33 }
 0x29a   :  { %5395 = vmatprep.subr.bf16.mxu0 %v7640_v4  ;;  %5641 = vmatprep.subr.bf16.mxu1 %v7642_v5  ;;  %v7698_v4 = vcombine.high %v558_v62, %v562_v63  ;;  %v565_v5 = vld [vmem:[#allocation8 + $0xd10] sm:$0xff] }
 0x29d   :  { %5396 = vmatpush1.bf16.msra.mxu0 %v7639_v10  ;;  %5642 = vmatpush1.bf16.msra.mxu1 %v7641_v11  ;;  %v7695_v10 = vcombine.low %v557_v61, %v561_v33  ;;  %v7697_v11 = vcombine.low %v558_v62, %v562_v63  ;;  %v7728_v62 = vcombine.high %v589_v43, %v593_v44 }
 0x29e   :  { %5397 = vmatprep.subr.bf16.mxu0 %v7648_v12  ;;  %5643 = vmatprep.subr.bf16.mxu1 %v7650_v14  ;;  %v7706_v12 = vcombine.high %v566_v7, %v570_v8  ;;  %v573_v14 = vld [vmem:[#allocation8 + $0xd50] sm:$0xff]  ;;  %v602_v7 = vld [vmem:[#allocation8 + $0xe38] sm:$0xff]  ;;  %v7727_v8 = vcombine.low %v589_v43, %v593_v44 }
 0x29f   :  { %v7712_v28 = vcombine.high %v573_v14, %v577_v16  ;;  %v7711_v38 = vcombine.low %v573_v14, %v577_v16  ;;  %v609_v14 = vld [vmem:[#allocation8 + $0xe70] sm:$0xff]  ;;  %v606_v16 = vld [vmem:[#allocation8 + $0xe58] sm:$0xff] }
 0x2a0   :  { %v629_v44 = vld [vmem:[#allocation8 + $0xf10] sm:$0xff] }
 0x2a1   :  { %5398 = vmatpush1.bf16.msra.mxu0 %v7647_v19  ;;  %5644 = vmatpush1.bf16.msra.mxu1 %v7649_v20  ;;  %v7703_v19 = vcombine.low %v565_v5, %v569_v6  ;;  %v915_v20 = vld [vmem:[#allocation10] sm:$0xff] }
 0x2a2   :  { %5399 = vmatprep.subr.bf16.mxu0 %v7656_v21  ;;  %5645 = vmatprep.subr.bf16.mxu1 %v7658_v24  ;;  %v927_v21 = vsub.s32 2, %v8560_v9  ;;  %v923_v24 = vsub.s32 1, %v8560_v9 }
 0x2a4   :  { %v928_v35 = vrot.slane %v915_v20, %v927_v21  ;;  %v924_v36 = vrot.slane %v915_v20, %v923_v24 }
 0x2a5   :  { %5400 = vmatpush1.bf16.msra.mxu0 %v7655_v30  ;;  %5646 = vmatpush1.bf16.msra.mxu1 %v7657_v13  ;;  %v581_v30 = vld [vmem:[#allocation8 + $0xd90] sm:$0xff] }
 0x2a6   :  { %5401 = vmatprep.subr.bf16.mxu0 %v7664_v31  ;;  %5647 = vmatprep.subr.bf16.mxu1 %v7666_v32  ;;  %v585_v13 = vld [vmem:[#allocation8 + $0xdb0] sm:$0xff]  ;;  %v920_v31 = vrot.slane %v915_v20, %v8563_v58  ;;  %v582_v32 = vld [vmem:[#allocation8 + $0xd98] sm:$0xff] }
 0x2a7   :  { %v7722_v42 = vcombine.high %v582_v32, %v586_v34  ;;  %v7721_v33 = vcombine.low %v582_v32, %v586_v34 }
 0x2a9   :  { %5402 = vmatpush1.bf16.msra.mxu0 %v7663_v39  ;;  %5648 = vmatpush1.bf16.msra.mxu1 %v7665_v40  ;;  %v932_v39 = vrot.slane %v915_v20, %v931_v26  ;;  %v7713_v40 = vcombine.low %v574_v17, %v578_v18  ;;  %v610_v17 = vld [vmem:[#allocation8 + $0xe78] sm:$0xff] }
 0x2aa   :  { %5412 = vmatprep.subr.bf16.mxu0 %v7672_v41  ;;  %5658 = vmatprep.subr.bf16.mxu1 %v7674_v23  ;;  %v7720_v41 = vcombine.high %v581_v30, %v585_v13  ;;  %v7745_v32 = vcombine.low %v606_v16, %v610_v17 }
 0x2ac   :  { %5404 = vmatmul.mubr.bf16.vlgmr.msra.gmra.mrb[4].mxu0 %v8518_v37  ;;  %5650 = vmatmul.mubr.bf16.vlgmr.msra.gmra.mrb[4].mxu1 %v8518_v37  ;;  %v7689_v37 = vcombine.low %v550_v53, %v554_v54 }
 0x2ad   :  { %5413 = vmatpush1.bf16.msra.mxu0 %v7671_v48  ;;  %5659 = vmatpush1.bf16.msra.mxu1 %v7673_v49 }
 0x2ae   :  { %5414 = vmatprep.subr.bf16.mxu0 %v7680_v50  ;;  %5660 = vmatprep.subr.bf16.mxu1 %v7682_v22  ;;  %v590_v50 = vld [vmem:[#allocation8 + $0xdd8] sm:$0xff] }
 0x2af   :  { %5444 = vmatprep.mubr.bf16.mxu0 %v8520_v47  ;;  %5690 = vmatprep.mubr.bf16.mxu1 %v8520_v47  ;;  %v7704_v47 = vcombine.high %v565_v5, %v569_v6  ;;  %v594_v22 = vld [vmem:[#allocation8 + $0xdf8] sm:$0xff] }
 0x2b0   :  { %v598_v6 = vld [vmem:[#allocation8 + $0xe18] sm:$0xff] }
 0x2b1   :  { %5415 = vmatpush1.bf16.msra.mxu0 %v7679_v56  ;;  %5661 = vmatpush1.bf16.msra.mxu1 %v7681_v57  ;;  %v7719_v56 = vcombine.low %v581_v30, %v585_v13  ;;  %v614_v30 = vld [vmem:[#allocation8 + $0xe98] sm:$0xff] }
 0x2b2   :  { %5416 = vmatprep.subr.bf16.mxu0 %v7688_v59  ;;  %5662 = vmatprep.subr.bf16.mxu1 %v7690_v60  ;;  %v618_v13 = vld [vmem:[#allocation8 + $0xeb8] sm:$0xff] }
 0x2b5   :  { %5417 = vmatpush1.bf16.msra.mxu0 %v7687_v1  ;;  %5663 = vmatpush1.bf16.msra.mxu1 %v7689_v37  ;;  %v7730_v37 = vcombine.high %v590_v50, %v594_v22 }
 0x2b6   :  { %5418 = vmatprep.subr.bf16.mxu0 %v7696_v3  ;;  %5664 = vmatprep.subr.bf16.mxu1 %v7698_v4  ;;  %v597_v3 = vld [vmem:[#allocation8 + $0xe10] sm:$0xff] }
 0x2b7   :  { %v601_v4 = vld [vmem:[#allocation8 + $0xe30] sm:$0xff] }
 0x2b8   :  { %v7735_v18 = vcombine.low %v597_v3, %v601_v4 }
 0x2b9   :  { %5419 = vmatpush1.bf16.msra.mxu0 %v7695_v10  ;;  %5665 = vmatpush1.bf16.msra.mxu1 %v7697_v11  ;;  %v7729_v10 = vcombine.low %v590_v50, %v594_v22  ;;  %v7736_v11 = vcombine.high %v597_v3, %v601_v4  ;;  %v634_v50 = vld [vmem:[#allocation8 + $0xf38] sm:$0xff] }
 0x2ba   :  { %5420 = vmatprep.subr.bf16.mxu0 %v7704_v47  ;;  %5666 = vmatprep.subr.bf16.mxu1 %v7706_v12  ;;  %v7738_v47 = vcombine.high %v598_v6, %v602_v7  ;;  %v605_v12 = vld [vmem:[#allocation8 + $0xe50] sm:$0xff] }
 0x2bb   :  { %v7744_v20 = vcombine.high %v605_v12, %v609_v14 }
 0x2bd   :  { %5421 = vmatpush1.bf16.msra.mxu0 %v7703_v19  ;;  %5667 = vmatpush1.bf16.msra.mxu1 %v7705_v25  ;;  %v7737_v19 = vcombine.low %v598_v6, %v602_v7  ;;  %v7746_v25 = vcombine.high %v606_v16, %v610_v17  ;;  %v645_v6 = vld [vmem:[#allocation8 + $0xf90] sm:$0xff] }
 0x2be   :  { %5422 = vmatprep.subr.bf16.mxu0 %v7712_v28  ;;  %5668 = vmatprep.subr.bf16.mxu1 %v7714_v29  ;;  %v613_v28 = vld [vmem:[#allocation8 + $0xe90] sm:$0xff] }
 0x2bf   :  { %v5036_v23 = vpop.f32.mrb[0].mxu0  ;;  %v5282_v48 = vpop.f32.mrb[0].mxu1  ;;  %v617_v29 = vld [vmem:[#allocation8 + $0xeb0] sm:$0xff] }
 0x2c0   :  { %v8575_v46 = vadd.f32 %v5036_v23, %v920_v31  ;;  %v5038_v49 = vpop.f32.mrb[1].mxu0  ;;  %v8577_v51 = vadd.f32 %v5282_v48, %v928_v35  ;;  %v5284_v53 = vpop.f32.mrb[1].mxu1  ;;  %v7743_v31 = vcombine.low %v605_v12, %v609_v14  ;;  %v7752_v34 = vcombine.high %v613_v28, %v617_v29  ;;  %v633_v48 = vld [vmem:[#allocation8 + $0xf30] sm:$0xff] }
 0x2c1   :  { %v8579_v52 = vadd.f32 %v5038_v49, %v924_v36  ;;  %v5040_v54 = vpop.f32.mrb[2].mxu0  ;;  %5423 = vmatpush1.bf16.msra.mxu0 %v7711_v38  ;;  %v8582_v59 = vadd.f32 %v5284_v53, %v932_v39  ;;  %v5286_v60 = vpop.f32.mrb[2].mxu1  ;;  %5669 = vmatpush1.bf16.msra.mxu1 %v7713_v40  ;;  %v7754_v35 = vcombine.high %v614_v30, %v618_v13  ;;  %v621_v36 = vld [vmem:[#allocation8 + $0xed0] sm:$0xff]  ;;  %v622_v39 = vld [vmem:[#allocation8 + $0xed8] sm:$0xff] }
 0x2c2   :  { %v5781_v57 = vmax.f32 %v8575_v46, 0.0  ;;  %v5041_v61 = vpop.f32.mrb[3].mxu0  ;;  %5424 = vmatprep.subr.bf16.mxu0 %v7720_v41  ;;  %v5783_v63 = vmax.f32 %v8577_v51, 0.0  ;;  %v5287_v1 = vpop.f32.mrb[3].mxu1  ;;  %5670 = vmatprep.subr.bf16.mxu1 %v7722_v42  ;;  %v625_v38 = vld [vmem:[#allocation8 + $0xef0] sm:$0xff]  ;;  %v626_v40 = vld [vmem:[#allocation8 + $0xef8] sm:$0xff]  ;;  %v7751_v41 = vcombine.low %v613_v28, %v617_v29  ;;  %v7753_v23 = vcombine.low %v614_v30, %v618_v13 }
 0x2c3   :  { %v5782_v0 = vmax.f32 %v8579_v52, 0.0  ;;  %v5784_v5 = vmax.f32 %v8582_v59, 0.0  ;;  %v7760_v42 = vcombine.high %v621_v36, %v625_v38  ;;  %v7762_v43 = vcombine.high %v622_v39, %v626_v40  ;;  %v630_v49 = vld [vmem:[#allocation8 + $0xf18] sm:$0xff]  ;;  %v637_v60 = vld [vmem:[#allocation8 + $0xf50] sm:$0xff] }
 0x2c4   :  { %v7759_v22 = vcombine.low %v621_v36, %v625_v38  ;;  %v7761_v53 = vcombine.low %v622_v39, %v626_v40  ;;  %v7768_v54 = vcombine.high %v629_v44, %v633_v48  ;;  %v641_v61 = vld [vmem:[#allocation8 + $0xf70] sm:$0xff]  ;;  %v7767_v1 = vcombine.low %v629_v44, %v633_v48 }
 0x2c5   :  { %5425 = vmatpush1.bf16.msra.mxu0 %v7719_v56  ;;  %5671 = vmatpush1.bf16.msra.mxu1 %v7721_v33  ;;  %v7770_v56 = vcombine.high %v630_v49, %v634_v50  ;;  %v638_v33 = vld [vmem:[#allocation8 + $0xf58] sm:$0xff]  ;;  %v7776_v3 = vcombine.high %v637_v60, %v641_v61  ;;  %v649_v7 = vld [vmem:[#allocation8 + $0xfb0] sm:$0xff] }
 0x2c6   :  { %5426 = vmatprep.subr.bf16.mxu0 %v7728_v62  ;;  %5672 = vmatprep.subr.bf16.mxu1 %v7730_v37  ;;  %v642_v62 = vld [vmem:[#allocation8 + $0xf78] sm:$0xff]  ;;  %v7769_v37 = vcombine.low %v630_v49, %v634_v50  ;;  %v7784_v12 = vcombine.high %v645_v6, %v649_v7  ;;  %v653_v16 = vld [vmem:[#allocation8 + $0xfd0] sm:$0xff] }
 0x2c7   :  { %v7778_v4 = vcombine.high %v638_v33, %v642_v62  ;;  %v657_v17 = vld [vmem:[#allocation8 + $0xff0] sm:$0xff] }
 0x2c8   :  { %v7792_v28 = vcombine.high %v653_v16, %v657_v17  ;;  %v661_v30 = vld [vmem:[#allocation8 + $0x1010] sm:$0xff] }
 0x2c9   :  { %5427 = vmatpush1.bf16.msra.mxu0 %v7727_v8  ;;  %5673 = vmatpush1.bf16.msra.mxu1 %v7729_v10  ;;  %v646_v8 = vld [vmem:[#allocation8 + $0xf98] sm:$0xff]  ;;  %v665_v13 = vld [vmem:[#allocation8 + $0x1030] sm:$0xff] }
 0x2ca   :  { %5428 = vmatprep.subr.bf16.mxu0 %v7736_v11  ;;  %5674 = vmatprep.subr.bf16.mxu1 %v7738_v47  ;;  %v650_v10 = vld [vmem:[#allocation8 + $0xfb8] sm:$0xff]  ;;  %v7775_v11 = vcombine.low %v637_v60, %v641_v61  ;;  %v7777_v47 = vcombine.low %v638_v33, %v642_v62  ;;  %v7800_v36 = vcombine.high %v661_v30, %v665_v13  ;;  %v669_v39 = vld [vmem:[#allocation8 + $0x1050] sm:$0xff] }
 0x2cb   :  { %v7786_v14 = vcombine.high %v646_v8, %v650_v10  ;;  %v673_v40 = vld [vmem:[#allocation8 + $0x1070] sm:$0xff] }
 0x2cc   :  { %v7808_v44 = vcombine.high %v669_v39, %v673_v40  ;;  %v677_v49 = vld [vmem:[#allocation8 + $0x1090] sm:$0xff] }
 0x2cd   :  { %5429 = vmatpush1.bf16.msra.mxu0 %v7735_v18  ;;  %5675 = vmatpush1.bf16.msra.mxu1 %v7737_v19  ;;  %v654_v18 = vld [vmem:[#allocation8 + $0xfd8] sm:$0xff]  ;;  %v681_v50 = vld [vmem:[#allocation8 + $0x10b0] sm:$0xff] }
 0x2ce   :  { %5430 = vmatprep.subr.bf16.mxu0 %v7744_v20  ;;  %5676 = vmatprep.subr.bf16.mxu1 %v7746_v25  ;;  %v658_v19 = vld [vmem:[#allocation8 + $0xff8] sm:$0xff]  ;;  %v7783_v20 = vcombine.low %v645_v6, %v649_v7  ;;  %v7785_v25 = vcombine.low %v646_v8, %v650_v10  ;;  %v7816_v60 = vcombine.high %v677_v49, %v681_v50  ;;  %v685_v33 = vld [vmem:[#allocation8 + $0x10d0] sm:$0xff] }
 0x2cf   :  { %v7794_v29 = vcombine.high %v654_v18, %v658_v19  ;;  %v689_v62 = vld [vmem:[#allocation8 + $0x10f0] sm:$0xff]  ;;  %v694_v10 = vld [vmem:[#allocation8 + $0x1118] sm:$0xff] }
 0x2d0   :  { %v693_v7 = vld [vmem:[#allocation8 + $0x1110] sm:$0xff] }
 0x2d1   :  { %5431 = vmatpush1.bf16.msra.mxu0 %v7743_v31  ;;  %5677 = vmatpush1.bf16.msra.mxu1 %v7745_v32  ;;  %v662_v31 = vld [vmem:[#allocation8 + $0x1018] sm:$0xff]  ;;  %v697_v8 = vld [vmem:[#allocation8 + $0x1130] sm:$0xff] }
 0x2d2   :  { %5432 = vmatprep.subr.bf16.mxu0 %v7752_v34  ;;  %5678 = vmatprep.subr.bf16.mxu1 %v7754_v35  ;;  %v666_v32 = vld [vmem:[#allocation8 + $0x1038] sm:$0xff]  ;;  %v7791_v34 = vcombine.low %v653_v16, %v657_v17  ;;  %v7793_v35 = vcombine.low %v654_v18, %v658_v19  ;;  %v701_v16 = vld [vmem:[#allocation8 + $0x1150] sm:$0xff] }
 0x2d3   :  { %v7802_v38 = vcombine.high %v662_v31, %v666_v32  ;;  %v705_v17 = vld [vmem:[#allocation8 + $0x1170] sm:$0xff]  ;;  %v702_v18 = vld [vmem:[#allocation8 + $0x1158] sm:$0xff] }
 0x2d4   :  { %v706_v19 = vld [vmem:[#allocation8 + $0x1178] sm:$0xff] }
 0x2d5   :  { %5433 = vmatpush1.bf16.msra.mxu0 %v7751_v41  ;;  %5679 = vmatpush1.bf16.msra.mxu1 %v7753_v23  ;;  %v670_v41 = vld [vmem:[#allocation8 + $0x1058] sm:$0xff] }
 0x2d6   :  { %5434 = vmatprep.subr.bf16.mxu0 %v7760_v42  ;;  %5680 = vmatprep.subr.bf16.mxu1 %v7762_v43  ;;  %v674_v23 = vld [vmem:[#allocation8 + $0x1078] sm:$0xff]  ;;  %v7799_v42 = vcombine.low %v661_v30, %v665_v13  ;;  %v7801_v43 = vcombine.low %v662_v31, %v666_v32  ;;  %v709_v30 = vld [vmem:[#allocation8 + $0x1190] sm:$0xff] }
 0x2d7   :  { %v7810_v48 = vcombine.high %v670_v41, %v674_v23  ;;  %v713_v13 = vld [vmem:[#allocation8 + $0x11b0] sm:$0xff]  ;;  %v710_v31 = vld [vmem:[#allocation8 + $0x1198] sm:$0xff] }
 0x2d8   :  { %v714_v32 = vld [vmem:[#allocation8 + $0x11b8] sm:$0xff] }
 0x2d9   :  { %5435 = vmatpush1.bf16.msra.mxu0 %v7759_v22  ;;  %5681 = vmatpush1.bf16.msra.mxu1 %v7761_v53  ;;  %v678_v22 = vld [vmem:[#allocation8 + $0x1098] sm:$0xff] }
 0x2da   :  { %5436 = vmatprep.subr.bf16.mxu0 %v7768_v54  ;;  %5682 = vmatprep.subr.bf16.mxu1 %v7770_v56  ;;  %v682_v53 = vld [vmem:[#allocation8 + $0x10b8] sm:$0xff]  ;;  %v7807_v54 = vcombine.low %v669_v39, %v673_v40  ;;  %v7809_v56 = vcombine.low %v670_v41, %v674_v23  ;;  %v717_v39 = vld [vmem:[#allocation8 + $0x11d0] sm:$0xff] }
 0x2db   :  { %v7818_v61 = vcombine.high %v678_v22, %v682_v53  ;;  %v721_v40 = vld [vmem:[#allocation8 + $0x11f0] sm:$0xff]  ;;  %v718_v41 = vld [vmem:[#allocation8 + $0x11d8] sm:$0xff] }
 0x2dc   :  { %v722_v23 = vld [vmem:[#allocation8 + $0x11f8] sm:$0xff] }
 0x2dd   :  { %5437 = vmatpush1.bf16.msra.mxu0 %v7767_v1  ;;  %5683 = vmatpush1.bf16.msra.mxu1 %v7769_v37  ;;  %v686_v1 = vld [vmem:[#allocation8 + $0x10d8] sm:$0xff] }
 0x2de   :  { %5438 = vmatprep.subr.bf16.mxu0 %v7776_v3  ;;  %5684 = vmatprep.subr.bf16.mxu1 %v7778_v4  ;;  %v690_v37 = vld [vmem:[#allocation8 + $0x10f8] sm:$0xff]  ;;  %v7815_v3 = vcombine.low %v677_v49, %v681_v50  ;;  %v7824_v4 = vcombine.high %v685_v33, %v689_v62  ;;  %v725_v49 = vld [vmem:[#allocation8 + $0x1210] sm:$0xff] }
 0x2df   :  { %v7826_v6 = vcombine.high %v686_v1, %v690_v37  ;;  %v729_v50 = vld [vmem:[#allocation8 + $0x1230] sm:$0xff] }
 0x2e1   :  { %5439 = vmatpush1.bf16.msra.mxu0 %v7775_v11  ;;  %5685 = vmatpush1.bf16.msra.mxu1 %v7777_v47  ;;  %v698_v11 = vld [vmem:[#allocation8 + $0x1138] sm:$0xff]  ;;  %v7823_v47 = vcombine.low %v685_v33, %v689_v62  ;;  %v733_v33 = vld [vmem:[#allocation8 + $0x1250] sm:$0xff] }
 0x2e2   :  { %5440 = vmatprep.subr.bf16.mxu0 %v7784_v12  ;;  %5686 = vmatprep.subr.bf16.mxu1 %v7786_v14  ;;  %v7825_v12 = vcombine.low %v686_v1, %v690_v37  ;;  %v7832_v14 = vcombine.high %v693_v7, %v697_v8  ;;  %v737_v62 = vld [vmem:[#allocation8 + $0x1270] sm:$0xff]  ;;  %v734_v1 = vld [vmem:[#allocation8 + $0x1258] sm:$0xff] }
 0x2e3   :  { %v738_v37 = vld [vmem:[#allocation8 + $0x1278] sm:$0xff] }
 0x2e5   :  { %5441 = vmatpush1.bf16.msra.mxu0 %v7783_v20  ;;  %5687 = vmatpush1.bf16.msra.mxu1 %v7785_v25  ;;  %v7831_v20 = vcombine.low %v693_v7, %v697_v8  ;;  %v7833_v25 = vcombine.low %v694_v10, %v698_v11  ;;  %v741_v7 = vld [vmem:[#allocation8 + $0x1290] sm:$0xff] }
 0x2e6   :  { %5442 = vmatprep.subr.bf16.mxu0 %v7792_v28  ;;  %5688 = vmatprep.subr.bf16.mxu1 %v7794_v29  ;;  %v7840_v28 = vcombine.high %v701_v16, %v705_v17  ;;  %v7842_v29 = vcombine.high %v702_v18, %v706_v19  ;;  %v745_v8 = vld [vmem:[#allocation8 + $0x12b0] sm:$0xff] }
 0x2e9   :  { %5443 = vmatpush1.bf16.msra.mxu0 %v7791_v34  ;;  %5689 = vmatpush1.bf16.msra.mxu1 %v7793_v35  ;;  %v7839_v34 = vcombine.low %v701_v16, %v705_v17  ;;  %v7841_v35 = vcombine.low %v702_v18, %v706_v19  ;;  %v749_v16 = vld [vmem:[#allocation8 + $0x12d0] sm:$0xff]  ;;  %v750_v18 = vld [vmem:[#allocation8 + $0x12d8] sm:$0xff] }
 0x2ea   :  { %5453 = vmatprep.subr.bf16.mxu0 %v7800_v36  ;;  %5699 = vmatprep.subr.bf16.mxu1 %v7802_v38  ;;  %v7848_v36 = vcombine.high %v709_v30, %v713_v13  ;;  %v7850_v38 = vcombine.high %v710_v31, %v714_v32  ;;  %v753_v17 = vld [vmem:[#allocation8 + $0x12f0] sm:$0xff]  ;;  %v754_v19 = vld [vmem:[#allocation8 + $0x12f8] sm:$0xff] }
 0x2ec   :  { %5445 = vmatmul.mubr.bf16.vlgmr.msra.gmra.mrb[4].mxu0 %v8526_v55  ;;  %5691 = vmatmul.mubr.bf16.vlgmr.msra.gmra.mrb[4].mxu1 %v8526_v55  ;;  %v7817_v55 = vcombine.low %v678_v22, %v682_v53  ;;  %v726_v22 = vld [vmem:[#allocation8 + $0x1218] sm:$0xff] }
 0x2ed   :  { %5454 = vmatpush1.bf16.msra.mxu0 %v7799_v42  ;;  %5700 = vmatpush1.bf16.msra.mxu1 %v7801_v43  ;;  %v7847_v42 = vcombine.low %v709_v30, %v713_v13  ;;  %v7849_v43 = vcombine.low %v710_v31, %v714_v32  ;;  %v730_v53 = vld [vmem:[#allocation8 + $0x1238] sm:$0xff]  ;;  %v757_v30 = vld [vmem:[#allocation8 + $0x1310] sm:$0xff] }
 0x2ee   :  { %5455 = vmatprep.subr.bf16.mxu0 %v7808_v44  ;;  %5701 = vmatprep.subr.bf16.mxu1 %v7810_v48  ;;  %v7856_v44 = vcombine.high %v717_v39, %v721_v40  ;;  %v7858_v48 = vcombine.high %v718_v41, %v722_v23  ;;  %v761_v13 = vld [vmem:[#allocation8 + $0x1330] sm:$0xff]  ;;  %v758_v31 = vld [vmem:[#allocation8 + $0x1318] sm:$0xff] }
 0x2ef   :  { %5485 = vmatprep.mubr.bf16.mxu0 %v8528_v2  ;;  %5731 = vmatprep.mubr.bf16.mxu1 %v8528_v2  ;;  %v7834_v2 = vcombine.high %v694_v10, %v698_v11  ;;  %v742_v10 = vld [vmem:[#allocation8 + $0x1298] sm:$0xff] }
 0x2f0   :  { %v746_v11 = vld [vmem:[#allocation8 + $0x12b8] sm:$0xff] }
 0x2f1   :  { %5456 = vmatpush1.bf16.msra.mxu0 %v7807_v54  ;;  %5702 = vmatpush1.bf16.msra.mxu1 %v7809_v56  ;;  %v7855_v54 = vcombine.low %v717_v39, %v721_v40  ;;  %v7857_v56 = vcombine.low %v718_v41, %v722_v23  ;;  %v762_v32 = vld [vmem:[#allocation8 + $0x1338] sm:$0xff]  ;;  %v765_v39 = vld [vmem:[#allocation8 + $0x1350] sm:$0xff] }
 0x2f2   :  { %5457 = vmatprep.subr.bf16.mxu0 %v7816_v60  ;;  %5703 = vmatprep.subr.bf16.mxu1 %v7818_v61  ;;  %v7864_v60 = vcombine.high %v725_v49, %v729_v50  ;;  %v7866_v61 = vcombine.high %v726_v22, %v730_v53  ;;  %v769_v40 = vld [vmem:[#allocation8 + $0x1370] sm:$0xff]  ;;  %v766_v41 = vld [vmem:[#allocation8 + $0x1358] sm:$0xff] }
 0x2f3   :  { %v770_v23 = vld [vmem:[#allocation8 + $0x1378] sm:$0xff] }
 0x2f5   :  { %5458 = vmatpush1.bf16.msra.mxu0 %v7815_v3  ;;  %5704 = vmatpush1.bf16.msra.mxu1 %v7817_v55  ;;  %v7863_v3 = vcombine.low %v725_v49, %v729_v50  ;;  %v7865_v55 = vcombine.low %v726_v22, %v730_v53  ;;  %v773_v49 = vld [vmem:[#allocation8 + $0x1390] sm:$0xff]  ;;  %v774_v22 = vld [vmem:[#allocation8 + $0x1398] sm:$0xff] }
 0x2f6   :  { %5459 = vmatprep.subr.bf16.mxu0 %v7824_v4  ;;  %5705 = vmatprep.subr.bf16.mxu1 %v7826_v6  ;;  %v7872_v4 = vcombine.high %v733_v33, %v737_v62  ;;  %v7874_v6 = vcombine.high %v734_v1, %v738_v37  ;;  %v777_v50 = vld [vmem:[#allocation8 + $0x13b0] sm:$0xff]  ;;  %v778_v53 = vld [vmem:[#allocation8 + $0x13b8] sm:$0xff] }
 0x2f9   :  { %5460 = vmatpush1.bf16.msra.mxu0 %v7823_v47  ;;  %5706 = vmatpush1.bf16.msra.mxu1 %v7825_v12  ;;  %v7871_v47 = vcombine.low %v733_v33, %v737_v62  ;;  %v7873_v12 = vcombine.low %v734_v1, %v738_v37  ;;  %v781_v33 = vld [vmem:[#allocation8 + $0x13d0] sm:$0xff]  ;;  %v782_v1 = vld [vmem:[#allocation8 + $0x13d8] sm:$0xff] }
 0x2fa   :  { %5461 = vmatprep.subr.bf16.mxu0 %v7832_v14  ;;  %5707 = vmatprep.subr.bf16.mxu1 %v7834_v2  ;;  %v7880_v14 = vcombine.high %v741_v7, %v745_v8  ;;  %v7882_v2 = vcombine.high %v742_v10, %v746_v11  ;;  %v785_v62 = vld [vmem:[#allocation8 + $0x13f0] sm:$0xff]  ;;  %v786_v37 = vld [vmem:[#allocation8 + $0x13f8] sm:$0xff] }
 0x2fd   :  { %5462 = vmatpush1.bf16.msra.mxu0 %v7831_v20  ;;  %5708 = vmatpush1.bf16.msra.mxu1 %v7833_v25  ;;  %v7879_v20 = vcombine.low %v741_v7, %v745_v8  ;;  %v7881_v25 = vcombine.low %v742_v10, %v746_v11  ;;  %v789_v7 = vld [vmem:[#allocation8 + $0x1410] sm:$0xff]  ;;  %v790_v10 = vld [vmem:[#allocation8 + $0x1418] sm:$0xff] }
 0x2fe   :  { %5463 = vmatprep.subr.bf16.mxu0 %v7840_v28  ;;  %5709 = vmatprep.subr.bf16.mxu1 %v7842_v29  ;;  %v7888_v28 = vcombine.high %v749_v16, %v753_v17  ;;  %v7890_v29 = vcombine.high %v750_v18, %v754_v19  ;;  %v793_v8 = vld [vmem:[#allocation8 + $0x1430] sm:$0xff]  ;;  %v794_v11 = vld [vmem:[#allocation8 + $0x1438] sm:$0xff] }
 0x301   :  { %5464 = vmatpush1.bf16.msra.mxu0 %v7839_v34  ;;  %5710 = vmatpush1.bf16.msra.mxu1 %v7841_v35  ;;  %v7887_v34 = vcombine.low %v749_v16, %v753_v17  ;;  %v7889_v35 = vcombine.low %v750_v18, %v754_v19  ;;  %v797_v16 = vld [vmem:[#allocation8 + $0x1450] sm:$0xff]  ;;  %v798_v18 = vld [vmem:[#allocation8 + $0x1458] sm:$0xff] }
 0x302   :  { %5465 = vmatprep.subr.bf16.mxu0 %v7848_v36  ;;  %5711 = vmatprep.subr.bf16.mxu1 %v7850_v38  ;;  %v7896_v36 = vcombine.high %v757_v30, %v761_v13  ;;  %v7898_v38 = vcombine.high %v758_v31, %v762_v32  ;;  %v801_v17 = vld [vmem:[#allocation8 + $0x1470] sm:$0xff]  ;;  %v802_v19 = vld [vmem:[#allocation8 + $0x1478] sm:$0xff] }
 0x305   :  { %5466 = vmatpush1.bf16.msra.mxu0 %v7847_v42  ;;  %5712 = vmatpush1.bf16.msra.mxu1 %v7849_v43  ;;  %v7895_v42 = vcombine.low %v757_v30, %v761_v13  ;;  %v7897_v43 = vcombine.low %v758_v31, %v762_v32  ;;  %v805_v30 = vld [vmem:[#allocation8 + $0x1490] sm:$0xff]  ;;  %v806_v31 = vld [vmem:[#allocation8 + $0x1498] sm:$0xff] }
 0x306   :  { %5467 = vmatprep.subr.bf16.mxu0 %v7856_v44  ;;  %5713 = vmatprep.subr.bf16.mxu1 %v7858_v48  ;;  %v7904_v44 = vcombine.high %v765_v39, %v769_v40  ;;  %v7906_v48 = vcombine.high %v766_v41, %v770_v23  ;;  %v809_v13 = vld [vmem:[#allocation8 + $0x14b0] sm:$0xff]  ;;  %v810_v32 = vld [vmem:[#allocation8 + $0x14b8] sm:$0xff] }
 0x309   :  { %5468 = vmatpush1.bf16.msra.mxu0 %v7855_v54  ;;  %5714 = vmatpush1.bf16.msra.mxu1 %v7857_v56  ;;  %v7903_v54 = vcombine.low %v765_v39, %v769_v40  ;;  %v7905_v56 = vcombine.low %v766_v41, %v770_v23  ;;  %v813_v39 = vld [vmem:[#allocation8 + $0x14d0] sm:$0xff]  ;;  %v814_v41 = vld [vmem:[#allocation8 + $0x14d8] sm:$0xff] }
 0x30a   :  { %5469 = vmatprep.subr.bf16.mxu0 %v7864_v60  ;;  %5715 = vmatprep.subr.bf16.mxu1 %v7866_v61  ;;  %v7912_v60 = vcombine.high %v773_v49, %v777_v50  ;;  %v7914_v61 = vcombine.high %v774_v22, %v778_v53  ;;  %v817_v40 = vld [vmem:[#allocation8 + $0x14f0] sm:$0xff]  ;;  %v818_v23 = vld [vmem:[#allocation8 + $0x14f8] sm:$0xff] }
 0x30d   :  { %5470 = vmatpush1.bf16.msra.mxu0 %v7863_v3  ;;  %5716 = vmatpush1.bf16.msra.mxu1 %v7865_v55  ;;  %v7911_v3 = vcombine.low %v773_v49, %v777_v50  ;;  %v7913_v55 = vcombine.low %v774_v22, %v778_v53  ;;  %v825_v49 = vld [vmem:[#allocation8 + $0x1530] sm:$0xff]  ;;  %v822_v50 = vld [vmem:[#allocation8 + $0x1518] sm:$0xff]  ;;  %v7951_v53 = vcombine.low %v813_v39, %v817_v40 }
 0x30e   :  { %5471 = vmatprep.subr.bf16.mxu0 %v7872_v4  ;;  %5717 = vmatprep.subr.bf16.mxu1 %v7874_v6  ;;  %v7920_v4 = vcombine.high %v781_v33, %v785_v62  ;;  %v7922_v6 = vcombine.high %v782_v1, %v786_v37  ;;  %v826_v22 = vld [vmem:[#allocation8 + $0x1538] sm:$0xff] }
 0x311   :  { %5472 = vmatpush1.bf16.msra.mxu0 %v7871_v47  ;;  %5718 = vmatpush1.bf16.msra.mxu1 %v7873_v12  ;;  %v7919_v47 = vcombine.low %v781_v33, %v785_v62  ;;  %v7921_v12 = vcombine.low %v782_v1, %v786_v37  ;;  %v830_v33 = vld [vmem:[#allocation8 + $0x1558] sm:$0xff]  ;;  %v7961_v37 = vcombine.low %v822_v50, %v826_v22 }
 0x312   :  { %5473 = vmatprep.subr.bf16.mxu0 %v7880_v14  ;;  %5719 = vmatprep.subr.bf16.mxu1 %v7882_v2  ;;  %v7928_v14 = vcombine.high %v789_v7, %v793_v8  ;;  %v7930_v2 = vcombine.high %v790_v10, %v794_v11  ;;  %v834_v62 = vld [vmem:[#allocation8 + $0x1578] sm:$0xff] }
 0x315   :  { %5474 = vmatpush1.bf16.msra.mxu0 %v7879_v20  ;;  %5720 = vmatpush1.bf16.msra.mxu1 %v7881_v25  ;;  %v7927_v20 = vcombine.low %v789_v7, %v793_v8  ;;  %v7929_v25 = vcombine.low %v790_v10, %v794_v11  ;;  %v838_v7 = vld [vmem:[#allocation8 + $0x1598] sm:$0xff]  ;;  %v7969_v11 = vcombine.low %v830_v33, %v834_v62 }
 0x316   :  { %5475 = vmatprep.subr.bf16.mxu0 %v7888_v28  ;;  %5721 = vmatprep.subr.bf16.mxu1 %v7890_v29  ;;  %v7936_v28 = vcombine.high %v797_v16, %v801_v17  ;;  %v7938_v29 = vcombine.high %v798_v18, %v802_v19  ;;  %v842_v8 = vld [vmem:[#allocation8 + $0x15b8] sm:$0xff] }
 0x319   :  { %5476 = vmatpush1.bf16.msra.mxu0 %v7887_v34  ;;  %5722 = vmatpush1.bf16.msra.mxu1 %v7889_v35  ;;  %v7935_v34 = vcombine.low %v797_v16, %v801_v17  ;;  %v7937_v35 = vcombine.low %v798_v18, %v802_v19  ;;  %v846_v16 = vld [vmem:[#allocation8 + $0x15d8] sm:$0xff]  ;;  %v7977_v19 = vcombine.low %v838_v7, %v842_v8 }
 0x31a   :  { %5477 = vmatprep.subr.bf16.mxu0 %v7896_v36  ;;  %5723 = vmatprep.subr.bf16.mxu1 %v7898_v38  ;;  %v7944_v36 = vcombine.high %v805_v30, %v809_v13  ;;  %v7946_v38 = vcombine.high %v806_v31, %v810_v32  ;;  %v850_v17 = vld [vmem:[#allocation8 + $0x15f8] sm:$0xff] }
 0x31d   :  { %5478 = vmatpush1.bf16.msra.mxu0 %v7895_v42  ;;  %5724 = vmatpush1.bf16.msra.mxu1 %v7897_v43  ;;  %v7943_v42 = vcombine.low %v805_v30, %v809_v13  ;;  %v7952_v43 = vcombine.high %v813_v39, %v817_v40  ;;  %v854_v30 = vld [vmem:[#allocation8 + $0x1618] sm:$0xff] }
 0x31e   :  { %5479 = vmatprep.subr.bf16.mxu0 %v7904_v44  ;;  %5725 = vmatprep.subr.bf16.mxu1 %v7906_v48  ;;  %v7954_v44 = vcombine.high %v814_v41, %v818_v23  ;;  %v821_v48 = vld [vmem:[#allocation8 + $0x1510] sm:$0xff]  ;;  %v858_v13 = vld [vmem:[#allocation8 + $0x1638] sm:$0xff] }
 0x31f   :  { %v7959_v1 = vcombine.low %v821_v48, %v825_v49  ;;  %v862_v39 = vld [vmem:[#allocation8 + $0x1658] sm:$0xff] }
 0x320   :  { %v866_v40 = vld [vmem:[#allocation8 + $0x1678] sm:$0xff] }
 0x321   :  { %5480 = vmatpush1.bf16.msra.mxu0 %v7903_v54  ;;  %5726 = vmatpush1.bf16.msra.mxu1 %v7905_v56  ;;  %v7953_v54 = vcombine.low %v814_v41, %v818_v23  ;;  %v7960_v56 = vcombine.high %v821_v48, %v825_v49  ;;  %v7993_v23 = vcombine.low %v854_v30, %v858_v13  ;;  %v870_v48 = vld [vmem:[#allocation8 + $0x1698] sm:$0xff] }
 0x322   :  { %5481 = vmatprep.subr.bf16.mxu0 %v7912_v60  ;;  %5727 = vmatprep.subr.bf16.mxu1 %v7914_v61  ;;  %v829_v60 = vld [vmem:[#allocation8 + $0x1550] sm:$0xff]  ;;  %v874_v49 = vld [vmem:[#allocation8 + $0x16b8] sm:$0xff] }
 0x323   :  { %v833_v61 = vld [vmem:[#allocation8 + $0x1570] sm:$0xff] }
 0x324   :  { %v7967_v10 = vcombine.low %v829_v60, %v833_v61 }
 0x325   :  { %5482 = vmatpush1.bf16.msra.mxu0 %v7911_v3  ;;  %5728 = vmatpush1.bf16.msra.mxu1 %v7913_v55  ;;  %v7968_v3 = vcombine.high %v829_v60, %v833_v61  ;;  %v7970_v55 = vcombine.high %v830_v33, %v834_v62  ;;  %v878_v60 = vld [vmem:[#allocation8 + $0x16d8] sm:$0xff]  ;;  %v8009_v62 = vcombine.low %v870_v48, %v874_v49 }
 0x326   :  { %5483 = vmatprep.subr.bf16.mxu0 %v7920_v4  ;;  %5729 = vmatprep.subr.bf16.mxu1 %v7922_v6  ;;  %v837_v4 = vld [vmem:[#allocation8 + $0x1590] sm:$0xff]  ;;  %v882_v61 = vld [vmem:[#allocation8 + $0x16f8] sm:$0xff] }
 0x327   :  { %v841_v6 = vld [vmem:[#allocation8 + $0x15b0] sm:$0xff] }
 0x328   :  { %v7975_v18 = vcombine.low %v837_v4, %v841_v6 }
 0x329   :  { %5484 = vmatpush1.bf16.msra.mxu0 %v7919_v47  ;;  %5730 = vmatpush1.bf16.msra.mxu1 %v7921_v12  ;;  %v7976_v47 = vcombine.high %v837_v4, %v841_v6  ;;  %v7978_v12 = vcombine.high %v838_v7, %v842_v8  ;;  %v886_v4 = vld [vmem:[#allocation8 + $0x1718] sm:$0xff]  ;;  %v8017_v8 = vcombine.low %v878_v60, %v882_v61 }
 0x32a   :  { %5494 = vmatprep.subr.bf16.mxu0 %v7928_v14  ;;  %5740 = vmatprep.subr.bf16.mxu1 %v7930_v2  ;;  %v845_v14 = vld [vmem:[#allocation8 + $0x15d0] sm:$0xff]  ;;  %v890_v6 = vld [vmem:[#allocation8 + $0x1738] sm:$0xff] }
 0x32b   :  { %v849_v2 = vld [vmem:[#allocation8 + $0x15f0] sm:$0xff] }
 0x32c   :  { %5486 = vmatmul.mubr.bf16.vlgmr.msra.gmra.mrb[4].mxu0 %v8534_v15  ;;  %5732 = vmatmul.mubr.bf16.vlgmr.msra.gmra.mrb[4].mxu1 %v8534_v15  ;;  %v7945_v15 = vcombine.low %v806_v31, %v810_v32  ;;  %v7983_v31 = vcombine.low %v845_v14, %v849_v2  ;;  %v7985_v32 = vcombine.low %v846_v16, %v850_v17 }
 0x32d   :  { %5495 = vmatpush1.bf16.msra.mxu0 %v7927_v20  ;;  %5741 = vmatpush1.bf16.msra.mxu1 %v7929_v25  ;;  %v7984_v20 = vcombine.high %v845_v14, %v849_v2  ;;  %v7986_v25 = vcombine.high %v846_v16, %v850_v17  ;;  %v894_v14 = vld [vmem:[#allocation8 + $0x1758] sm:$0xff]  ;;  %v8025_v17 = vcombine.low %v886_v4, %v890_v6 }
 0x32e   :  { %5496 = vmatprep.subr.bf16.mxu0 %v7936_v28  ;;  %5742 = vmatprep.subr.bf16.mxu1 %v7938_v29  ;;  %v853_v28 = vld [vmem:[#allocation8 + $0x1610] sm:$0xff]  ;;  %v898_v2 = vld [vmem:[#allocation8 + $0x1778] sm:$0xff] }
 0x32f   :  { %5526 = vmatprep.mubr.bf16.mxu0 %v8536_v27  ;;  %5772 = vmatprep.mubr.bf16.mxu1 %v8536_v27  ;;  %v7962_v27 = vcombine.high %v822_v50, %v826_v22  ;;  %v857_v29 = vld [vmem:[#allocation8 + $0x1630] sm:$0xff]  ;;  %v8001_v22 = vcombine.low %v862_v39, %v866_v40 }
 0x330   :  { %v7991_v41 = vcombine.low %v853_v28, %v857_v29 }
 0x331   :  { %5497 = vmatpush1.bf16.msra.mxu0 %v7935_v34  ;;  %5743 = vmatpush1.bf16.msra.mxu1 %v7937_v35  ;;  %v7992_v34 = vcombine.high %v853_v28, %v857_v29  ;;  %v7994_v35 = vcombine.high %v854_v30, %v858_v13  ;;  %v902_v28 = vld [vmem:[#allocation8 + $0x1798] sm:$0xff]  ;;  %v8033_v13 = vcombine.low %v894_v14, %v898_v2 }
 0x332   :  { %5498 = vmatprep.subr.bf16.mxu0 %v7944_v36  ;;  %5744 = vmatprep.subr.bf16.mxu1 %v7946_v38  ;;  %v861_v36 = vld [vmem:[#allocation8 + $0x1650] sm:$0xff]  ;;  %v906_v29 = vld [vmem:[#allocation8 + $0x17b8] sm:$0xff] }
 0x333   :  { %v865_v38 = vld [vmem:[#allocation8 + $0x1670] sm:$0xff] }
 0x334   :  { %v7999_v50 = vcombine.low %v861_v36, %v865_v38 }
 0x335   :  { %5499 = vmatpush1.bf16.msra.mxu0 %v7943_v42  ;;  %5745 = vmatpush1.bf16.msra.mxu1 %v7945_v15  ;;  %v8000_v42 = vcombine.high %v861_v36, %v865_v38  ;;  %v8002_v15 = vcombine.high %v862_v39, %v866_v40  ;;  %v910_v36 = vld [vmem:[#allocation8 + $0x17d8] sm:$0xff]  ;;  %v8041_v40 = vcombine.low %v902_v28, %v906_v29 }
 0x336   :  { %5500 = vmatprep.subr.bf16.mxu0 %v7952_v43  ;;  %5746 = vmatprep.subr.bf16.mxu1 %v7954_v44  ;;  %v869_v43 = vld [vmem:[#allocation8 + $0x1690] sm:$0xff]  ;;  %v914_v38 = vld [vmem:[#allocation8 + $0x17f8] sm:$0xff] }
 0x337   :  { %v873_v44 = vld [vmem:[#allocation8 + $0x16b0] sm:$0xff] }
 0x338   :  { %v8007_v33 = vcombine.low %v869_v43, %v873_v44 }
 0x339   :  { %5501 = vmatpush1.bf16.msra.mxu0 %v7951_v53  ;;  %5747 = vmatpush1.bf16.msra.mxu1 %v7953_v54  ;;  %v8008_v53 = vcombine.high %v869_v43, %v873_v44  ;;  %v8010_v54 = vcombine.high %v870_v48, %v874_v49  ;;  %v935_v43 = vsub.s32 4, %v8560_v9  ;;  %v943_v44 = vsub.s32 6, %v8560_v9 }
 0x33a   :  { %5502 = vmatprep.subr.bf16.mxu0 %v7960_v56  ;;  %5748 = vmatprep.subr.bf16.mxu1 %v7962_v27  ;;  %v877_v56 = vld [vmem:[#allocation8 + $0x16d0] sm:$0xff]  ;;  %v939_v48 = vsub.s32 5, %v8560_v9  ;;  %v947_v49 = vsub.s32 7, %v8560_v9 }
 0x33b   :  { %v881_v27 = vld [vmem:[#allocation8 + $0x16f0] sm:$0xff] }
 0x33c   :  { %v8015_v7 = vcombine.low %v877_v56, %v881_v27 }
 0x33d   :  { %5503 = vmatpush1.bf16.msra.mxu0 %v7959_v1  ;;  %5749 = vmatpush1.bf16.msra.mxu1 %v7961_v37  ;;  %v8016_v1 = vcombine.high %v877_v56, %v881_v27  ;;  %v8018_v37 = vcombine.high %v878_v60, %v882_v61 }
 0x33e   :  { %5504 = vmatprep.subr.bf16.mxu0 %v7968_v3  ;;  %5750 = vmatprep.subr.bf16.mxu1 %v7970_v55  ;;  %v885_v3 = vld [vmem:[#allocation8 + $0x1710] sm:$0xff] }
 0x33f   :  { %v889_v55 = vld [vmem:[#allocation8 + $0x1730] sm:$0xff] }
 0x340   :  { %v8023_v16 = vcombine.low %v885_v3, %v889_v55 }
 0x341   :  { %5505 = vmatpush1.bf16.msra.mxu0 %v7967_v10  ;;  %5751 = vmatpush1.bf16.msra.mxu1 %v7969_v11  ;;  %v8024_v10 = vcombine.high %v885_v3, %v889_v55  ;;  %v8026_v11 = vcombine.high %v886_v4, %v890_v6 }
 0x342   :  { %5506 = vmatprep.subr.bf16.mxu0 %v7976_v47  ;;  %5752 = vmatprep.subr.bf16.mxu1 %v7978_v12  ;;  %v893_v47 = vld [vmem:[#allocation8 + $0x1750] sm:$0xff] }
 0x343   :  { %v897_v12 = vld [vmem:[#allocation8 + $0x1770] sm:$0xff] }
 0x344   :  { %v8031_v30 = vcombine.low %v893_v47, %v897_v12 }
 0x345   :  { %5507 = vmatpush1.bf16.msra.mxu0 %v7975_v18  ;;  %5753 = vmatpush1.bf16.msra.mxu1 %v7977_v19  ;;  %v8032_v18 = vcombine.high %v893_v47, %v897_v12  ;;  %v8034_v19 = vcombine.high %v894_v14, %v898_v2 }
 0x346   :  { %5508 = vmatprep.subr.bf16.mxu0 %v7984_v20  ;;  %5754 = vmatprep.subr.bf16.mxu1 %v7986_v25  ;;  %v901_v20 = vld [vmem:[#allocation8 + $0x1790] sm:$0xff] }
 0x347   :  { %v905_v25 = vld [vmem:[#allocation8 + $0x17b0] sm:$0xff] }
 0x348   :  { %v8039_v39 = vcombine.low %v901_v20, %v905_v25 }
 0x349   :  { %5509 = vmatpush1.bf16.msra.mxu0 %v7983_v31  ;;  %5755 = vmatpush1.bf16.msra.mxu1 %v7985_v32  ;;  %v8040_v31 = vcombine.high %v901_v20, %v905_v25  ;;  %v8042_v32 = vcombine.high %v902_v28, %v906_v29 }
 0x34a   :  { %5510 = vmatprep.subr.bf16.mxu0 %v7992_v34  ;;  %5756 = vmatprep.subr.bf16.mxu1 %v7994_v35  ;;  %v909_v34 = vld [vmem:[#allocation8 + $0x17d0] sm:$0xff] }
 0x34b   :  { %v913_v35 = vld [vmem:[#allocation8 + $0x17f0] sm:$0xff] }
 0x34d   :  { %5511 = vmatpush1.bf16.msra.mxu0 %v7991_v41  ;;  %5757 = vmatpush1.bf16.msra.mxu1 %v7993_v23  ;;  %v8048_v41 = vcombine.high %v909_v34, %v913_v35  ;;  %v8050_v23 = vcombine.high %v910_v36, %v914_v38 }
 0x34e   :  { %5512 = vmatprep.subr.bf16.mxu0 %v8000_v42  ;;  %5758 = vmatprep.subr.bf16.mxu1 %v8002_v15  ;;  %v8047_v42 = vcombine.low %v909_v34, %v913_v35  ;;  %v8049_v15 = vcombine.low %v910_v36, %v914_v38 }
 0x351   :  { %5513 = vmatpush1.bf16.msra.mxu0 %v7999_v50  ;;  %5759 = vmatpush1.bf16.msra.mxu1 %v8001_v22  ;;  %v8225_v50 = vld [vmem:[#allocation10] sm:$0xff] }
 0x352   :  { %5514 = vmatprep.subr.bf16.mxu0 %v8008_v53  ;;  %5760 = vmatprep.subr.bf16.mxu1 %v8010_v54  ;;  %v936_v22 = vrot.slane %v8225_v50, %v935_v43  ;;  %v944_v53 = vrot.slane %v8225_v50, %v943_v44  ;;  %v940_v54 = vrot.slane %v8225_v50, %v939_v48 }
 0x355   :  { %5515 = vmatpush1.bf16.msra.mxu0 %v8007_v33  ;;  %5761 = vmatpush1.bf16.msra.mxu1 %v8009_v62 }
 0x356   :  { %5516 = vmatprep.subr.bf16.mxu0 %v8016_v1  ;;  %5762 = vmatprep.subr.bf16.mxu1 %v8018_v37 }
 0x359   :  { %5517 = vmatpush1.bf16.msra.mxu0 %v8015_v7  ;;  %5763 = vmatpush1.bf16.msra.mxu1 %v8017_v8 }
 0x35a   :  { %5518 = vmatprep.subr.bf16.mxu0 %v8024_v10  ;;  %5764 = vmatprep.subr.bf16.mxu1 %v8026_v11 }
 0x35d   :  { %5519 = vmatpush1.bf16.msra.mxu0 %v8023_v16  ;;  %5765 = vmatpush1.bf16.msra.mxu1 %v8025_v17 }
 0x35e   :  { %5520 = vmatprep.subr.bf16.mxu0 %v8032_v18  ;;  %5766 = vmatprep.subr.bf16.mxu1 %v8034_v19 }
 0x361   :  { %5521 = vmatpush1.bf16.msra.mxu0 %v8031_v30  ;;  %5767 = vmatpush1.bf16.msra.mxu1 %v8033_v13 }
 0x362   :  { %5522 = vmatprep.subr.bf16.mxu0 %v8040_v31  ;;  %5768 = vmatprep.subr.bf16.mxu1 %v8042_v32 }
 0x365   :  { %5523 = vmatpush1.bf16.msra.mxu0 %v8039_v39  ;;  %5769 = vmatpush1.bf16.msra.mxu1 %v8041_v40 }
 0x366   :  { %5524 = vmatprep.subr.bf16.mxu0 %v8048_v41  ;;  %5770 = vmatprep.subr.bf16.mxu1 %v8050_v23 }
 0x369   :  { %5525 = vmatpush1.bf16.msra.mxu0 %v8047_v42  ;;  %5771 = vmatpush1.bf16.msra.mxu1 %v8049_v15 }
 0x36c   :  { %5527 = vmatmul.mubr.bf16.vlgmr.msra.gmra.mrb[4].mxu0 %v8542_v45  ;;  %5773 = vmatmul.mubr.bf16.vlgmr.msra.gmra.mrb[4].mxu1 %v8542_v45  ;;  %v948_v45 = vrot.slane %v8225_v50, %v947_v49 }
 0x43f   :  { %v5528_v56 = vpop.f32.mrb[4].mxu0  ;;  %v5774_v60 = vpop.f32.mrb[4].mxu1 }
 0x440   :  { %v8609_v27 = vadd.f32 %v5528_v56, %v936_v22  ;;  %v5530_v61 = vpop.f32.mrb[5].mxu0  ;;  %v8611_v33 = vadd.f32 %v5774_v60, %v944_v53  ;;  %v5776_v1 = vpop.f32.mrb[5].mxu1 }
 0x441   :  { %v8613_v62 = vadd.f32 %v5530_v61, %v940_v54  ;;  %v5532_v37 = vpop.f32.mrb[6].mxu0  ;;  %v8616_v55 = vadd.f32 %v5776_v1, %v948_v45  ;;  %v5778_v4 = vpop.f32.mrb[6].mxu1 }
 0x442   :  { %v5785_v3 = vmax.f32 %v8609_v27, 0.0  ;;  %v5533_v6 = vpop.f32.mrb[7].mxu0  ;;  %v5787_v7 = vmax.f32 %v8611_v33, 0.0  ;;  %v5779_v10 = vpop.f32.mrb[7].mxu1 }
 0x443   :  { %v5786_v8 = vmax.f32 %v8613_v62, 0.0  ;;  %v5788_v11 = vmax.f32 %v8616_v55, 0.0 }
 0x444   :  { %8366 = dma.done.wait [#allocation3], 65536 }
 0x445   :  { %8367 = vsyncadd [#allocation3], 4294901760  ;;  %v8624_v47 = vpack.c.bf16 %v5782_v0, %v5782_v0  ;;  %v5794_v12 = vld [vmem:[#allocation2 + $0x8] sm:$0xff]  ;;  %v5796_v14 = vld [vmem:[#allocation2 + $0x18] sm:$0xff]  ;;  %s8388_s3 = smov [#allocation14]   ;;  %vm7256_vm0 = vcmask 57344  }
 0x446   :  { %v5793_v2 = vld [vmem:[#allocation2] sm:$0xff]  ;;  %6355 = vmatprep.subr.bf16.mxu0 %v5794_v12  ;;  %6519 = vmatprep.subr.bf16.mxu1 %v5796_v14  ;;  %v5795_v16 = vld [vmem:[#allocation2 + $0x10] sm:$0xff]  ;;  %v5802_v17 = vld [vmem:[#allocation2 + $0x48] sm:$0xff]  ;;  %s7264_s12 = sshll.u32 %s8388_s3, 4  ;;  %s7265_s12 = int_to_ptr.vmem [resolvable:$true] %s7264_s12 }
 0x447   :  { %6387 = vmatprep.mubr.bf16.mxu0 %v8624_v47  ;;  %6551 = vmatprep.mubr.bf16.mxu1 %v8624_v47  ;;  %v5804_v18 = vld [vmem:[#allocation2 + $0x58] sm:$0xff]  ;;  %v5801_v52 = vld [vmem:[#allocation2 + $0x40] sm:$0xff]  ;;  %v5803_v19 = vld [vmem:[#allocation2 + $0x50] sm:$0xff]  ;;  %s8338_s0 = scalar_lea.vmem %s7265_s12, 16  ;;  %s8342_s19 = scalar_lea.vmem %s7265_s12, 32 }
 0x448   :  { %6356 = vmatpush1.bf16.msra.mxu0 %v5793_v2  ;;  %6520 = vmatpush1.bf16.msra.mxu1 %v5795_v16  ;;  %v5810_v0 = vld [vmem:[#allocation2 + $0x88] sm:$0xff]  ;;  %v5812_v20 = vld [vmem:[#allocation2 + $0x98] sm:$0xff]  ;;  %v5809_v25 = vld [vmem:[#allocation2 + $0x80] sm:$0xff]  ;;  %p8339_p12 = scmp.ne.s32.totalorder %s7265_s12, %s8338_s0  ;;  %p8343_p13 = scmp.lt.s32.totalorder %s7265_s12, %s7265_s12 }
 0x449   :  { %6357 = vmatprep.subr.bf16.mxu0 %v5802_v17  ;;  %6521 = vmatprep.subr.bf16.mxu1 %v5804_v18  ;;  %v5811_v28 = vld [vmem:[#allocation2 + $0x90] sm:$0xff]  ;;  %v5818_v29 = vld [vmem:[#allocation2 + $0xc8] sm:$0xff]  ;;  %v5820_v30 = vld [vmem:[#allocation2 + $0xd8] sm:$0xff]  ;;  %p8344_p0 = scmp.lt.s32.totalorder %s8342_s19, %s8338_s0 }
 0x44a   :  { %v5817_v13 = vld [vmem:[#allocation2 + $0xc0] sm:$0xff]  ;;  %v5819_v31 = vld [vmem:[#allocation2 + $0xd0] sm:$0xff]  ;;  %v5826_v32 = vld [vmem:[#allocation2 + $0x108] sm:$0xff] }
 0x44b   :  { %v5828_v34 = vld [vmem:[#allocation2 + $0x118] sm:$0xff]  ;;  %v5825_v35 = vld [vmem:[#allocation2 + $0x100] sm:$0xff]  ;;  %v5827_v36 = vld [vmem:[#allocation2 + $0x110] sm:$0xff]  ;;  %p8345_p1 = por %p8344_p0, %p8343_p13 }
 0x44c   :  { %6358 = vmatpush1.bf16.msra.mxu0 %v5801_v52  ;;  %6522 = vmatpush1.bf16.msra.mxu1 %v5803_v19  ;;  %v5834_v38 = vld [vmem:[#allocation2 + $0x148] sm:$0xff]  ;;  %v5836_v39 = vld [vmem:[#allocation2 + $0x158] sm:$0xff]  ;;  %v5833_v40 = vld [vmem:[#allocation2 + $0x140] sm:$0xff] }
 0x44d   :  { %6359 = vmatprep.subr.bf16.mxu0 %v5810_v0  ;;  %6523 = vmatprep.subr.bf16.mxu1 %v5812_v20  ;;  %v5835_v41 = vld [vmem:[#allocation2 + $0x150] sm:$0xff]  ;;  %v5842_v23 = vld [vmem:[#allocation2 + $0x188] sm:$0xff]  ;;  %v5844_v42 = vld [vmem:[#allocation2 + $0x198] sm:$0xff]  ;;  %p8346_p2 = pnand %p8345_p1, %p8339_p12 }
 0x44e   :  { %v5841_v15 = vld [vmem:[#allocation2 + $0x180] sm:$0xff]  ;;  %v5843_v50 = vld [vmem:[#allocation2 + $0x190] sm:$0xff]  ;;  %v5850_v22 = vld [vmem:[#allocation2 + $0x1c8] sm:$0xff] }
 0x44f   :  { %v5852_v53 = vld [vmem:[#allocation2 + $0x1d8] sm:$0xff]  ;;  %v5849_v54 = vld [vmem:[#allocation2 + $0x1c0] sm:$0xff]  ;;  %v5851_v45 = vld [vmem:[#allocation2 + $0x1d0] sm:$0xff] }
 0x450   :  { %6360 = vmatpush1.bf16.msra.mxu0 %v5809_v25  ;;  %6524 = vmatpush1.bf16.msra.mxu1 %v5811_v28  ;;  %v5858_v56 = vld [vmem:[#allocation2 + $0x208] sm:$0xff]  ;;  %v5860_v60 = vld [vmem:[#allocation2 + $0x218] sm:$0xff]  ;;  %v5857_v61 = vld [vmem:[#allocation2 + $0x200] sm:$0xff] }
 0x451   :  { %6361 = vmatprep.subr.bf16.mxu0 %v5818_v29  ;;  %6525 = vmatprep.subr.bf16.mxu1 %v5820_v30  ;;  %v5859_v1 = vld [vmem:[#allocation2 + $0x210] sm:$0xff]  ;;  %v5866_v37 = vld [vmem:[#allocation2 + $0x248] sm:$0xff]  ;;  %v5868_v4 = vld [vmem:[#allocation2 + $0x258] sm:$0xff] }
 0x452   :  { %v5865_v6 = vld [vmem:[#allocation2 + $0x240] sm:$0xff]  ;;  %v5867_v10 = vld [vmem:[#allocation2 + $0x250] sm:$0xff]  ;;  %v5874_v12 = vld [vmem:[#allocation2 + $0x288] sm:$0xff] }
 0x453   :  { %v5876_v14 = vld [vmem:[#allocation2 + $0x298] sm:$0xff]  ;;  %v5873_v2 = vld [vmem:[#allocation2 + $0x280] sm:$0xff]  ;;  %v5875_v16 = vld [vmem:[#allocation2 + $0x290] sm:$0xff] }
 0x454   :  { %6362 = vmatpush1.bf16.msra.mxu0 %v5817_v13  ;;  %6526 = vmatpush1.bf16.msra.mxu1 %v5819_v31  ;;  %v5882_v17 = vld [vmem:[#allocation2 + $0x2c8] sm:$0xff]  ;;  %v5884_v18 = vld [vmem:[#allocation2 + $0x2d8] sm:$0xff]  ;;  %v5881_v52 = vld [vmem:[#allocation2 + $0x2c0] sm:$0xff] }
 0x455   :  { %6363 = vmatprep.subr.bf16.mxu0 %v5826_v32  ;;  %6527 = vmatprep.subr.bf16.mxu1 %v5828_v34  ;;  %v5883_v19 = vld [vmem:[#allocation2 + $0x2d0] sm:$0xff]  ;;  %v5890_v0 = vld [vmem:[#allocation2 + $0x308] sm:$0xff]  ;;  %v5892_v20 = vld [vmem:[#allocation2 + $0x318] sm:$0xff] }
 0x456   :  { %v5889_v25 = vld [vmem:[#allocation2 + $0x300] sm:$0xff]  ;;  %v5891_v28 = vld [vmem:[#allocation2 + $0x310] sm:$0xff]  ;;  %v5898_v29 = vld [vmem:[#allocation2 + $0x348] sm:$0xff] }
 0x457   :  { %v5900_v30 = vld [vmem:[#allocation2 + $0x358] sm:$0xff]  ;;  %v5897_v13 = vld [vmem:[#allocation2 + $0x340] sm:$0xff]  ;;  %v5899_v31 = vld [vmem:[#allocation2 + $0x350] sm:$0xff] }
 0x458   :  { %6364 = vmatpush1.bf16.msra.mxu0 %v5825_v35  ;;  %6528 = vmatpush1.bf16.msra.mxu1 %v5827_v36  ;;  %v5906_v32 = vld [vmem:[#allocation2 + $0x388] sm:$0xff]  ;;  %v5908_v34 = vld [vmem:[#allocation2 + $0x398] sm:$0xff]  ;;  %v5905_v35 = vld [vmem:[#allocation2 + $0x380] sm:$0xff] }
 0x459   :  { %6365 = vmatprep.subr.bf16.mxu0 %v5834_v38  ;;  %6529 = vmatprep.subr.bf16.mxu1 %v5836_v39  ;;  %v5907_v36 = vld [vmem:[#allocation2 + $0x390] sm:$0xff]  ;;  %v5914_v38 = vld [vmem:[#allocation2 + $0x3c8] sm:$0xff]  ;;  %v5916_v39 = vld [vmem:[#allocation2 + $0x3d8] sm:$0xff] }
 0x45a   :  { %v5929_v46 = vld [vmem:[#allocation2 + $0x440] sm:$0xff] }
 0x45b   :  { %v5937_v59 = vld [vmem:[#allocation2 + $0x480] sm:$0xff] }
 0x45c   :  { %6366 = vmatpush1.bf16.msra.mxu0 %v5833_v40  ;;  %6530 = vmatpush1.bf16.msra.mxu1 %v5835_v41  ;;  %v5913_v40 = vld [vmem:[#allocation2 + $0x3c0] sm:$0xff]  ;;  %v5915_v41 = vld [vmem:[#allocation2 + $0x3d0] sm:$0xff] }
 0x45d   :  { %6367 = vmatprep.subr.bf16.mxu0 %v5842_v23  ;;  %6531 = vmatprep.subr.bf16.mxu1 %v5844_v42  ;;  %v5922_v23 = vld [vmem:[#allocation2 + $0x408] sm:$0xff]  ;;  %v5924_v42 = vld [vmem:[#allocation2 + $0x418] sm:$0xff]  ;;  %v6057_v51 = vld [vmem:[#allocation2 + $0x840] sm:$0xff] }
 0x45e   :  { %v6065_v62 = vld [vmem:[#allocation2 + $0x880] sm:$0xff] }
 0x45f   :  { %v6185_v27 = vld [vmem:[#allocation2 + $0xc40] sm:$0xff] }
 0x460   :  { %6368 = vmatpush1.bf16.msra.mxu0 %v5841_v15  ;;  %6532 = vmatpush1.bf16.msra.mxu1 %v5843_v50  ;;  %v8631_v15 = vpack.c.bf16 %v5781_v57, %v5781_v57  ;;  %v5921_v50 = vld [vmem:[#allocation2 + $0x400] sm:$0xff]  ;;  %v5931_v57 = vld [vmem:[#allocation2 + $0x450] sm:$0xff] }
 0x461   :  { %6369 = vmatprep.subr.bf16.mxu0 %v5850_v22  ;;  %6533 = vmatprep.subr.bf16.mxu1 %v5852_v53  ;;  %v5923_v22 = vld [vmem:[#allocation2 + $0x410] sm:$0xff]  ;;  %v5930_v53 = vld [vmem:[#allocation2 + $0x448] sm:$0xff]  ;;  %v6193_v55 = vld [vmem:[#allocation2 + $0xc80] sm:$0xff] }
 0x462   :  { %v5805_v33 = vld [vmem:[#allocation2 + $0x60] sm:$0xff] }
 0x464   :  { %6370 = vmatpush1.bf16.msra.mxu0 %v5849_v54  ;;  %6534 = vmatpush1.bf16.msra.mxu1 %v5851_v45  ;;  %v5932_v54 = vld [vmem:[#allocation2 + $0x458] sm:$0xff]  ;;  %v8636_v45 = vpack.c.bf16 %v5784_v5, %v5784_v5  ;;  %v5939_v5 = vld [vmem:[#allocation2 + $0x490] sm:$0xff] }
 0x465   :  { %6371 = vmatprep.subr.bf16.mxu0 %v5858_v56  ;;  %6535 = vmatprep.subr.bf16.mxu1 %v5860_v60  ;;  %v5938_v56 = vld [vmem:[#allocation2 + $0x488] sm:$0xff]  ;;  %v5940_v60 = vld [vmem:[#allocation2 + $0x498] sm:$0xff] }
 0x468   :  { %6372 = vmatpush1.bf16.msra.mxu0 %v5857_v61  ;;  %6536 = vmatpush1.bf16.msra.mxu1 %v5859_v1  ;;  %v5946_v61 = vld [vmem:[#allocation2 + $0x4c8] sm:$0xff]  ;;  %v5948_v1 = vld [vmem:[#allocation2 + $0x4d8] sm:$0xff] }
 0x469   :  { %6373 = vmatprep.subr.bf16.mxu0 %v5866_v37  ;;  %6537 = vmatprep.subr.bf16.mxu1 %v5868_v4  ;;  %v5945_v37 = vld [vmem:[#allocation2 + $0x4c0] sm:$0xff]  ;;  %v5947_v4 = vld [vmem:[#allocation2 + $0x4d0] sm:$0xff] }
 0x46c   :  { %6374 = vmatpush1.bf16.msra.mxu0 %v5865_v6  ;;  %6538 = vmatpush1.bf16.msra.mxu1 %v5867_v10  ;;  %v5954_v6 = vld [vmem:[#allocation2 + $0x508] sm:$0xff]  ;;  %v5956_v10 = vld [vmem:[#allocation2 + $0x518] sm:$0xff] }
 0x46d   :  { %6375 = vmatprep.subr.bf16.mxu0 %v5874_v12  ;;  %6539 = vmatprep.subr.bf16.mxu1 %v5876_v14  ;;  %v5953_v12 = vld [vmem:[#allocation2 + $0x500] sm:$0xff]  ;;  %v5955_v14 = vld [vmem:[#allocation2 + $0x510] sm:$0xff] }
 0x470   :  { %6376 = vmatpush1.bf16.msra.mxu0 %v5873_v2  ;;  %6540 = vmatpush1.bf16.msra.mxu1 %v5875_v16  ;;  %v5962_v2 = vld [vmem:[#allocation2 + $0x548] sm:$0xff]  ;;  %v5964_v16 = vld [vmem:[#allocation2 + $0x558] sm:$0xff] }
 0x471   :  { %6377 = vmatprep.subr.bf16.mxu0 %v5882_v17  ;;  %6541 = vmatprep.subr.bf16.mxu1 %v5884_v18  ;;  %v5961_v17 = vld [vmem:[#allocation2 + $0x540] sm:$0xff]  ;;  %v5963_v18 = vld [vmem:[#allocation2 + $0x550] sm:$0xff] }
 0x474   :  { %6378 = vmatpush1.bf16.msra.mxu0 %v5881_v52  ;;  %6542 = vmatpush1.bf16.msra.mxu1 %v5883_v19  ;;  %v5970_v52 = vld [vmem:[#allocation2 + $0x588] sm:$0xff]  ;;  %v5972_v19 = vld [vmem:[#allocation2 + $0x598] sm:$0xff] }
 0x475   :  { %6379 = vmatprep.subr.bf16.mxu0 %v5890_v0  ;;  %6543 = vmatprep.subr.bf16.mxu1 %v5892_v20  ;;  %v5969_v0 = vld [vmem:[#allocation2 + $0x580] sm:$0xff]  ;;  %v5971_v20 = vld [vmem:[#allocation2 + $0x590] sm:$0xff] }
 0x478   :  { %6380 = vmatpush1.bf16.msra.mxu0 %v5889_v25  ;;  %6544 = vmatpush1.bf16.msra.mxu1 %v5891_v28  ;;  %v5978_v25 = vld [vmem:[#allocation2 + $0x5c8] sm:$0xff]  ;;  %v5980_v28 = vld [vmem:[#allocation2 + $0x5d8] sm:$0xff] }
 0x479   :  { %6381 = vmatprep.subr.bf16.mxu0 %v5898_v29  ;;  %6545 = vmatprep.subr.bf16.mxu1 %v5900_v30  ;;  %v5977_v29 = vld [vmem:[#allocation2 + $0x5c0] sm:$0xff]  ;;  %v5979_v30 = vld [vmem:[#allocation2 + $0x5d0] sm:$0xff] }
 0x47c   :  { %6382 = vmatpush1.bf16.msra.mxu0 %v5897_v13  ;;  %6546 = vmatpush1.bf16.msra.mxu1 %v5899_v31  ;;  %v5986_v13 = vld [vmem:[#allocation2 + $0x608] sm:$0xff]  ;;  %v5988_v31 = vld [vmem:[#allocation2 + $0x618] sm:$0xff] }
 0x47d   :  { %6383 = vmatprep.subr.bf16.mxu0 %v5906_v32  ;;  %6547 = vmatprep.subr.bf16.mxu1 %v5908_v34  ;;  %v5985_v32 = vld [vmem:[#allocation2 + $0x600] sm:$0xff]  ;;  %v5987_v34 = vld [vmem:[#allocation2 + $0x610] sm:$0xff] }
 0x480   :  { %6384 = vmatpush1.bf16.msra.mxu0 %v5905_v35  ;;  %6548 = vmatpush1.bf16.msra.mxu1 %v5907_v36  ;;  %v5994_v35 = vld [vmem:[#allocation2 + $0x648] sm:$0xff]  ;;  %v5996_v36 = vld [vmem:[#allocation2 + $0x658] sm:$0xff] }
 0x481   :  { %6385 = vmatprep.subr.bf16.mxu0 %v5914_v38  ;;  %6549 = vmatprep.subr.bf16.mxu1 %v5916_v39  ;;  %v5993_v38 = vld [vmem:[#allocation2 + $0x640] sm:$0xff]  ;;  %v5995_v39 = vld [vmem:[#allocation2 + $0x650] sm:$0xff] }
 0x484   :  { %6386 = vmatpush1.bf16.msra.mxu0 %v5913_v40  ;;  %6550 = vmatpush1.bf16.msra.mxu1 %v5915_v41  ;;  %v6002_v40 = vld [vmem:[#allocation2 + $0x688] sm:$0xff]  ;;  %v6004_v41 = vld [vmem:[#allocation2 + $0x698] sm:$0xff] }
 0x485   :  { %6396 = vmatprep.subr.bf16.mxu0 %v5922_v23  ;;  %6560 = vmatprep.subr.bf16.mxu1 %v5924_v42  ;;  %v6001_v23 = vld [vmem:[#allocation2 + $0x680] sm:$0xff]  ;;  %v6003_v42 = vld [vmem:[#allocation2 + $0x690] sm:$0xff] }
 0x487   :  { %6388 = vmatmul.mubr.bf16.vlgmr.msra.gmra.mrb[8].mxu0 %v8631_v15  ;;  %6552 = vmatmul.mubr.bf16.vlgmr.msra.gmra.mrb[8].mxu1 %v8631_v15 }
 0x488   :  { %6397 = vmatpush1.bf16.msra.mxu0 %v5921_v50  ;;  %6561 = vmatpush1.bf16.msra.mxu1 %v5923_v22  ;;  %v6010_v50 = vld [vmem:[#allocation2 + $0x6c8] sm:$0xff]  ;;  %v6012_v22 = vld [vmem:[#allocation2 + $0x6d8] sm:$0xff] }
 0x489   :  { %6398 = vmatprep.subr.bf16.mxu0 %v5930_v53  ;;  %6562 = vmatprep.subr.bf16.mxu1 %v5932_v54  ;;  %v6009_v53 = vld [vmem:[#allocation2 + $0x6c0] sm:$0xff]  ;;  %v6011_v54 = vld [vmem:[#allocation2 + $0x6d0] sm:$0xff] }
 0x48a   :  { %6428 = vmatprep.mubr.bf16.mxu0 %v8636_v45  ;;  %6592 = vmatprep.mubr.bf16.mxu1 %v8636_v45 }
 0x48c   :  { %6399 = vmatpush1.bf16.msra.mxu0 %v5929_v46  ;;  %6563 = vmatpush1.bf16.msra.mxu1 %v5931_v57  ;;  %v6018_v46 = vld [vmem:[#allocation2 + $0x708] sm:$0xff]  ;;  %v6020_v57 = vld [vmem:[#allocation2 + $0x718] sm:$0xff] }
 0x48d   :  { %6400 = vmatprep.subr.bf16.mxu0 %v5938_v56  ;;  %6564 = vmatprep.subr.bf16.mxu1 %v5940_v60  ;;  %v6017_v56 = vld [vmem:[#allocation2 + $0x700] sm:$0xff]  ;;  %v6019_v60 = vld [vmem:[#allocation2 + $0x710] sm:$0xff] }
 0x490   :  { %6401 = vmatpush1.bf16.msra.mxu0 %v5937_v59  ;;  %6565 = vmatpush1.bf16.msra.mxu1 %v5939_v5  ;;  %v6026_v59 = vld [vmem:[#allocation2 + $0x748] sm:$0xff]  ;;  %v6028_v5 = vld [vmem:[#allocation2 + $0x758] sm:$0xff] }
 0x491   :  { %6402 = vmatprep.subr.bf16.mxu0 %v5946_v61  ;;  %6566 = vmatprep.subr.bf16.mxu1 %v5948_v1  ;;  %v6025_v61 = vld [vmem:[#allocation2 + $0x740] sm:$0xff]  ;;  %v6027_v1 = vld [vmem:[#allocation2 + $0x750] sm:$0xff] }
 0x494   :  { %6403 = vmatpush1.bf16.msra.mxu0 %v5945_v37  ;;  %6567 = vmatpush1.bf16.msra.mxu1 %v5947_v4  ;;  %v6034_v37 = vld [vmem:[#allocation2 + $0x788] sm:$0xff]  ;;  %v6036_v4 = vld [vmem:[#allocation2 + $0x798] sm:$0xff] }
 0x495   :  { %6404 = vmatprep.subr.bf16.mxu0 %v5954_v6  ;;  %6568 = vmatprep.subr.bf16.mxu1 %v5956_v10  ;;  %v6033_v6 = vld [vmem:[#allocation2 + $0x780] sm:$0xff]  ;;  %v6035_v10 = vld [vmem:[#allocation2 + $0x790] sm:$0xff] }
 0x498   :  { %6405 = vmatpush1.bf16.msra.mxu0 %v5953_v12  ;;  %6569 = vmatpush1.bf16.msra.mxu1 %v5955_v14  ;;  %v6042_v12 = vld [vmem:[#allocation2 + $0x7c8] sm:$0xff]  ;;  %v6044_v14 = vld [vmem:[#allocation2 + $0x7d8] sm:$0xff] }
 0x499   :  { %6406 = vmatprep.subr.bf16.mxu0 %v5962_v2  ;;  %6570 = vmatprep.subr.bf16.mxu1 %v5964_v16  ;;  %v6041_v2 = vld [vmem:[#allocation2 + $0x7c0] sm:$0xff]  ;;  %v6043_v16 = vld [vmem:[#allocation2 + $0x7d0] sm:$0xff] }
 0x49c   :  { %6407 = vmatpush1.bf16.msra.mxu0 %v5961_v17  ;;  %6571 = vmatpush1.bf16.msra.mxu1 %v5963_v18  ;;  %v6050_v17 = vld [vmem:[#allocation2 + $0x808] sm:$0xff]  ;;  %v6052_v18 = vld [vmem:[#allocation2 + $0x818] sm:$0xff] }
 0x49d   :  { %6408 = vmatprep.subr.bf16.mxu0 %v5970_v52  ;;  %6572 = vmatprep.subr.bf16.mxu1 %v5972_v19  ;;  %v8645_v52 = vpack.c.bf16 %v5783_v63, %v5783_v63  ;;  %v6049_v19 = vld [vmem:[#allocation2 + $0x800] sm:$0xff]  ;;  %v6059_v63 = vld [vmem:[#allocation2 + $0x850] sm:$0xff] }
 0x4a0   :  { %6409 = vmatpush1.bf16.msra.mxu0 %v5969_v0  ;;  %6573 = vmatpush1.bf16.msra.mxu1 %v5971_v20  ;;  %v6051_v0 = vld [vmem:[#allocation2 + $0x810] sm:$0xff]  ;;  %v6058_v20 = vld [vmem:[#allocation2 + $0x848] sm:$0xff] }
 0x4a1   :  { %6410 = vmatprep.subr.bf16.mxu0 %v5978_v25  ;;  %6574 = vmatprep.subr.bf16.mxu1 %v5980_v28  ;;  %v6060_v25 = vld [vmem:[#allocation2 + $0x858] sm:$0xff]  ;;  %v8650_v28 = vpack.c.bf16 %v5786_v8, %v5786_v8  ;;  %v6067_v8 = vld [vmem:[#allocation2 + $0x890] sm:$0xff] }
 0x4a4   :  { %6411 = vmatpush1.bf16.msra.mxu0 %v5977_v29  ;;  %6575 = vmatpush1.bf16.msra.mxu1 %v5979_v30  ;;  %v6066_v29 = vld [vmem:[#allocation2 + $0x888] sm:$0xff]  ;;  %v6068_v30 = vld [vmem:[#allocation2 + $0x898] sm:$0xff] }
 0x4a5   :  { %6412 = vmatprep.subr.bf16.mxu0 %v5986_v13  ;;  %6576 = vmatprep.subr.bf16.mxu1 %v5988_v31  ;;  %v6074_v13 = vld [vmem:[#allocation2 + $0x8c8] sm:$0xff]  ;;  %v6076_v31 = vld [vmem:[#allocation2 + $0x8d8] sm:$0xff] }
 0x4a8   :  { %6413 = vmatpush1.bf16.msra.mxu0 %v5985_v32  ;;  %6577 = vmatpush1.bf16.msra.mxu1 %v5987_v34  ;;  %v6073_v32 = vld [vmem:[#allocation2 + $0x8c0] sm:$0xff]  ;;  %v6075_v34 = vld [vmem:[#allocation2 + $0x8d0] sm:$0xff] }
 0x4a9   :  { %6414 = vmatprep.subr.bf16.mxu0 %v5994_v35  ;;  %6578 = vmatprep.subr.bf16.mxu1 %v5996_v36  ;;  %v6082_v35 = vld [vmem:[#allocation2 + $0x908] sm:$0xff]  ;;  %v6084_v36 = vld [vmem:[#allocation2 + $0x918] sm:$0xff] }
 0x4ac   :  { %6415 = vmatpush1.bf16.msra.mxu0 %v5993_v38  ;;  %6579 = vmatpush1.bf16.msra.mxu1 %v5995_v39  ;;  %v6081_v38 = vld [vmem:[#allocation2 + $0x900] sm:$0xff]  ;;  %v6083_v39 = vld [vmem:[#allocation2 + $0x910] sm:$0xff] }
 0x4ad   :  { %6416 = vmatprep.subr.bf16.mxu0 %v6002_v40  ;;  %6580 = vmatprep.subr.bf16.mxu1 %v6004_v41  ;;  %v6090_v40 = vld [vmem:[#allocation2 + $0x948] sm:$0xff]  ;;  %v6092_v41 = vld [vmem:[#allocation2 + $0x958] sm:$0xff] }
 0x4b0   :  { %6417 = vmatpush1.bf16.msra.mxu0 %v6001_v23  ;;  %6581 = vmatpush1.bf16.msra.mxu1 %v6003_v42  ;;  %v6089_v23 = vld [vmem:[#allocation2 + $0x940] sm:$0xff]  ;;  %v6091_v42 = vld [vmem:[#allocation2 + $0x950] sm:$0xff] }
 0x4b1   :  { %6418 = vmatprep.subr.bf16.mxu0 %v6010_v50  ;;  %6582 = vmatprep.subr.bf16.mxu1 %v6012_v22  ;;  %v6098_v50 = vld [vmem:[#allocation2 + $0x988] sm:$0xff]  ;;  %v6100_v22 = vld [vmem:[#allocation2 + $0x998] sm:$0xff] }
 0x4b4   :  { %6419 = vmatpush1.bf16.msra.mxu0 %v6009_v53  ;;  %6583 = vmatpush1.bf16.msra.mxu1 %v6011_v54  ;;  %v6097_v53 = vld [vmem:[#allocation2 + $0x980] sm:$0xff]  ;;  %v6099_v54 = vld [vmem:[#allocation2 + $0x990] sm:$0xff] }
 0x4b5   :  { %6420 = vmatprep.subr.bf16.mxu0 %v6018_v46  ;;  %6584 = vmatprep.subr.bf16.mxu1 %v6020_v57  ;;  %v6106_v46 = vld [vmem:[#allocation2 + $0x9c8] sm:$0xff]  ;;  %v6108_v57 = vld [vmem:[#allocation2 + $0x9d8] sm:$0xff] }
 0x4b8   :  { %6421 = vmatpush1.bf16.msra.mxu0 %v6017_v56  ;;  %6585 = vmatpush1.bf16.msra.mxu1 %v6019_v60  ;;  %v6105_v56 = vld [vmem:[#allocation2 + $0x9c0] sm:$0xff]  ;;  %v6107_v60 = vld [vmem:[#allocation2 + $0x9d0] sm:$0xff] }
 0x4b9   :  { %6422 = vmatprep.subr.bf16.mxu0 %v6026_v59  ;;  %6586 = vmatprep.subr.bf16.mxu1 %v6028_v5  ;;  %v6114_v59 = vld [vmem:[#allocation2 + $0xa08] sm:$0xff]  ;;  %v6116_v5 = vld [vmem:[#allocation2 + $0xa18] sm:$0xff] }
 0x4bc   :  { %6423 = vmatpush1.bf16.msra.mxu0 %v6025_v61  ;;  %6587 = vmatpush1.bf16.msra.mxu1 %v6027_v1  ;;  %v6113_v61 = vld [vmem:[#allocation2 + $0xa00] sm:$0xff]  ;;  %v6115_v1 = vld [vmem:[#allocation2 + $0xa10] sm:$0xff] }
 0x4bd   :  { %6424 = vmatprep.subr.bf16.mxu0 %v6034_v37  ;;  %6588 = vmatprep.subr.bf16.mxu1 %v6036_v4  ;;  %v6122_v37 = vld [vmem:[#allocation2 + $0xa48] sm:$0xff]  ;;  %v6124_v4 = vld [vmem:[#allocation2 + $0xa58] sm:$0xff] }
 0x4c0   :  { %6425 = vmatpush1.bf16.msra.mxu0 %v6033_v6  ;;  %6589 = vmatpush1.bf16.msra.mxu1 %v6035_v10  ;;  %v6121_v6 = vld [vmem:[#allocation2 + $0xa40] sm:$0xff]  ;;  %v6123_v10 = vld [vmem:[#allocation2 + $0xa50] sm:$0xff] }
 0x4c1   :  { %6426 = vmatprep.subr.bf16.mxu0 %v6042_v12  ;;  %6590 = vmatprep.subr.bf16.mxu1 %v6044_v14  ;;  %v6130_v12 = vld [vmem:[#allocation2 + $0xa88] sm:$0xff]  ;;  %v6132_v14 = vld [vmem:[#allocation2 + $0xa98] sm:$0xff] }
 0x4c4   :  { %6427 = vmatpush1.bf16.msra.mxu0 %v6041_v2  ;;  %6591 = vmatpush1.bf16.msra.mxu1 %v6043_v16  ;;  %v6129_v2 = vld [vmem:[#allocation2 + $0xa80] sm:$0xff]  ;;  %v6131_v16 = vld [vmem:[#allocation2 + $0xa90] sm:$0xff] }
 0x4c5   :  { %6437 = vmatprep.subr.bf16.mxu0 %v6050_v17  ;;  %6601 = vmatprep.subr.bf16.mxu1 %v6052_v18  ;;  %v6138_v17 = vld [vmem:[#allocation2 + $0xac8] sm:$0xff]  ;;  %v6140_v18 = vld [vmem:[#allocation2 + $0xad8] sm:$0xff] }
 0x4c7   :  { %6429 = vmatmul.mubr.bf16.vlgmr.msra.gmra.mrb[8].mxu0 %v8645_v52  ;;  %6593 = vmatmul.mubr.bf16.vlgmr.msra.gmra.mrb[8].mxu1 %v8645_v52 }
 0x4c8   :  { %6438 = vmatpush1.bf16.msra.mxu0 %v6049_v19  ;;  %6602 = vmatpush1.bf16.msra.mxu1 %v6051_v0  ;;  %v6137_v19 = vld [vmem:[#allocation2 + $0xac0] sm:$0xff]  ;;  %v6139_v0 = vld [vmem:[#allocation2 + $0xad0] sm:$0xff] }
 0x4c9   :  { %6439 = vmatprep.subr.bf16.mxu0 %v6058_v20  ;;  %6603 = vmatprep.subr.bf16.mxu1 %v6060_v25  ;;  %v6146_v20 = vld [vmem:[#allocation2 + $0xb08] sm:$0xff]  ;;  %v6148_v25 = vld [vmem:[#allocation2 + $0xb18] sm:$0xff] }
 0x4ca   :  { %6469 = vmatprep.mubr.bf16.mxu0 %v8650_v28  ;;  %6633 = vmatprep.mubr.bf16.mxu1 %v8650_v28 }
 0x4cc   :  { %6440 = vmatpush1.bf16.msra.mxu0 %v6057_v51  ;;  %6604 = vmatpush1.bf16.msra.mxu1 %v6059_v63  ;;  %v6145_v51 = vld [vmem:[#allocation2 + $0xb00] sm:$0xff]  ;;  %v6147_v63 = vld [vmem:[#allocation2 + $0xb10] sm:$0xff] }
 0x4cd   :  { %6441 = vmatprep.subr.bf16.mxu0 %v6066_v29  ;;  %6605 = vmatprep.subr.bf16.mxu1 %v6068_v30  ;;  %v6154_v29 = vld [vmem:[#allocation2 + $0xb48] sm:$0xff]  ;;  %v6156_v30 = vld [vmem:[#allocation2 + $0xb58] sm:$0xff] }
 0x4d0   :  { %6442 = vmatpush1.bf16.msra.mxu0 %v6065_v62  ;;  %6606 = vmatpush1.bf16.msra.mxu1 %v6067_v8  ;;  %v6153_v62 = vld [vmem:[#allocation2 + $0xb40] sm:$0xff]  ;;  %v6155_v8 = vld [vmem:[#allocation2 + $0xb50] sm:$0xff] }
 0x4d1   :  { %6443 = vmatprep.subr.bf16.mxu0 %v6074_v13  ;;  %6607 = vmatprep.subr.bf16.mxu1 %v6076_v31  ;;  %v6162_v13 = vld [vmem:[#allocation2 + $0xb88] sm:$0xff]  ;;  %v6164_v31 = vld [vmem:[#allocation2 + $0xb98] sm:$0xff] }
 0x4d4   :  { %6444 = vmatpush1.bf16.msra.mxu0 %v6073_v32  ;;  %6608 = vmatpush1.bf16.msra.mxu1 %v6075_v34  ;;  %v6161_v32 = vld [vmem:[#allocation2 + $0xb80] sm:$0xff]  ;;  %v6163_v34 = vld [vmem:[#allocation2 + $0xb90] sm:$0xff] }
 0x4d5   :  { %6445 = vmatprep.subr.bf16.mxu0 %v6082_v35  ;;  %6609 = vmatprep.subr.bf16.mxu1 %v6084_v36  ;;  %v6170_v35 = vld [vmem:[#allocation2 + $0xbc8] sm:$0xff]  ;;  %v6172_v36 = vld [vmem:[#allocation2 + $0xbd8] sm:$0xff] }
 0x4d8   :  { %6446 = vmatpush1.bf16.msra.mxu0 %v6081_v38  ;;  %6610 = vmatpush1.bf16.msra.mxu1 %v6083_v39  ;;  %v6169_v38 = vld [vmem:[#allocation2 + $0xbc0] sm:$0xff]  ;;  %v6171_v39 = vld [vmem:[#allocation2 + $0xbd0] sm:$0xff] }
 0x4d9   :  { %6447 = vmatprep.subr.bf16.mxu0 %v6090_v40  ;;  %6611 = vmatprep.subr.bf16.mxu1 %v6092_v41  ;;  %v6178_v40 = vld [vmem:[#allocation2 + $0xc08] sm:$0xff]  ;;  %v6180_v41 = vld [vmem:[#allocation2 + $0xc18] sm:$0xff] }
 0x4dc   :  { %6448 = vmatpush1.bf16.msra.mxu0 %v6089_v23  ;;  %6612 = vmatpush1.bf16.msra.mxu1 %v6091_v42  ;;  %v8659_v23 = vpack.c.bf16 %v5785_v3, %v5785_v3  ;;  %v6177_v42 = vld [vmem:[#allocation2 + $0xc00] sm:$0xff]  ;;  %v6187_v3 = vld [vmem:[#allocation2 + $0xc50] sm:$0xff] }
 0x4dd   :  { %6449 = vmatprep.subr.bf16.mxu0 %v6098_v50  ;;  %6613 = vmatprep.subr.bf16.mxu1 %v6100_v22  ;;  %v6179_v50 = vld [vmem:[#allocation2 + $0xc10] sm:$0xff]  ;;  %v6186_v22 = vld [vmem:[#allocation2 + $0xc48] sm:$0xff] }
 0x4e0   :  { %6450 = vmatpush1.bf16.msra.mxu0 %v6097_v53  ;;  %6614 = vmatpush1.bf16.msra.mxu1 %v6099_v54  ;;  %v6188_v53 = vld [vmem:[#allocation2 + $0xc58] sm:$0xff]  ;;  %v8664_v54 = vpack.c.bf16 %v5788_v11, %v5788_v11  ;;  %v6195_v11 = vld [vmem:[#allocation2 + $0xc90] sm:$0xff] }
 0x4e1   :  { %6451 = vmatprep.subr.bf16.mxu0 %v6106_v46  ;;  %6615 = vmatprep.subr.bf16.mxu1 %v6108_v57  ;;  %v6194_v46 = vld [vmem:[#allocation2 + $0xc88] sm:$0xff]  ;;  %v6196_v57 = vld [vmem:[#allocation2 + $0xc98] sm:$0xff] }
 0x4e4   :  { %6452 = vmatpush1.bf16.msra.mxu0 %v6105_v56  ;;  %6616 = vmatpush1.bf16.msra.mxu1 %v6107_v60  ;;  %v6202_v56 = vld [vmem:[#allocation2 + $0xcc8] sm:$0xff]  ;;  %v6204_v60 = vld [vmem:[#allocation2 + $0xcd8] sm:$0xff] }
 0x4e5   :  { %6453 = vmatprep.subr.bf16.mxu0 %v6114_v59  ;;  %6617 = vmatprep.subr.bf16.mxu1 %v6116_v5  ;;  %v6201_v59 = vld [vmem:[#allocation2 + $0xcc0] sm:$0xff]  ;;  %v6203_v5 = vld [vmem:[#allocation2 + $0xcd0] sm:$0xff] }
 0x4e8   :  { %6454 = vmatpush1.bf16.msra.mxu0 %v6113_v61  ;;  %6618 = vmatpush1.bf16.msra.mxu1 %v6115_v1  ;;  %v6210_v61 = vld [vmem:[#allocation2 + $0xd08] sm:$0xff]  ;;  %v6212_v1 = vld [vmem:[#allocation2 + $0xd18] sm:$0xff] }
 0x4e9   :  { %6455 = vmatprep.subr.bf16.mxu0 %v6122_v37  ;;  %6619 = vmatprep.subr.bf16.mxu1 %v6124_v4  ;;  %v6209_v37 = vld [vmem:[#allocation2 + $0xd00] sm:$0xff]  ;;  %v6211_v4 = vld [vmem:[#allocation2 + $0xd10] sm:$0xff] }
 0x4ec   :  { %6456 = vmatpush1.bf16.msra.mxu0 %v6121_v6  ;;  %6620 = vmatpush1.bf16.msra.mxu1 %v6123_v10  ;;  %v6218_v6 = vld [vmem:[#allocation2 + $0xd48] sm:$0xff]  ;;  %v6220_v10 = vld [vmem:[#allocation2 + $0xd58] sm:$0xff] }
 0x4ed   :  { %6457 = vmatprep.subr.bf16.mxu0 %v6130_v12  ;;  %6621 = vmatprep.subr.bf16.mxu1 %v6132_v14  ;;  %v6217_v12 = vld [vmem:[#allocation2 + $0xd40] sm:$0xff]  ;;  %v6219_v14 = vld [vmem:[#allocation2 + $0xd50] sm:$0xff] }
 0x4f0   :  { %6458 = vmatpush1.bf16.msra.mxu0 %v6129_v2  ;;  %6622 = vmatpush1.bf16.msra.mxu1 %v6131_v16  ;;  %v6226_v2 = vld [vmem:[#allocation2 + $0xd88] sm:$0xff]  ;;  %v6228_v16 = vld [vmem:[#allocation2 + $0xd98] sm:$0xff] }
 0x4f1   :  { %6459 = vmatprep.subr.bf16.mxu0 %v6138_v17  ;;  %6623 = vmatprep.subr.bf16.mxu1 %v6140_v18  ;;  %v6225_v17 = vld [vmem:[#allocation2 + $0xd80] sm:$0xff]  ;;  %v6227_v18 = vld [vmem:[#allocation2 + $0xd90] sm:$0xff] }
 0x4f4   :  { %6460 = vmatpush1.bf16.msra.mxu0 %v6137_v19  ;;  %6624 = vmatpush1.bf16.msra.mxu1 %v6139_v0  ;;  %v6234_v19 = vld [vmem:[#allocation2 + $0xdc8] sm:$0xff]  ;;  %v6236_v0 = vld [vmem:[#allocation2 + $0xdd8] sm:$0xff] }
 0x4f5   :  { %6461 = vmatprep.subr.bf16.mxu0 %v6146_v20  ;;  %6625 = vmatprep.subr.bf16.mxu1 %v6148_v25  ;;  %v6233_v20 = vld [vmem:[#allocation2 + $0xdc0] sm:$0xff]  ;;  %v6235_v25 = vld [vmem:[#allocation2 + $0xdd0] sm:$0xff] }
 0x4f8   :  { %6462 = vmatpush1.bf16.msra.mxu0 %v6145_v51  ;;  %6626 = vmatpush1.bf16.msra.mxu1 %v6147_v63  ;;  %v6242_v51 = vld [vmem:[#allocation2 + $0xe08] sm:$0xff]  ;;  %v6244_v63 = vld [vmem:[#allocation2 + $0xe18] sm:$0xff] }
 0x4f9   :  { %6463 = vmatprep.subr.bf16.mxu0 %v6154_v29  ;;  %6627 = vmatprep.subr.bf16.mxu1 %v6156_v30  ;;  %v6241_v29 = vld [vmem:[#allocation2 + $0xe00] sm:$0xff]  ;;  %v6243_v30 = vld [vmem:[#allocation2 + $0xe10] sm:$0xff] }
 0x4fc   :  { %6464 = vmatpush1.bf16.msra.mxu0 %v6153_v62  ;;  %6628 = vmatpush1.bf16.msra.mxu1 %v6155_v8  ;;  %v6250_v62 = vld [vmem:[#allocation2 + $0xe48] sm:$0xff]  ;;  %v6252_v8 = vld [vmem:[#allocation2 + $0xe58] sm:$0xff] }
 0x4fd   :  { %6465 = vmatprep.subr.bf16.mxu0 %v6162_v13  ;;  %6629 = vmatprep.subr.bf16.mxu1 %v6164_v31  ;;  %v6249_v13 = vld [vmem:[#allocation2 + $0xe40] sm:$0xff]  ;;  %v6251_v31 = vld [vmem:[#allocation2 + $0xe50] sm:$0xff] }
 0x500   :  { %6466 = vmatpush1.bf16.msra.mxu0 %v6161_v32  ;;  %6630 = vmatpush1.bf16.msra.mxu1 %v6163_v34  ;;  %v6258_v32 = vld [vmem:[#allocation2 + $0xe88] sm:$0xff]  ;;  %v6260_v34 = vld [vmem:[#allocation2 + $0xe98] sm:$0xff] }
 0x501   :  { %6467 = vmatprep.subr.bf16.mxu0 %v6170_v35  ;;  %6631 = vmatprep.subr.bf16.mxu1 %v6172_v36  ;;  %v6257_v35 = vld [vmem:[#allocation2 + $0xe80] sm:$0xff]  ;;  %v6259_v36 = vld [vmem:[#allocation2 + $0xe90] sm:$0xff] }
 0x504   :  { %6468 = vmatpush1.bf16.msra.mxu0 %v6169_v38  ;;  %6632 = vmatpush1.bf16.msra.mxu1 %v6171_v39  ;;  %v6266_v38 = vld [vmem:[#allocation2 + $0xec8] sm:$0xff]  ;;  %v6268_v39 = vld [vmem:[#allocation2 + $0xed8] sm:$0xff] }
 0x505   :  { %6478 = vmatprep.subr.bf16.mxu0 %v6178_v40  ;;  %6642 = vmatprep.subr.bf16.mxu1 %v6180_v41  ;;  %v6265_v40 = vld [vmem:[#allocation2 + $0xec0] sm:$0xff]  ;;  %v6267_v41 = vld [vmem:[#allocation2 + $0xed0] sm:$0xff] }
 0x507   :  { %6470 = vmatmul.mubr.bf16.vlgmr.msra.gmra.mrb[8].mxu0 %v8659_v23  ;;  %6634 = vmatmul.mubr.bf16.vlgmr.msra.gmra.mrb[8].mxu1 %v8659_v23 }
 0x508   :  { %6479 = vmatpush1.bf16.msra.mxu0 %v6177_v42  ;;  %6643 = vmatpush1.bf16.msra.mxu1 %v6179_v50  ;;  %v6274_v42 = vld [vmem:[#allocation2 + $0xf08] sm:$0xff]  ;;  %v6276_v50 = vld [vmem:[#allocation2 + $0xf18] sm:$0xff] }
 0x509   :  { %6480 = vmatprep.subr.bf16.mxu0 %v6186_v22  ;;  %6644 = vmatprep.subr.bf16.mxu1 %v6188_v53  ;;  %v6273_v22 = vld [vmem:[#allocation2 + $0xf00] sm:$0xff]  ;;  %v6275_v53 = vld [vmem:[#allocation2 + $0xf10] sm:$0xff] }
 0x50a   :  { %6510 = vmatprep.mubr.bf16.mxu0 %v8664_v54  ;;  %6674 = vmatprep.mubr.bf16.mxu1 %v8664_v54 }
 0x50c   :  { %6481 = vmatpush1.bf16.msra.mxu0 %v6185_v27  ;;  %6645 = vmatpush1.bf16.msra.mxu1 %v6187_v3  ;;  %v6282_v27 = vld [vmem:[#allocation2 + $0xf48] sm:$0xff]  ;;  %v6284_v3 = vld [vmem:[#allocation2 + $0xf58] sm:$0xff] }
 0x50d   :  { %6482 = vmatprep.subr.bf16.mxu0 %v6194_v46  ;;  %6646 = vmatprep.subr.bf16.mxu1 %v6196_v57  ;;  %v6281_v46 = vld [vmem:[#allocation2 + $0xf40] sm:$0xff]  ;;  %v6283_v57 = vld [vmem:[#allocation2 + $0xf50] sm:$0xff] }
 0x510   :  { %6483 = vmatpush1.bf16.msra.mxu0 %v6193_v55  ;;  %6647 = vmatpush1.bf16.msra.mxu1 %v6195_v11  ;;  %v6290_v55 = vld [vmem:[#allocation2 + $0xf88] sm:$0xff]  ;;  %v6292_v11 = vld [vmem:[#allocation2 + $0xf98] sm:$0xff] }
 0x511   :  { %6484 = vmatprep.subr.bf16.mxu0 %v6202_v56  ;;  %6648 = vmatprep.subr.bf16.mxu1 %v6204_v60  ;;  %v6289_v56 = vld [vmem:[#allocation2 + $0xf80] sm:$0xff]  ;;  %v6291_v60 = vld [vmem:[#allocation2 + $0xf90] sm:$0xff] }
 0x514   :  { %6485 = vmatpush1.bf16.msra.mxu0 %v6201_v59  ;;  %6649 = vmatpush1.bf16.msra.mxu1 %v6203_v5  ;;  %v6298_v59 = vld [vmem:[#allocation2 + $0xfc8] sm:$0xff]  ;;  %v6300_v5 = vld [vmem:[#allocation2 + $0xfd8] sm:$0xff] }
 0x515   :  { %6486 = vmatprep.subr.bf16.mxu0 %v6210_v61  ;;  %6650 = vmatprep.subr.bf16.mxu1 %v6212_v1  ;;  %v6297_v61 = vld [vmem:[#allocation2 + $0xfc0] sm:$0xff]  ;;  %v6299_v1 = vld [vmem:[#allocation2 + $0xfd0] sm:$0xff] }
 0x518   :  { %6487 = vmatpush1.bf16.msra.mxu0 %v6209_v37  ;;  %6651 = vmatpush1.bf16.msra.mxu1 %v6211_v4  ;;  %v5798_v37 = vld [vmem:[#allocation2 + $0x28] sm:$0xff]  ;;  %v5800_v4 = vld [vmem:[#allocation2 + $0x38] sm:$0xff] }
 0x519   :  { %6488 = vmatprep.subr.bf16.mxu0 %v6218_v6  ;;  %6652 = vmatprep.subr.bf16.mxu1 %v6220_v10  ;;  %v8673_v6 = vpack.c.bf16 %v5787_v7, %v5787_v7  ;;  %v5797_v10 = vld [vmem:[#allocation2 + $0x20] sm:$0xff]  ;;  %v5814_v7 = vld [vmem:[#allocation2 + $0xa8] sm:$0xff] }
 0x51c   :  { %6489 = vmatpush1.bf16.msra.mxu0 %v6217_v12  ;;  %6653 = vmatpush1.bf16.msra.mxu1 %v6219_v14  ;;  %v5799_v12 = vld [vmem:[#allocation2 + $0x30] sm:$0xff]  ;;  %v5806_v14 = vld [vmem:[#allocation2 + $0x68] sm:$0xff] }
 0x51d   :  { %6490 = vmatprep.subr.bf16.mxu0 %v6226_v2  ;;  %6654 = vmatprep.subr.bf16.mxu1 %v6228_v16  ;;  %v5808_v2 = vld [vmem:[#allocation2 + $0x78] sm:$0xff]  ;;  %v5807_v16 = vld [vmem:[#allocation2 + $0x70] sm:$0xff] }
 0x520   :  { %6491 = vmatpush1.bf16.msra.mxu0 %v6225_v17  ;;  %6655 = vmatpush1.bf16.msra.mxu1 %v6227_v18  ;;  %v5816_v17 = vld [vmem:[#allocation2 + $0xb8] sm:$0xff]  ;;  %v5813_v18 = vld [vmem:[#allocation2 + $0xa0] sm:$0xff] }
 0x521   :  { %6492 = vmatprep.subr.bf16.mxu0 %v6234_v19  ;;  %6656 = vmatprep.subr.bf16.mxu1 %v6236_v0  ;;  %v5815_v19 = vld [vmem:[#allocation2 + $0xb0] sm:$0xff]  ;;  %v5822_v0 = vld [vmem:[#allocation2 + $0xe8] sm:$0xff] }
 0x524   :  { %6493 = vmatpush1.bf16.msra.mxu0 %v6233_v20  ;;  %6657 = vmatpush1.bf16.msra.mxu1 %v6235_v25  ;;  %v5824_v20 = vld [vmem:[#allocation2 + $0xf8] sm:$0xff]  ;;  %v5821_v25 = vld [vmem:[#allocation2 + $0xe0] sm:$0xff] }
 0x525   :  { %6494 = vmatprep.subr.bf16.mxu0 %v6242_v51  ;;  %6658 = vmatprep.subr.bf16.mxu1 %v6244_v63  ;;  %v5823_v51 = vld [vmem:[#allocation2 + $0xf0] sm:$0xff]  ;;  %v5830_v63 = vld [vmem:[#allocation2 + $0x128] sm:$0xff] }
 0x528   :  { %6495 = vmatpush1.bf16.msra.mxu0 %v6241_v29  ;;  %6659 = vmatpush1.bf16.msra.mxu1 %v6243_v30  ;;  %v5832_v29 = vld [vmem:[#allocation2 + $0x138] sm:$0xff]  ;;  %v5831_v30 = vld [vmem:[#allocation2 + $0x130] sm:$0xff] }
 0x529   :  { %6496 = vmatprep.subr.bf16.mxu0 %v6250_v62  ;;  %6660 = vmatprep.subr.bf16.mxu1 %v6252_v8  ;;  %v5838_v62 = vld [vmem:[#allocation2 + $0x168] sm:$0xff]  ;;  %v5840_v8 = vld [vmem:[#allocation2 + $0x178] sm:$0xff] }
 0x52c   :  { %6497 = vmatpush1.bf16.msra.mxu0 %v6249_v13  ;;  %6661 = vmatpush1.bf16.msra.mxu1 %v6251_v31  ;;  %v5837_v13 = vld [vmem:[#allocation2 + $0x160] sm:$0xff]  ;;  %v5839_v31 = vld [vmem:[#allocation2 + $0x170] sm:$0xff] }
 0x52d   :  { %6498 = vmatprep.subr.bf16.mxu0 %v6258_v32  ;;  %6662 = vmatprep.subr.bf16.mxu1 %v6260_v34  ;;  %v5846_v32 = vld [vmem:[#allocation2 + $0x1a8] sm:$0xff]  ;;  %v5848_v34 = vld [vmem:[#allocation2 + $0x1b8] sm:$0xff] }
 0x530   :  { %6499 = vmatpush1.bf16.msra.mxu0 %v6257_v35  ;;  %6663 = vmatpush1.bf16.msra.mxu1 %v6259_v36  ;;  %v5845_v35 = vld [vmem:[#allocation2 + $0x1a0] sm:$0xff]  ;;  %v5847_v36 = vld [vmem:[#allocation2 + $0x1b0] sm:$0xff] }
 0x531   :  { %6500 = vmatprep.subr.bf16.mxu0 %v6266_v38  ;;  %6664 = vmatprep.subr.bf16.mxu1 %v6268_v39  ;;  %v5854_v38 = vld [vmem:[#allocation2 + $0x1e8] sm:$0xff]  ;;  %v5856_v39 = vld [vmem:[#allocation2 + $0x1f8] sm:$0xff] }
 0x534   :  { %6501 = vmatpush1.bf16.msra.mxu0 %v6265_v40  ;;  %6665 = vmatpush1.bf16.msra.mxu1 %v6267_v41  ;;  %v5853_v40 = vld [vmem:[#allocation2 + $0x1e0] sm:$0xff]  ;;  %v5855_v41 = vld [vmem:[#allocation2 + $0x1f0] sm:$0xff] }
 0x535   :  { %6502 = vmatprep.subr.bf16.mxu0 %v6274_v42  ;;  %6666 = vmatprep.subr.bf16.mxu1 %v6276_v50  ;;  %v5862_v42 = vld [vmem:[#allocation2 + $0x228] sm:$0xff]  ;;  %v5864_v50 = vld [vmem:[#allocation2 + $0x238] sm:$0xff] }
 0x538   :  { %6503 = vmatpush1.bf16.msra.mxu0 %v6273_v22  ;;  %6667 = vmatpush1.bf16.msra.mxu1 %v6275_v53  ;;  %v5861_v22 = vld [vmem:[#allocation2 + $0x220] sm:$0xff]  ;;  %v5863_v53 = vld [vmem:[#allocation2 + $0x230] sm:$0xff] }
 0x539   :  { %6504 = vmatprep.subr.bf16.mxu0 %v6282_v27  ;;  %6668 = vmatprep.subr.bf16.mxu1 %v6284_v3  ;;  %v5870_v27 = vld [vmem:[#allocation2 + $0x268] sm:$0xff]  ;;  %v5872_v3 = vld [vmem:[#allocation2 + $0x278] sm:$0xff] }
 0x53c   :  { %6505 = vmatpush1.bf16.msra.mxu0 %v6281_v46  ;;  %6669 = vmatpush1.bf16.msra.mxu1 %v6283_v57  ;;  %v5869_v46 = vld [vmem:[#allocation2 + $0x260] sm:$0xff]  ;;  %v5871_v57 = vld [vmem:[#allocation2 + $0x270] sm:$0xff] }
 0x53d   :  { %6506 = vmatprep.subr.bf16.mxu0 %v6290_v55  ;;  %6670 = vmatprep.subr.bf16.mxu1 %v6292_v11  ;;  %v5878_v55 = vld [vmem:[#allocation2 + $0x2a8] sm:$0xff]  ;;  %v5880_v11 = vld [vmem:[#allocation2 + $0x2b8] sm:$0xff] }
 0x540   :  { %6507 = vmatpush1.bf16.msra.mxu0 %v6289_v56  ;;  %6671 = vmatpush1.bf16.msra.mxu1 %v6291_v60  ;;  %v5877_v56 = vld [vmem:[#allocation2 + $0x2a0] sm:$0xff]  ;;  %v5879_v60 = vld [vmem:[#allocation2 + $0x2b0] sm:$0xff] }
 0x541   :  { %6508 = vmatprep.subr.bf16.mxu0 %v6298_v59  ;;  %6672 = vmatprep.subr.bf16.mxu1 %v6300_v5  ;;  %v5886_v59 = vld [vmem:[#allocation2 + $0x2e8] sm:$0xff]  ;;  %v5888_v5 = vld [vmem:[#allocation2 + $0x2f8] sm:$0xff] }
 0x544   :  { %6509 = vmatpush1.bf16.msra.mxu0 %v6297_v61  ;;  %6673 = vmatpush1.bf16.msra.mxu1 %v6299_v1  ;;  %v5885_v61 = vld [vmem:[#allocation2 + $0x2e0] sm:$0xff]  ;;  %v5887_v1 = vld [vmem:[#allocation2 + $0x2f0] sm:$0xff] }
 0x545   :  { %6683 = vmatprep.subr.bf16.mxu0 %v5798_v37  ;;  %6847 = vmatprep.subr.bf16.mxu1 %v5800_v4  ;;  %v5894_v37 = vld [vmem:[#allocation2 + $0x328] sm:$0xff]  ;;  %v5896_v4 = vld [vmem:[#allocation2 + $0x338] sm:$0xff] }
 0x547   :  { %6511 = vmatmul.mubr.bf16.vlgmr.msra.gmra.mrb[8].mxu0 %v8673_v6  ;;  %6675 = vmatmul.mubr.bf16.vlgmr.msra.gmra.mrb[8].mxu1 %v8673_v6 }
 0x548   :  { %6684 = vmatpush1.bf16.msra.mxu0 %v5797_v10  ;;  %6848 = vmatpush1.bf16.msra.mxu1 %v5799_v12  ;;  %v5893_v10 = vld [vmem:[#allocation2 + $0x320] sm:$0xff]  ;;  %v5895_v12 = vld [vmem:[#allocation2 + $0x330] sm:$0xff] }
 0x549   :  { %6685 = vmatprep.subr.bf16.mxu0 %v5806_v14  ;;  %6849 = vmatprep.subr.bf16.mxu1 %v5808_v2  ;;  %v5902_v14 = vld [vmem:[#allocation2 + $0x368] sm:$0xff]  ;;  %v5904_v2 = vld [vmem:[#allocation2 + $0x378] sm:$0xff] }
 0x54a   :  { %6715 = vmatprep.mubr.bf16.mxu0 %v8624_v47  ;;  %6879 = vmatprep.mubr.bf16.mxu1 %v8624_v47  ;;  %v5829_v47 = vld [vmem:[#allocation2 + $0x120] sm:$0xff] }
 0x54c   :  { %6686 = vmatpush1.bf16.msra.mxu0 %v5805_v33  ;;  %6850 = vmatpush1.bf16.msra.mxu1 %v5807_v16  ;;  %v5901_v33 = vld [vmem:[#allocation2 + $0x360] sm:$0xff]  ;;  %v5903_v16 = vld [vmem:[#allocation2 + $0x370] sm:$0xff] }
 0x54d   :  { %6687 = vmatprep.subr.bf16.mxu0 %v5814_v7  ;;  %6851 = vmatprep.subr.bf16.mxu1 %v5816_v17  ;;  %v5910_v7 = vld [vmem:[#allocation2 + $0x3a8] sm:$0xff]  ;;  %v5912_v17 = vld [vmem:[#allocation2 + $0x3b8] sm:$0xff] }
 0x550   :  { %6688 = vmatpush1.bf16.msra.mxu0 %v5813_v18  ;;  %6852 = vmatpush1.bf16.msra.mxu1 %v5815_v19  ;;  %v5909_v18 = vld [vmem:[#allocation2 + $0x3a0] sm:$0xff]  ;;  %v5911_v19 = vld [vmem:[#allocation2 + $0x3b0] sm:$0xff] }
 0x551   :  { %6689 = vmatprep.subr.bf16.mxu0 %v5822_v0  ;;  %6853 = vmatprep.subr.bf16.mxu1 %v5824_v20  ;;  %v5918_v0 = vld [vmem:[#allocation2 + $0x3e8] sm:$0xff]  ;;  %v5920_v20 = vld [vmem:[#allocation2 + $0x3f8] sm:$0xff] }
 0x554   :  { %6690 = vmatpush1.bf16.msra.mxu0 %v5821_v25  ;;  %6854 = vmatpush1.bf16.msra.mxu1 %v5823_v51  ;;  %v5917_v25 = vld [vmem:[#allocation2 + $0x3e0] sm:$0xff]  ;;  %v5919_v51 = vld [vmem:[#allocation2 + $0x3f0] sm:$0xff] }
 0x555   :  { %6691 = vmatprep.subr.bf16.mxu0 %v5830_v63  ;;  %6855 = vmatprep.subr.bf16.mxu1 %v5832_v29  ;;  %v5926_v63 = vld [vmem:[#allocation2 + $0x428] sm:$0xff]  ;;  %v5928_v29 = vld [vmem:[#allocation2 + $0x438] sm:$0xff] }
 0x558   :  { %6692 = vmatpush1.bf16.msra.mxu0 %v5829_v47  ;;  %6856 = vmatpush1.bf16.msra.mxu1 %v5831_v30  ;;  %v5925_v47 = vld [vmem:[#allocation2 + $0x420] sm:$0xff]  ;;  %v5927_v30 = vld [vmem:[#allocation2 + $0x430] sm:$0xff] }
 0x559   :  { %6693 = vmatprep.subr.bf16.mxu0 %v5838_v62  ;;  %6857 = vmatprep.subr.bf16.mxu1 %v5840_v8  ;;  %v5934_v62 = vld [vmem:[#allocation2 + $0x468] sm:$0xff]  ;;  %v5936_v8 = vld [vmem:[#allocation2 + $0x478] sm:$0xff] }
 0x55c   :  { %6694 = vmatpush1.bf16.msra.mxu0 %v5837_v13  ;;  %6858 = vmatpush1.bf16.msra.mxu1 %v5839_v31  ;;  %v5933_v13 = vld [vmem:[#allocation2 + $0x460] sm:$0xff]  ;;  %v5935_v31 = vld [vmem:[#allocation2 + $0x470] sm:$0xff] }
 0x55d   :  { %6695 = vmatprep.subr.bf16.mxu0 %v5846_v32  ;;  %6859 = vmatprep.subr.bf16.mxu1 %v5848_v34  ;;  %v5942_v32 = vld [vmem:[#allocation2 + $0x4a8] sm:$0xff]  ;;  %v5944_v34 = vld [vmem:[#allocation2 + $0x4b8] sm:$0xff] }
 0x560   :  { %6696 = vmatpush1.bf16.msra.mxu0 %v5845_v35  ;;  %6860 = vmatpush1.bf16.msra.mxu1 %v5847_v36  ;;  %v5941_v35 = vld [vmem:[#allocation2 + $0x4a0] sm:$0xff]  ;;  %v5943_v36 = vld [vmem:[#allocation2 + $0x4b0] sm:$0xff] }
 0x561   :  { %6697 = vmatprep.subr.bf16.mxu0 %v5854_v38  ;;  %6861 = vmatprep.subr.bf16.mxu1 %v5856_v39  ;;  %v5950_v38 = vld [vmem:[#allocation2 + $0x4e8] sm:$0xff]  ;;  %v5949_v39 = vld [vmem:[#allocation2 + $0x4e0] sm:$0xff] }
 0x564   :  { %6698 = vmatpush1.bf16.msra.mxu0 %v5853_v40  ;;  %6862 = vmatpush1.bf16.msra.mxu1 %v5855_v41  ;;  %v5951_v40 = vld [vmem:[#allocation2 + $0x4f0] sm:$0xff]  ;;  %v5958_v41 = vld [vmem:[#allocation2 + $0x528] sm:$0xff] }
 0x565   :  { %6699 = vmatprep.subr.bf16.mxu0 %v5862_v42  ;;  %6863 = vmatprep.subr.bf16.mxu1 %v5864_v50  ;;  %v5960_v42 = vld [vmem:[#allocation2 + $0x538] sm:$0xff]  ;;  %v5959_v50 = vld [vmem:[#allocation2 + $0x530] sm:$0xff] }
 0x568   :  { %6700 = vmatpush1.bf16.msra.mxu0 %v5861_v22  ;;  %6864 = vmatpush1.bf16.msra.mxu1 %v5863_v53  ;;  %v5966_v22 = vld [vmem:[#allocation2 + $0x568] sm:$0xff]  ;;  %v5968_v53 = vld [vmem:[#allocation2 + $0x578] sm:$0xff] }
 0x569   :  { %6701 = vmatprep.subr.bf16.mxu0 %v5870_v27  ;;  %6865 = vmatprep.subr.bf16.mxu1 %v5872_v3  ;;  %v5965_v27 = vld [vmem:[#allocation2 + $0x560] sm:$0xff]  ;;  %v5967_v3 = vld [vmem:[#allocation2 + $0x570] sm:$0xff] }
 0x56c   :  { %6702 = vmatpush1.bf16.msra.mxu0 %v5869_v46  ;;  %6866 = vmatpush1.bf16.msra.mxu1 %v5871_v57  ;;  %v5974_v46 = vld [vmem:[#allocation2 + $0x5a8] sm:$0xff]  ;;  %v5976_v57 = vld [vmem:[#allocation2 + $0x5b8] sm:$0xff] }
 0x56d   :  { %6703 = vmatprep.subr.bf16.mxu0 %v5878_v55  ;;  %6867 = vmatprep.subr.bf16.mxu1 %v5880_v11  ;;  %v5973_v55 = vld [vmem:[#allocation2 + $0x5a0] sm:$0xff]  ;;  %v5975_v11 = vld [vmem:[#allocation2 + $0x5b0] sm:$0xff] }
 0x570   :  { %6704 = vmatpush1.bf16.msra.mxu0 %v5877_v56  ;;  %6868 = vmatpush1.bf16.msra.mxu1 %v5879_v60  ;;  %v5982_v56 = vld [vmem:[#allocation2 + $0x5e8] sm:$0xff]  ;;  %v5984_v60 = vld [vmem:[#allocation2 + $0x5f8] sm:$0xff] }
 0x571   :  { %6705 = vmatprep.subr.bf16.mxu0 %v5886_v59  ;;  %6869 = vmatprep.subr.bf16.mxu1 %v5888_v5  ;;  %v5981_v59 = vld [vmem:[#allocation2 + $0x5e0] sm:$0xff]  ;;  %v5983_v5 = vld [vmem:[#allocation2 + $0x5f0] sm:$0xff] }
 0x574   :  { %6706 = vmatpush1.bf16.msra.mxu0 %v5885_v61  ;;  %6870 = vmatpush1.bf16.msra.mxu1 %v5887_v1  ;;  %v5990_v61 = vld [vmem:[#allocation2 + $0x628] sm:$0xff]  ;;  %v5992_v1 = vld [vmem:[#allocation2 + $0x638] sm:$0xff] }
 0x575   :  { %6707 = vmatprep.subr.bf16.mxu0 %v5894_v37  ;;  %6871 = vmatprep.subr.bf16.mxu1 %v5896_v4  ;;  %v5989_v37 = vld [vmem:[#allocation2 + $0x620] sm:$0xff]  ;;  %v5991_v4 = vld [vmem:[#allocation2 + $0x630] sm:$0xff] }
 0x578   :  { %6708 = vmatpush1.bf16.msra.mxu0 %v5893_v10  ;;  %6872 = vmatpush1.bf16.msra.mxu1 %v5895_v12  ;;  %v5998_v10 = vld [vmem:[#allocation2 + $0x668] sm:$0xff]  ;;  %v6000_v12 = vld [vmem:[#allocation2 + $0x678] sm:$0xff] }
 0x579   :  { %6709 = vmatprep.subr.bf16.mxu0 %v5902_v14  ;;  %6873 = vmatprep.subr.bf16.mxu1 %v5904_v2  ;;  %v5997_v14 = vld [vmem:[#allocation2 + $0x660] sm:$0xff]  ;;  %v5999_v2 = vld [vmem:[#allocation2 + $0x670] sm:$0xff] }
 0x57c   :  { %6710 = vmatpush1.bf16.msra.mxu0 %v5901_v33  ;;  %6874 = vmatpush1.bf16.msra.mxu1 %v5903_v16  ;;  %v6006_v33 = vld [vmem:[#allocation2 + $0x6a8] sm:$0xff]  ;;  %v6008_v16 = vld [vmem:[#allocation2 + $0x6b8] sm:$0xff] }
 0x57d   :  { %6711 = vmatprep.subr.bf16.mxu0 %v5910_v7  ;;  %6875 = vmatprep.subr.bf16.mxu1 %v5912_v17  ;;  %v6005_v7 = vld [vmem:[#allocation2 + $0x6a0] sm:$0xff]  ;;  %v6007_v17 = vld [vmem:[#allocation2 + $0x6b0] sm:$0xff] }
 0x580   :  { %6712 = vmatpush1.bf16.msra.mxu0 %v5909_v18  ;;  %6876 = vmatpush1.bf16.msra.mxu1 %v5911_v19  ;;  %v6014_v18 = vld [vmem:[#allocation2 + $0x6e8] sm:$0xff]  ;;  %v6016_v19 = vld [vmem:[#allocation2 + $0x6f8] sm:$0xff] }
 0x581   :  { %6713 = vmatprep.subr.bf16.mxu0 %v5918_v0  ;;  %6877 = vmatprep.subr.bf16.mxu1 %v5920_v20  ;;  %v6013_v0 = vld [vmem:[#allocation2 + $0x6e0] sm:$0xff]  ;;  %v6015_v20 = vld [vmem:[#allocation2 + $0x6f0] sm:$0xff] }
 0x584   :  { %6714 = vmatpush1.bf16.msra.mxu0 %v5917_v25  ;;  %6878 = vmatpush1.bf16.msra.mxu1 %v5919_v51  ;;  %v6022_v25 = vld [vmem:[#allocation2 + $0x728] sm:$0xff]  ;;  %v6024_v51 = vld [vmem:[#allocation2 + $0x738] sm:$0xff] }
 0x585   :  { %6724 = vmatprep.subr.bf16.mxu0 %v5926_v63  ;;  %6888 = vmatprep.subr.bf16.mxu1 %v5928_v29  ;;  %v6021_v63 = vld [vmem:[#allocation2 + $0x720] sm:$0xff]  ;;  %v6023_v29 = vld [vmem:[#allocation2 + $0x730] sm:$0xff] }
 0x587   :  { %6716 = vmatmul.mubr.bf16.vlgmr.msra.gmra.mrb[12].mxu0 %v8631_v15  ;;  %6880 = vmatmul.mubr.bf16.vlgmr.msra.gmra.mrb[12].mxu1 %v8631_v15  ;;  %v5952_v15 = vld [vmem:[#allocation2 + $0x4f8] sm:$0xff] }
 0x588   :  { %6725 = vmatpush1.bf16.msra.mxu0 %v5925_v47  ;;  %6889 = vmatpush1.bf16.msra.mxu1 %v5927_v30  ;;  %v6030_v47 = vld [vmem:[#allocation2 + $0x768] sm:$0xff]  ;;  %v6032_v30 = vld [vmem:[#allocation2 + $0x778] sm:$0xff] }
 0x589   :  { %6726 = vmatprep.subr.bf16.mxu0 %v5934_v62  ;;  %6890 = vmatprep.subr.bf16.mxu1 %v5936_v8  ;;  %v6029_v62 = vld [vmem:[#allocation2 + $0x760] sm:$0xff]  ;;  %v6031_v8 = vld [vmem:[#allocation2 + $0x770] sm:$0xff] }
 0x58a   :  { %6756 = vmatprep.mubr.bf16.mxu0 %v8636_v45  ;;  %6920 = vmatprep.mubr.bf16.mxu1 %v8636_v45  ;;  %v5957_v45 = vld [vmem:[#allocation2 + $0x520] sm:$0xff] }
 0x58c   :  { %6727 = vmatpush1.bf16.msra.mxu0 %v5933_v13  ;;  %6891 = vmatpush1.bf16.msra.mxu1 %v5935_v31  ;;  %v6038_v13 = vld [vmem:[#allocation2 + $0x7a8] sm:$0xff]  ;;  %v6040_v31 = vld [vmem:[#allocation2 + $0x7b8] sm:$0xff] }
 0x58d   :  { %6728 = vmatprep.subr.bf16.mxu0 %v5942_v32  ;;  %6892 = vmatprep.subr.bf16.mxu1 %v5944_v34  ;;  %v6037_v32 = vld [vmem:[#allocation2 + $0x7a0] sm:$0xff]  ;;  %v6039_v34 = vld [vmem:[#allocation2 + $0x7b0] sm:$0xff] }
 0x590   :  { %6729 = vmatpush1.bf16.msra.mxu0 %v5941_v35  ;;  %6893 = vmatpush1.bf16.msra.mxu1 %v5943_v36  ;;  %v6046_v35 = vld [vmem:[#allocation2 + $0x7e8] sm:$0xff]  ;;  %v6048_v36 = vld [vmem:[#allocation2 + $0x7f8] sm:$0xff] }
 0x591   :  { %6730 = vmatprep.subr.bf16.mxu0 %v5950_v38  ;;  %6894 = vmatprep.subr.bf16.mxu1 %v5952_v15  ;;  %v6045_v38 = vld [vmem:[#allocation2 + $0x7e0] sm:$0xff]  ;;  %v6047_v15 = vld [vmem:[#allocation2 + $0x7f0] sm:$0xff] }
 0x594   :  { %6731 = vmatpush1.bf16.msra.mxu0 %v5949_v39  ;;  %6895 = vmatpush1.bf16.msra.mxu1 %v5951_v40  ;;  %v6054_v39 = vld [vmem:[#allocation2 + $0x828] sm:$0xff]  ;;  %v6056_v40 = vld [vmem:[#allocation2 + $0x838] sm:$0xff] }
 0x595   :  { %6732 = vmatprep.subr.bf16.mxu0 %v5958_v41  ;;  %6896 = vmatprep.subr.bf16.mxu1 %v5960_v42  ;;  %v6053_v41 = vld [vmem:[#allocation2 + $0x820] sm:$0xff]  ;;  %v6055_v42 = vld [vmem:[#allocation2 + $0x830] sm:$0xff] }
 0x598   :  { %6733 = vmatpush1.bf16.msra.mxu0 %v5957_v45  ;;  %6897 = vmatpush1.bf16.msra.mxu1 %v5959_v50  ;;  %v6062_v45 = vld [vmem:[#allocation2 + $0x868] sm:$0xff]  ;;  %v6064_v50 = vld [vmem:[#allocation2 + $0x878] sm:$0xff] }
 0x599   :  { %6734 = vmatprep.subr.bf16.mxu0 %v5966_v22  ;;  %6898 = vmatprep.subr.bf16.mxu1 %v5968_v53  ;;  %v6061_v22 = vld [vmem:[#allocation2 + $0x860] sm:$0xff]  ;;  %v6063_v53 = vld [vmem:[#allocation2 + $0x870] sm:$0xff] }
 0x59c   :  { %6735 = vmatpush1.bf16.msra.mxu0 %v5965_v27  ;;  %6899 = vmatpush1.bf16.msra.mxu1 %v5967_v3  ;;  %v6070_v27 = vld [vmem:[#allocation2 + $0x8a8] sm:$0xff]  ;;  %v6072_v3 = vld [vmem:[#allocation2 + $0x8b8] sm:$0xff] }
 0x59d   :  { %6736 = vmatprep.subr.bf16.mxu0 %v5974_v46  ;;  %6900 = vmatprep.subr.bf16.mxu1 %v5976_v57  ;;  %v6069_v46 = vld [vmem:[#allocation2 + $0x8a0] sm:$0xff]  ;;  %v6071_v57 = vld [vmem:[#allocation2 + $0x8b0] sm:$0xff] }
 0x5a0   :  { %6737 = vmatpush1.bf16.msra.mxu0 %v5973_v55  ;;  %6901 = vmatpush1.bf16.msra.mxu1 %v5975_v11  ;;  %v6078_v55 = vld [vmem:[#allocation2 + $0x8e8] sm:$0xff]  ;;  %v6077_v11 = vld [vmem:[#allocation2 + $0x8e0] sm:$0xff] }
 0x5a1   :  { %6738 = vmatprep.subr.bf16.mxu0 %v5982_v56  ;;  %6902 = vmatprep.subr.bf16.mxu1 %v5984_v60  ;;  %v6079_v56 = vld [vmem:[#allocation2 + $0x8f0] sm:$0xff]  ;;  %v6086_v60 = vld [vmem:[#allocation2 + $0x928] sm:$0xff] }
 0x5a4   :  { %6739 = vmatpush1.bf16.msra.mxu0 %v5981_v59  ;;  %6903 = vmatpush1.bf16.msra.mxu1 %v5983_v5  ;;  %v6088_v59 = vld [vmem:[#allocation2 + $0x938] sm:$0xff]  ;;  %v6087_v5 = vld [vmem:[#allocation2 + $0x930] sm:$0xff] }
 0x5a5   :  { %6740 = vmatprep.subr.bf16.mxu0 %v5990_v61  ;;  %6904 = vmatprep.subr.bf16.mxu1 %v5992_v1  ;;  %v6094_v61 = vld [vmem:[#allocation2 + $0x968] sm:$0xff]  ;;  %v6096_v1 = vld [vmem:[#allocation2 + $0x978] sm:$0xff] }
 0x5a8   :  { %6741 = vmatpush1.bf16.msra.mxu0 %v5989_v37  ;;  %6905 = vmatpush1.bf16.msra.mxu1 %v5991_v4  ;;  %v6093_v37 = vld [vmem:[#allocation2 + $0x960] sm:$0xff]  ;;  %v6095_v4 = vld [vmem:[#allocation2 + $0x970] sm:$0xff] }
 0x5a9   :  { %6742 = vmatprep.subr.bf16.mxu0 %v5998_v10  ;;  %6906 = vmatprep.subr.bf16.mxu1 %v6000_v12  ;;  %v6102_v10 = vld [vmem:[#allocation2 + $0x9a8] sm:$0xff]  ;;  %v6104_v12 = vld [vmem:[#allocation2 + $0x9b8] sm:$0xff] }
 0x5ac   :  { %6743 = vmatpush1.bf16.msra.mxu0 %v5997_v14  ;;  %6907 = vmatpush1.bf16.msra.mxu1 %v5999_v2  ;;  %v6101_v14 = vld [vmem:[#allocation2 + $0x9a0] sm:$0xff]  ;;  %v6103_v2 = vld [vmem:[#allocation2 + $0x9b0] sm:$0xff] }
 0x5ad   :  { %6744 = vmatprep.subr.bf16.mxu0 %v6006_v33  ;;  %6908 = vmatprep.subr.bf16.mxu1 %v6008_v16  ;;  %v6110_v33 = vld [vmem:[#allocation2 + $0x9e8] sm:$0xff]  ;;  %v6112_v16 = vld [vmem:[#allocation2 + $0x9f8] sm:$0xff] }
 0x5b0   :  { %6745 = vmatpush1.bf16.msra.mxu0 %v6005_v7  ;;  %6909 = vmatpush1.bf16.msra.mxu1 %v6007_v17  ;;  %v6109_v7 = vld [vmem:[#allocation2 + $0x9e0] sm:$0xff]  ;;  %v6111_v17 = vld [vmem:[#allocation2 + $0x9f0] sm:$0xff] }
 0x5b1   :  { %6746 = vmatprep.subr.bf16.mxu0 %v6014_v18  ;;  %6910 = vmatprep.subr.bf16.mxu1 %v6016_v19  ;;  %v6118_v18 = vld [vmem:[#allocation2 + $0xa28] sm:$0xff]  ;;  %v6120_v19 = vld [vmem:[#allocation2 + $0xa38] sm:$0xff] }
 0x5b4   :  { %6747 = vmatpush1.bf16.msra.mxu0 %v6013_v0  ;;  %6911 = vmatpush1.bf16.msra.mxu1 %v6015_v20  ;;  %v6117_v0 = vld [vmem:[#allocation2 + $0xa20] sm:$0xff]  ;;  %v6119_v20 = vld [vmem:[#allocation2 + $0xa30] sm:$0xff] }
 0x5b5   :  { %6748 = vmatprep.subr.bf16.mxu0 %v6022_v25  ;;  %6912 = vmatprep.subr.bf16.mxu1 %v6024_v51  ;;  %v6126_v25 = vld [vmem:[#allocation2 + $0xa68] sm:$0xff]  ;;  %v6128_v51 = vld [vmem:[#allocation2 + $0xa78] sm:$0xff] }
 0x5b8   :  { %6749 = vmatpush1.bf16.msra.mxu0 %v6021_v63  ;;  %6913 = vmatpush1.bf16.msra.mxu1 %v6023_v29  ;;  %v6125_v63 = vld [vmem:[#allocation2 + $0xa60] sm:$0xff]  ;;  %v6127_v29 = vld [vmem:[#allocation2 + $0xa70] sm:$0xff] }
 0x5b9   :  { %6750 = vmatprep.subr.bf16.mxu0 %v6030_v47  ;;  %6914 = vmatprep.subr.bf16.mxu1 %v6032_v30  ;;  %v6134_v47 = vld [vmem:[#allocation2 + $0xaa8] sm:$0xff]  ;;  %v6136_v30 = vld [vmem:[#allocation2 + $0xab8] sm:$0xff] }
 0x5bc   :  { %6751 = vmatpush1.bf16.msra.mxu0 %v6029_v62  ;;  %6915 = vmatpush1.bf16.msra.mxu1 %v6031_v8  ;;  %v6133_v62 = vld [vmem:[#allocation2 + $0xaa0] sm:$0xff]  ;;  %v6135_v8 = vld [vmem:[#allocation2 + $0xab0] sm:$0xff] }
 0x5bd   :  { %6752 = vmatprep.subr.bf16.mxu0 %v6038_v13  ;;  %6916 = vmatprep.subr.bf16.mxu1 %v6040_v31  ;;  %v6142_v13 = vld [vmem:[#allocation2 + $0xae8] sm:$0xff]  ;;  %v6144_v31 = vld [vmem:[#allocation2 + $0xaf8] sm:$0xff] }
 0x5c0   :  { %6753 = vmatpush1.bf16.msra.mxu0 %v6037_v32  ;;  %6917 = vmatpush1.bf16.msra.mxu1 %v6039_v34  ;;  %v6141_v32 = vld [vmem:[#allocation2 + $0xae0] sm:$0xff]  ;;  %v6143_v34 = vld [vmem:[#allocation2 + $0xaf0] sm:$0xff] }
 0x5c1   :  { %6754 = vmatprep.subr.bf16.mxu0 %v6046_v35  ;;  %6918 = vmatprep.subr.bf16.mxu1 %v6048_v36  ;;  %v6150_v35 = vld [vmem:[#allocation2 + $0xb28] sm:$0xff]  ;;  %v6152_v36 = vld [vmem:[#allocation2 + $0xb38] sm:$0xff] }
 0x5c4   :  { %6755 = vmatpush1.bf16.msra.mxu0 %v6045_v38  ;;  %6919 = vmatpush1.bf16.msra.mxu1 %v6047_v15  ;;  %v6149_v38 = vld [vmem:[#allocation2 + $0xb20] sm:$0xff]  ;;  %v6151_v15 = vld [vmem:[#allocation2 + $0xb30] sm:$0xff] }
 0x5c5   :  { %6765 = vmatprep.subr.bf16.mxu0 %v6054_v39  ;;  %6929 = vmatprep.subr.bf16.mxu1 %v6056_v40  ;;  %v6158_v39 = vld [vmem:[#allocation2 + $0xb68] sm:$0xff]  ;;  %v6160_v40 = vld [vmem:[#allocation2 + $0xb78] sm:$0xff] }
 0x5c7   :  { %6757 = vmatmul.mubr.bf16.vlgmr.msra.gmra.mrb[12].mxu0 %v8645_v52  ;;  %6921 = vmatmul.mubr.bf16.vlgmr.msra.gmra.mrb[12].mxu1 %v8645_v52  ;;  %v6080_v52 = vld [vmem:[#allocation2 + $0x8f8] sm:$0xff] }
 0x5c8   :  { %6766 = vmatpush1.bf16.msra.mxu0 %v6053_v41  ;;  %6930 = vmatpush1.bf16.msra.mxu1 %v6055_v42  ;;  %v6157_v41 = vld [vmem:[#allocation2 + $0xb60] sm:$0xff]  ;;  %v6159_v42 = vld [vmem:[#allocation2 + $0xb70] sm:$0xff] }
 0x5c9   :  { %6767 = vmatprep.subr.bf16.mxu0 %v6062_v45  ;;  %6931 = vmatprep.subr.bf16.mxu1 %v6064_v50  ;;  %v6166_v45 = vld [vmem:[#allocation2 + $0xba8] sm:$0xff]  ;;  %v6168_v50 = vld [vmem:[#allocation2 + $0xbb8] sm:$0xff] }
 0x5ca   :  { %6797 = vmatprep.mubr.bf16.mxu0 %v8650_v28  ;;  %6961 = vmatprep.mubr.bf16.mxu1 %v8650_v28  ;;  %v6085_v28 = vld [vmem:[#allocation2 + $0x920] sm:$0xff] }
 0x5cc   :  { %6768 = vmatpush1.bf16.msra.mxu0 %v6061_v22  ;;  %6932 = vmatpush1.bf16.msra.mxu1 %v6063_v53  ;;  %v6165_v22 = vld [vmem:[#allocation2 + $0xba0] sm:$0xff]  ;;  %v6167_v53 = vld [vmem:[#allocation2 + $0xbb0] sm:$0xff] }
 0x5cd   :  { %6769 = vmatprep.subr.bf16.mxu0 %v6070_v27  ;;  %6933 = vmatprep.subr.bf16.mxu1 %v6072_v3  ;;  %v6174_v27 = vld [vmem:[#allocation2 + $0xbe8] sm:$0xff]  ;;  %v6176_v3 = vld [vmem:[#allocation2 + $0xbf8] sm:$0xff] }
 0x5d0   :  { %6770 = vmatpush1.bf16.msra.mxu0 %v6069_v46  ;;  %6934 = vmatpush1.bf16.msra.mxu1 %v6071_v57  ;;  %v6173_v46 = vld [vmem:[#allocation2 + $0xbe0] sm:$0xff]  ;;  %v6175_v57 = vld [vmem:[#allocation2 + $0xbf0] sm:$0xff] }
 0x5d1   :  { %6771 = vmatprep.subr.bf16.mxu0 %v6078_v55  ;;  %6935 = vmatprep.subr.bf16.mxu1 %v6080_v52  ;;  %v6182_v55 = vld [vmem:[#allocation2 + $0xc28] sm:$0xff]  ;;  %v6184_v52 = vld [vmem:[#allocation2 + $0xc38] sm:$0xff] }
 0x5d4   :  { %6772 = vmatpush1.bf16.msra.mxu0 %v6077_v11  ;;  %6936 = vmatpush1.bf16.msra.mxu1 %v6079_v56  ;;  %v6181_v11 = vld [vmem:[#allocation2 + $0xc20] sm:$0xff]  ;;  %v6183_v56 = vld [vmem:[#allocation2 + $0xc30] sm:$0xff] }
 0x5d5   :  { %6773 = vmatprep.subr.bf16.mxu0 %v6086_v60  ;;  %6937 = vmatprep.subr.bf16.mxu1 %v6088_v59  ;;  %v6190_v60 = vld [vmem:[#allocation2 + $0xc68] sm:$0xff]  ;;  %v6192_v59 = vld [vmem:[#allocation2 + $0xc78] sm:$0xff] }
 0x5d8   :  { %6774 = vmatpush1.bf16.msra.mxu0 %v6085_v28  ;;  %6938 = vmatpush1.bf16.msra.mxu1 %v6087_v5  ;;  %v6189_v28 = vld [vmem:[#allocation2 + $0xc60] sm:$0xff]  ;;  %v6191_v5 = vld [vmem:[#allocation2 + $0xc70] sm:$0xff] }
 0x5d9   :  { %6775 = vmatprep.subr.bf16.mxu0 %v6094_v61  ;;  %6939 = vmatprep.subr.bf16.mxu1 %v6096_v1  ;;  %v6198_v61 = vld [vmem:[#allocation2 + $0xca8] sm:$0xff]  ;;  %v6200_v1 = vld [vmem:[#allocation2 + $0xcb8] sm:$0xff] }
 0x5dc   :  { %6776 = vmatpush1.bf16.msra.mxu0 %v6093_v37  ;;  %6940 = vmatpush1.bf16.msra.mxu1 %v6095_v4  ;;  %v6197_v37 = vld [vmem:[#allocation2 + $0xca0] sm:$0xff]  ;;  %v6199_v4 = vld [vmem:[#allocation2 + $0xcb0] sm:$0xff] }
 0x5dd   :  { %6777 = vmatprep.subr.bf16.mxu0 %v6102_v10  ;;  %6941 = vmatprep.subr.bf16.mxu1 %v6104_v12  ;;  %v6206_v10 = vld [vmem:[#allocation2 + $0xce8] sm:$0xff]  ;;  %v6205_v12 = vld [vmem:[#allocation2 + $0xce0] sm:$0xff] }
 0x5e0   :  { %6778 = vmatpush1.bf16.msra.mxu0 %v6101_v14  ;;  %6942 = vmatpush1.bf16.msra.mxu1 %v6103_v2  ;;  %v6207_v14 = vld [vmem:[#allocation2 + $0xcf0] sm:$0xff]  ;;  %v6214_v2 = vld [vmem:[#allocation2 + $0xd28] sm:$0xff] }
 0x5e1   :  { %6779 = vmatprep.subr.bf16.mxu0 %v6110_v33  ;;  %6943 = vmatprep.subr.bf16.mxu1 %v6112_v16  ;;  %v6216_v33 = vld [vmem:[#allocation2 + $0xd38] sm:$0xff]  ;;  %v6215_v16 = vld [vmem:[#allocation2 + $0xd30] sm:$0xff] }
 0x5e4   :  { %6780 = vmatpush1.bf16.msra.mxu0 %v6109_v7  ;;  %6944 = vmatpush1.bf16.msra.mxu1 %v6111_v17  ;;  %v6222_v7 = vld [vmem:[#allocation2 + $0xd68] sm:$0xff]  ;;  %v6224_v17 = vld [vmem:[#allocation2 + $0xd78] sm:$0xff] }
 0x5e5   :  { %6781 = vmatprep.subr.bf16.mxu0 %v6118_v18  ;;  %6945 = vmatprep.subr.bf16.mxu1 %v6120_v19  ;;  %v6221_v18 = vld [vmem:[#allocation2 + $0xd60] sm:$0xff]  ;;  %v6223_v19 = vld [vmem:[#allocation2 + $0xd70] sm:$0xff] }
 0x5e8   :  { %6782 = vmatpush1.bf16.msra.mxu0 %v6117_v0  ;;  %6946 = vmatpush1.bf16.msra.mxu1 %v6119_v20 }
 0x5e9   :  { %6783 = vmatprep.subr.bf16.mxu0 %v6126_v25  ;;  %6947 = vmatprep.subr.bf16.mxu1 %v6128_v51  ;;  %v6230_v25 = vld [vmem:[#allocation2 + $0xda8] sm:$0xff]  ;;  %v6232_v51 = vld [vmem:[#allocation2 + $0xdb8] sm:$0xff] }
 0x5ec   :  { %6784 = vmatpush1.bf16.msra.mxu0 %v6125_v63  ;;  %6948 = vmatpush1.bf16.msra.mxu1 %v6127_v29 }
 0x5ed   :  { %6785 = vmatprep.subr.bf16.mxu0 %v6134_v47  ;;  %6949 = vmatprep.subr.bf16.mxu1 %v6136_v30 }
 0x5f0   :  { %6786 = vmatpush1.bf16.msra.mxu0 %v6133_v62  ;;  %6950 = vmatpush1.bf16.msra.mxu1 %v6135_v8 }
 0x5f1   :  { %6787 = vmatprep.subr.bf16.mxu0 %v6142_v13  ;;  %6951 = vmatprep.subr.bf16.mxu1 %v6144_v31  ;;  %v6229_v13 = vld [vmem:[#allocation2 + $0xda0] sm:$0xff]  ;;  %v6231_v31 = vld [vmem:[#allocation2 + $0xdb0] sm:$0xff] }
 0x5f4   :  { %6788 = vmatpush1.bf16.msra.mxu0 %v6141_v32  ;;  %6952 = vmatpush1.bf16.msra.mxu1 %v6143_v34  ;;  %v6238_v32 = vld [vmem:[#allocation2 + $0xde8] sm:$0xff]  ;;  %v6240_v34 = vld [vmem:[#allocation2 + $0xdf8] sm:$0xff] }
 0x5f5   :  { %6789 = vmatprep.subr.bf16.mxu0 %v6150_v35  ;;  %6953 = vmatprep.subr.bf16.mxu1 %v6152_v36  ;;  %v6237_v35 = vld [vmem:[#allocation2 + $0xde0] sm:$0xff]  ;;  %v6239_v36 = vld [vmem:[#allocation2 + $0xdf0] sm:$0xff] }
 0x5f8   :  { %6790 = vmatpush1.bf16.msra.mxu0 %v6149_v38  ;;  %6954 = vmatpush1.bf16.msra.mxu1 %v6151_v15  ;;  %v6246_v38 = vld [vmem:[#allocation2 + $0xe28] sm:$0xff]  ;;  %v6248_v15 = vld [vmem:[#allocation2 + $0xe38] sm:$0xff] }
 0x5f9   :  { %6791 = vmatprep.subr.bf16.mxu0 %v6158_v39  ;;  %6955 = vmatprep.subr.bf16.mxu1 %v6160_v40  ;;  %v6245_v39 = vld [vmem:[#allocation2 + $0xe20] sm:$0xff]  ;;  %v6247_v40 = vld [vmem:[#allocation2 + $0xe30] sm:$0xff] }
 0x5fc   :  { %6792 = vmatpush1.bf16.msra.mxu0 %v6157_v41  ;;  %6956 = vmatpush1.bf16.msra.mxu1 %v6159_v42  ;;  %v6254_v41 = vld [vmem:[#allocation2 + $0xe68] sm:$0xff]  ;;  %v6256_v42 = vld [vmem:[#allocation2 + $0xe78] sm:$0xff] }
 0x5fd   :  { %6793 = vmatprep.subr.bf16.mxu0 %v6166_v45  ;;  %6957 = vmatprep.subr.bf16.mxu1 %v6168_v50  ;;  %v6253_v45 = vld [vmem:[#allocation2 + $0xe60] sm:$0xff]  ;;  %v6255_v50 = vld [vmem:[#allocation2 + $0xe70] sm:$0xff] }
 0x600   :  { %6794 = vmatpush1.bf16.msra.mxu0 %v6165_v22  ;;  %6958 = vmatpush1.bf16.msra.mxu1 %v6167_v53  ;;  %v6262_v22 = vld [vmem:[#allocation2 + $0xea8] sm:$0xff]  ;;  %v6264_v53 = vld [vmem:[#allocation2 + $0xeb8] sm:$0xff] }
 0x601   :  { %6795 = vmatprep.subr.bf16.mxu0 %v6174_v27  ;;  %6959 = vmatprep.subr.bf16.mxu1 %v6176_v3  ;;  %v6261_v27 = vld [vmem:[#allocation2 + $0xea0] sm:$0xff]  ;;  %v6263_v3 = vld [vmem:[#allocation2 + $0xeb0] sm:$0xff] }
 0x604   :  { %6796 = vmatpush1.bf16.msra.mxu0 %v6173_v46  ;;  %6960 = vmatpush1.bf16.msra.mxu1 %v6175_v57  ;;  %v6270_v46 = vld [vmem:[#allocation2 + $0xee8] sm:$0xff]  ;;  %v6272_v57 = vld [vmem:[#allocation2 + $0xef8] sm:$0xff] }
 0x605   :  { %6806 = vmatprep.subr.bf16.mxu0 %v6182_v55  ;;  %6970 = vmatprep.subr.bf16.mxu1 %v6184_v52  ;;  %v8386_v55 = vmov 1966171168  }
 0x606   :  { %v7041_v52 = vunpack.c.l.s4 %v8386_v55 }
 0x607   :  { %6798 = vmatmul.mubr.bf16.vlgmr.msra.gmra.mrb[12].mxu0 %v8659_v23  ;;  %6962 = vmatmul.mubr.bf16.vlgmr.msra.gmra.mrb[12].mxu1 %v8659_v23  ;;  %v6208_v23 = vld [vmem:[#allocation2 + $0xcf8] sm:$0xff] }
 0x608   :  { %6807 = vmatpush1.bf16.msra.mxu0 %v6181_v11  ;;  %6971 = vmatpush1.bf16.msra.mxu1 %v6183_v56  ;;  %v6269_v11 = vld [vmem:[#allocation2 + $0xee0] sm:$0xff]  ;;  %v6271_v56 = vld [vmem:[#allocation2 + $0xef0] sm:$0xff] }
 0x609   :  { %6808 = vmatprep.subr.bf16.mxu0 %v6190_v60  ;;  %6972 = vmatprep.subr.bf16.mxu1 %v6192_v59  ;;  %v6278_v60 = vld [vmem:[#allocation2 + $0xf28] sm:$0xff]  ;;  %v6280_v59 = vld [vmem:[#allocation2 + $0xf38] sm:$0xff] }
 0x60a   :  { %6838 = vmatprep.mubr.bf16.mxu0 %v8664_v54  ;;  %7002 = vmatprep.mubr.bf16.mxu1 %v8664_v54  ;;  %v6213_v54 = vld [vmem:[#allocation2 + $0xd20] sm:$0xff] }
 0x60c   :  { %6809 = vmatpush1.bf16.msra.mxu0 %v6189_v28  ;;  %6973 = vmatpush1.bf16.msra.mxu1 %v6191_v5  ;;  %v8699_v28 = vld [vmem:[#allocation11] sm:$0xff]  ;;  %v7042_v5 = vunpack.c.0.s8 %v7041_v52 }
 0x60d   :  { %6810 = vmatprep.subr.bf16.mxu0 %v6198_v61  ;;  %6974 = vmatprep.subr.bf16.mxu1 %v6200_v1  ;;  %v6277_v61 = vld [vmem:[#allocation2 + $0xf20] sm:$0xff]  ;;  %v6279_v1 = vld [vmem:[#allocation2 + $0xf30] sm:$0xff] }
 0x610   :  { %6811 = vmatpush1.bf16.msra.mxu0 %v6197_v37  ;;  %6975 = vmatpush1.bf16.msra.mxu1 %v6199_v4  ;;  %v6286_v37 = vld [vmem:[#allocation2 + $0xf68] sm:$0xff]  ;;  %v6288_v4 = vld [vmem:[#allocation2 + $0xf78] sm:$0xff] }
 0x611   :  { %6812 = vmatprep.subr.bf16.mxu0 %v6206_v10  ;;  %6976 = vmatprep.subr.bf16.mxu1 %v6208_v23  ;;  %v6322_v10 = vrot.slane %v8699_v28, %v923_v24  ;;  %v8705_v23 = vsub.s32 %v7042_v5, %v8560_v9  ;;  %v6293_v24 = vld [vmem:[#allocation2 + $0xfa0] sm:$0xff] }
 0x614   :  { %6813 = vmatpush1.bf16.msra.mxu0 %v6205_v12  ;;  %6977 = vmatpush1.bf16.msra.mxu1 %v6207_v14  ;;  %v6285_v12 = vld [vmem:[#allocation2 + $0xf60] sm:$0xff]  ;;  %v6287_v14 = vld [vmem:[#allocation2 + $0xf70] sm:$0xff] }
 0x615   :  { %6814 = vmatprep.subr.bf16.mxu0 %v6214_v2  ;;  %6978 = vmatprep.subr.bf16.mxu1 %v6216_v33  ;;  %v7019_v2 = vld [vmem:[#allocation13] sm:$0xff]  ;;  %v6294_v33 = vld [vmem:[#allocation2 + $0xfa8] sm:$0xff] }
 0x618   :  { %6815 = vmatpush1.bf16.msra.mxu0 %v6213_v54  ;;  %6979 = vmatpush1.bf16.msra.mxu1 %v6215_v16  ;;  %v6296_v54 = vld [vmem:[#allocation2 + $0xfb8] sm:$0xff] }
 0x619   :  { %6816 = vmatprep.subr.bf16.mxu0 %v6222_v7  ;;  %6980 = vmatprep.subr.bf16.mxu1 %v6224_v17  ;;  %v7046_v7 = vrot.slane %v7019_v2, %v8705_v23  ;;  %v6295_v17 = vld [vmem:[#allocation2 + $0xfb0] sm:$0xff] }
 0x61a   :  { %v8691_v0 = vpop.f32.mrb[8].mxu0  ;;  %v8693_v20 = vpop.f32.mrb[8].mxu1 }
 0x61b   :  { %v8695_v63 = vpop.f32.mrb[9].mxu0  ;;  %v8697_v29 = vpop.f32.mrb[9].mxu1 }
 0x61c   :  { %v6516_v47 = vpop.f32.mrb[10].mxu0  ;;  %v6680_v30 = vpop.f32.mrb[10].mxu1  ;;  %6817 = vmatpush1.bf16.msra.mxu0 %v6221_v18  ;;  %6981 = vmatpush1.bf16.msra.mxu1 %v6223_v19  ;;  %v8061_v16 = vadd.f32 %v8695_v63, %v6322_v10  ;;  %v6302_v18 = vld [vmem:[#allocation2 + $0xfe8] sm:$0xff]  ;;  %v6304_v19 = vld [vmem:[#allocation2 + $0xff8] sm:$0xff]  ;;  %v7054_v63 = vcombine.high %v7046_v7, %v7046_v7 }
 0x61d   :  { %v6517_v62 = vpop.f32.mrb[11].mxu0  ;;  %v6681_v8 = vpop.f32.mrb[11].mxu1  ;;  %6818 = vmatprep.subr.bf16.mxu0 %v6230_v25  ;;  %6982 = vmatprep.subr.bf16.mxu1 %v6232_v51  ;;  %v6318_v25 = vrot.slane %v8699_v28, %v8563_v58  ;;  %v6330_v47 = vrot.slane %v8699_v28, %v931_v26  ;;  %v6301_v30 = vld [vmem:[#allocation2 + $0xfe0] sm:$0xff]  ;;  %v6326_v26 = vrot.slane %v8699_v28, %v927_v21 }
 0x61e   :  { %v7012_v51 = vmax.f32 %v8061_v16, 0.0  ;;  %v6303_v62 = vld [vmem:[#allocation2 + $0xff0] sm:$0xff] }
 0x61f   :  { %v8060_v8 = vadd.f32 %v8691_v0, %v6318_v25 }
 0x620   :  { %6819 = vmatpush1.bf16.msra.mxu0 %v6229_v13  ;;  %6983 = vmatpush1.bf16.msra.mxu1 %v6231_v31  ;;  %v7021_v13 = vpack.c.bf16 %v7012_v51, %v7012_v51  ;;  %v8063_v31 = vadd.f32 %v8697_v29, %v6330_v47 }
 0x621   :  { %6820 = vmatprep.subr.bf16.mxu0 %v6238_v32  ;;  %6984 = vmatprep.subr.bf16.mxu1 %v6240_v34  ;;  %v7076_v32 = vrot.slane %v7054_v63, %v8705_v23  ;;  %v7011_v34 = vmax.f32 %v8060_v8, 0.0 }
 0x623   :  { %v7020_v0 = vpack.c.bf16 %v7011_v34, %v7011_v34  ;;  %v7086_v21 = vcombine.high %v7076_v32, %v7076_v32 }
 0x624   :  { %6821 = vmatpush1.bf16.msra.mxu0 %v6237_v35  ;;  %6985 = vmatpush1.bf16.msra.mxu1 %v6239_v36  ;;  %v7014_v35 = vmax.f32 %v8063_v31, 0.0  ;;  %v8062_v36 = vadd.f32 %v8693_v20, %v6326_v26  ;;  %v7028_v20 = vld [vmem:[#allocation4] sm:$0x1] }
 0x625   :  { %6822 = vmatprep.subr.bf16.mxu0 %v6246_v38  ;;  %6986 = vmatprep.subr.bf16.mxu1 %v6248_v15  ;;  %v7062_v15 = vrot.slane %v7046_v7, %v8705_v23 }
 0x626   :  { %v7023_v29 = vpack.c.bf16 %v7014_v35, %v7014_v35  ;;  %v7013_v38 = vmax.f32 %v8062_v36, 0.0 }
 0x628   :  { %6823 = vmatpush1.bf16.msra.mxu0 %v6245_v39  ;;  %6987 = vmatpush1.bf16.msra.mxu1 %v6247_v40  ;;  %v7022_v39 = vpack.c.bf16 %v7013_v38, %v7013_v38  ;;  %v7039_v40 = vcombine.high %v7019_v2, %v7019_v2 }
 0x629   :  { %6824 = vmatprep.subr.bf16.mxu0 %v6254_v41  ;;  %6988 = vmatprep.subr.bf16.mxu1 %v6256_v42  ;;  %v7084_v41 = vcombine.high %v7062_v15, %v7062_v15 }
 0x62a   :  { %v7053_v42 = vrot.slane %v7039_v40, %v8705_v23 }
 0x62c   :  { %6825 = vmatpush1.bf16.msra.mxu0 %v6253_v45  ;;  %6989 = vmatpush1.bf16.msra.mxu1 %v6255_v50  ;;  %v8387_v50 = vmov 0   ;;  %v7069_v2 = vrot.slane %v7053_v42, %v8705_v23 }
 0x62d   :  { %6826 = vmatprep.subr.bf16.mxu0 %v6262_v22  ;;  %6990 = vmatprep.subr.bf16.mxu1 %v6264_v53  ;;  %v6334_v22 = vrot.slane %v8699_v28, %v935_v43  ;;  %v6338_v53 = vrot.slane %v8699_v28, %v939_v48  ;;  %v6342_v43 = vrot.slane %v8699_v28, %v943_v44 }
 0x62e   :  { %8226 = vset.pattern.permute.xlu0 %v8387_v50  ;;  %v7085_v9 = vcombine.high %v7069_v2, %v7069_v2 }
 0x62f   :  { %7031 = vperm.xlu0 %8226, %v7028_v20  }
 0x630   :  { %6827 = vmatpush1.bf16.msra.mxu0 %v6261_v27  ;;  %6991 = vmatpush1.bf16.msra.mxu1 %v6263_v3  ;;  %v6346_v27 = vrot.slane %v8699_v28, %v947_v49 }
 0x631   :  { %6828 = vmatprep.subr.bf16.mxu0 %v6270_v46  ;;  %6992 = vmatprep.subr.bf16.mxu1 %v6272_v57 }
 0x634   :  { %6829 = vmatpush1.bf16.msra.mxu0 %v6269_v11  ;;  %6993 = vmatpush1.bf16.msra.mxu1 %v6271_v56 }
 0x635   :  { %6830 = vmatprep.subr.bf16.mxu0 %v6278_v60  ;;  %6994 = vmatprep.subr.bf16.mxu1 %v6280_v59 }
 0x638   :  { %6831 = vmatpush1.bf16.msra.mxu0 %v6277_v61  ;;  %6995 = vmatpush1.bf16.msra.mxu1 %v6279_v1 }
 0x639   :  { %6832 = vmatprep.subr.bf16.mxu0 %v6286_v37  ;;  %6996 = vmatprep.subr.bf16.mxu1 %v6288_v4 }
 0x63c   :  { %6833 = vmatpush1.bf16.msra.mxu0 %v6285_v12  ;;  %6997 = vmatpush1.bf16.msra.mxu1 %v6287_v14 }
 0x63d   :  { %6834 = vmatprep.subr.bf16.mxu0 %v6294_v33  ;;  %6998 = vmatprep.subr.bf16.mxu1 %v6296_v54 }
 0x640   :  { %6835 = vmatpush1.bf16.msra.mxu0 %v6293_v24  ;;  %6999 = vmatpush1.bf16.msra.mxu1 %v6295_v17 }
 0x641   :  { %6836 = vmatprep.subr.bf16.mxu0 %v6302_v18  ;;  %7000 = vmatprep.subr.bf16.mxu1 %v6304_v19 }
 0x644   :  { %6837 = vmatpush1.bf16.msra.mxu0 %v6301_v30  ;;  %7001 = vmatpush1.bf16.msra.mxu1 %v6303_v62 }
 0x645   :  { %7096 = vmatprep.subr.bf16.mxu1 %v7021_v13 }
 0x647   :  { %6839 = vmatmul.mubr.bf16.vlgmr.msra.gmra.mrb[12].mxu0 %v8673_v6  ;;  %7003 = vmatmul.mubr.bf16.vlgmr.msra.gmra.mrb[12].mxu1 %v8673_v6  ;;  %v7055_v6 = vcombine.high %v7053_v42, %v7053_v42 }
 0x648   :  { %7128 = vmatprep.mubr.bf16.mxu1 %v7076_v32 }
 0x649   :  { %v7083_v45 = vrot.slane %v7055_v6, %v8705_v23 }
 0x64b   :  { %7208 = vmatprep.mubr.bf16.mxu0 %v7083_v45  ;;  %v7087_v33 = vcombine.high %v7083_v45, %v7083_v45 }
 0x64d   :  { %7097 = vmatpush1.bf16.xpose.msra.mxu1 %v7020_v0 }
 0x64e   :  { %7136 = vmatprep.subr.bf16.mxu1 %v7023_v29 }
 0x654   :  { %7129 = vmatmul.mubr.bf16.vlgmr.msra.gmra.mrb[16].mxu1 %v7062_v15 }
 0x655   :  { %7137 = vmatpush1.bf16.xpose.msra.mxu1 %v7022_v39  ;;  %7168 = vmatprep.mubr.bf16.mxu1 %v7086_v21 }
 0x660   :  { %7169 = vmatmul.mubr.bf16.vlgmr.msra.gmra.mrb[16].mxu1 %v7084_v41 }
 0x6ae   :  { %v7032_v24 = vpop.permute.xlu0 %7031 }
 0x6af   :  { %v7037_v17 = vrot.slane %v7032_v24, %v8563_v58 }
 0x71a   :  { %v6840_v3 = vpop.f32.mrb[12].mxu0  ;;  %v7004_v46 = vpop.f32.mrb[12].mxu1 }
 0x71b   :  { %v8064_v57 = vadd.f32 %v6840_v3, %v6334_v22  ;;  %v6842_v55 = vpop.f32.mrb[13].mxu0  ;;  %v7006_v52 = vpop.f32.mrb[13].mxu1  ;;  %v8066_v10 = vadd.f32 %v7004_v46, %v6342_v43 }
 0x71c   :  { %v8065_v11 = vadd.f32 %v6842_v55, %v6338_v53  ;;  %v8067_v56 = vadd.f32 %v7006_v52, %v6346_v27  ;;  %v6844_v60 = vpop.f32.mrb[14].mxu0  ;;  %v7008_v59 = vpop.f32.mrb[14].mxu1 }
 0x71d   :  { %v7015_v5 = vmax.f32 %v8064_v57, 0.0  ;;  %v6845_v61 = vpop.f32.mrb[15].mxu0  ;;  %v7009_v48 = vpop.f32.mrb[15].mxu1  ;;  %v7017_v14 = vmax.f32 %v8066_v10, 0.0 }
 0x71e   :  { %v7016_v1 = vmax.f32 %v8065_v11, 0.0  ;;  %v7018_v37 = vmax.f32 %v8067_v56, 0.0 }
 0x71f   :  { %v7024_v49 = vpack.c.bf16 %v7015_v5, %v7015_v5  ;;  %v7026_v54 = vpack.c.bf16 %v7017_v14, %v7017_v14 }
 0x720   :  { %v7025_v4 = vpack.c.bf16 %v7016_v1, %v7016_v1  ;;  %v7027_v12 = vpack.c.bf16 %v7018_v37, %v7018_v37 }
 0x722   :  { %7176 = vmatprep.subr.bf16.mxu0 %v7025_v4 }
 0x723   :  { %7177 = vmatpush1.bf16.xpose.msra.mxu0 %v7024_v49 }
 0x724   :  { %7216 = vmatprep.subr.bf16.mxu0 %v7027_v12 }
 0x72a   :  { %7209 = vmatmul.mubr.bf16.vlgmr.msra.gmra.mrb[16].mxu0 %v7069_v2 }
 0x72b   :  { %7217 = vmatpush1.bf16.xpose.msra.mxu0 %v7026_v54  ;;  %7248 = vmatprep.mubr.bf16.mxu0 %v7087_v33 }
 0x733   :  { %v7170_v44 = vpop.f32.mrb[16].mxu1 }
 0x734   :  { %v7172_v28 = vpop.f32.mrb[17].mxu1  ;;  %v8068_v18 = vadd.f32 %v7170_v44, %v7037_v17 }
 0x735   :  { %v7173_v16 = vpop.f32.mrb[18].mxu1 }
 0x736   :  { %7249 = vmatmul.mubr.bf16.vlgmr.msra.gmra.mrb[16].mxu0 %v7085_v9  ;;  %v7174_v7 = vpop.f32.mrb[19].mxu1 }
 0x809   :  { %v7250_v19 = vpop.f32.mrb[16].mxu0 }
 0x80a   :  { %v8069_v23 = vadd.f32 %v8068_v18, %v7250_v19  ;;  %v7252_v25 = vpop.f32.mrb[17].mxu0 }
 0x80b   :  { %v7253_v51 = vpop.f32.mrb[18].mxu0 }
 0x80c   :  { %v7254_v47 = vpop.f32.mrb[19].mxu0  ;;  %7257 = vst.msk [vmem:[#allocation14] sm:$0x1] %vm7256_vm0, %v8069_v23 }
 0x80d   :  { %8349 = shalt.err (!%p8346_p2)
}
 0x80e   :  { %s8350_s28 = scalar_lea.hbm %s8759_s7, 16 }
 0x80f   :  { %p8351_p3 = scmp.ne.s32.totalorder %s8759_s7, %s8350_s28  ;;  %p8354_p4 = scmp.lt.u32.totalorder %s8350_s28, %s8759_s7 }
 0x811   :  { %p8356_p5 = pnand %p8354_p4, %p8351_p3 }
 0x813   :  { %8359 = shalt.err (!%p8356_p5)
}
 0x814   :  { %7267 = dma.vmem_to_hbm [thread:$0]  %s7265_s12, 16, %s8759_s7, [#allocation7]  }
 0x815   :  { %8368 = dma.done.wait [#allocation7], 16  }
 0x816   :  { %8369 = vsyncadd [#allocation7], 4294967280 }
 0x817   :  { %7271 = vsyncpa [#allocation6], 1 }
 0x818   :  { %7272 = vsyncpa [#allocation9], 1 }
 0x819   :  { %7273 = vsyncpa [#allocation12], 1 }
 0x81a   :  { %7274 = vsyncpa [#allocation7], 1 }
 0x81b   :  { %7275 = vsyncmov [#allocation3] }
 0x81e   :  { %s7276_s2 = vpop.sfrf %7275 }
 0x81f   :  { %p8051_p6 = scmp.ne.s32.totalorder %s7276_s2, 0 }
 0x821   :  { %7280 = shalt.err (%p8051_p6)  }

</bundles_post_ra>
